<compile_context>
chip_gen: v7x
topology: tpu7x:2x2x1
jax: 0.10.0
libtpu: 0.0.40
codegen_flags: <defaults>
</compile_context>

<pallas_src>
import functools
import math

import jax
import jax.numpy as jnp
from jax.experimental import pallas as pl
from jax.experimental.pallas import tpu as pltpu

# MXU-native dtype; accumulation stays f32 via preferred_element_type.
MATMUL_DTYPE = jnp.bfloat16
NEG_INF = -1e30  # additive mask applied in f32 only (never in the bf16 path)


# ----------------------------------------------------------------------------- helpers

def _gelu(x):
    # tanh approximation of GELU (see TODO); f32 VPU/EUP math.
    c = math.sqrt(2.0 / math.pi)
    return 0.5 * x * (1.0 + jnp.tanh(c * (x + 0.044715 * x * x * x)))


def _layernorm(v, g, b, eps=1e-5):
    mu = jnp.mean(v, axis=-1, keepdims=True)
    c = v - mu
    var = jnp.mean(c * c, axis=-1, keepdims=True)
    return c * jax.lax.rsqrt(var + eps) * g + b


def _mm(a_bf16, w_bf16):
    # bf16 MXU matmul with f32 accumulation (operands already bf16).
    return jnp.dot(a_bf16, w_bf16, preferred_element_type=jnp.float32)


# ----------------------------------------------------------------------------- kernel

def vision_encoder_kernel(
        goal_mask_ref,                                             # scalar-prefetch (BS,) i32
        imgs_ref, goal_ref, obs_w_ref, goal_w_ref, rowbias_ref,
        wqkv_ref, bqkv_ref, wo_ref, bo_ref,
        g1_ref, be1_ref, w1_ref, b1_ref, w2_ref, b2_ref, g2_ref, be2_ref,
        o_ref,
        *, C, D, H, L):
    S = C + 1
    Dh = D // H
    scale = 1.0 / math.sqrt(Dh)

    b = pl.program_id(0)
    gm = goal_mask_ref[b]                                          # scalar from SMEM
    goal_is_masked = gm == 1

    # ---- token encoders --------------------------------------------------------
    # Stand-in backbone: spatial mean folded into obs_w -> single (C, 3HW)@(3HW, D)
    # matmul. Linear biases + positional encoding are pre-folded into rowbias.
    obs_tok = jnp.dot(imgs_ref[0], obs_w_ref[...],
                      preferred_element_type=jnp.float32)          # (C, D)
    goal_tok = jnp.dot(goal_ref[0], goal_w_ref[...],
                       preferred_element_type=jnp.float32)         # (1, D)

    # Assemble the (S, D) token slab in registers (no scratch store/reload).
    x = jnp.concatenate([obs_tok, goal_tok], axis=0) + rowbias_ref[...]   # (S, D) f32

    # ---- masks built in-kernel from the goal_mask scalar -------------------------
    col = jax.lax.broadcasted_iota(jnp.int32, (1, S), 1)
    last_col = col == (S - 1)
    key_bias = jnp.where(jnp.logical_and(last_col, goal_is_masked),
                         NEG_INF, 0.0)                             # (1, S) additive

    # ---- 4 post-norm transformer encoder layers ---------------------------------
    for l in range(L):                                             # static L
        x_bf = x.astype(MATMUL_DTYPE)
        qkv = _mm(x_bf, wqkv_ref[l]) + bqkv_ref[l]                 # (S, 3D) f32
        q = qkv[:, 0 * D:1 * D].astype(MATMUL_DTYPE)               # cast once, reuse
        kT = qkv[:, 1 * D:2 * D].T.astype(MATMUL_DTYPE)            # one transpose / layer
        v = qkv[:, 2 * D:3 * D].astype(MATMUL_DTYPE)
        wo_l = wo_ref[l]                                           # (D, D) bf16

        attn = bo_ref[l]                                           # (1, D) f32, broadcasts
        for h in range(H):                                         # static H
            qh = q[:, h * Dh:(h + 1) * Dh]                         # (S, Dh)
            kTh = kT[h * Dh:(h + 1) * Dh, :]                       # (Dh, S)
            vh = v[:, h * Dh:(h + 1) * Dh]                         # (S, Dh)

            sc = _mm(qh, kTh) * scale + key_bias                   # (S, S) f32
            sc = sc - jnp.max(sc, axis=-1, keepdims=True)
            p = jnp.exp(sc)
            p = p * pl.reciprocal(jnp.sum(p, axis=-1, keepdims=True), approx=True)

            head = _mm(p.astype(MATMUL_DTYPE), vh)                 # (S, Dh) f32
            # per-head out-projection accumulation (no lane concat of heads)
            attn = attn + _mm(head.astype(MATMUL_DTYPE),
                              wo_l[h * Dh:(h + 1) * Dh, :])        # (S, D)

        y = _layernorm(x + attn, g1_ref[l], be1_ref[l])
        hdn = _gelu(_mm(y.astype(MATMUL_DTYPE), w1_ref[l]) + b1_ref[l])   # (S, 4D)
        ff = _mm(hdn.astype(MATMUL_DTYPE), w2_ref[l]) + b2_ref[l]
        x = _layernorm(y + ff, g2_ref[l], be2_ref[l])

    # ---- masked mean over tokens as one (1, S) @ (S, D) matmul -------------------
    # avg_masks[0] = 1/S everywhere; avg_masks[1] = 1/C except 0 on the goal token.
    pool = jnp.where(goal_is_masked,
                     jnp.where(last_col, 0.0, 1.0 / C),
                     1.0 / S)                                      # (1, S) f32
    o_ref[0] = jnp.dot(pool, x, preferred_element_type=jnp.float32)


# ----------------------------------------------------------------------------- params

def init_params(key, enc_dim, context_size, img_hw, backbone_dim=1280,
                nhead=2, nlayers=4):
    D = enc_dim
    C = context_size
    S = C + 1
    F = 4 * D
    keys = iter(jax.random.split(key, 64))

    def nrm(shape, scale=0.05):
        return scale * jax.random.normal(next(keys), shape, dtype=jnp.float32)

    # Stand-in backbone (Linear 3 -> 1280) pre-composed with compress_obs_enc (1280 -> D),
    # then the 1/(H*W) spatial mean folded in -> (3*H*W, D).
    backbone_w_t = nrm((3, backbone_dim))
    backbone_b = nrm((1, backbone_dim))
    compress_w_t = nrm((backbone_dim, D))
    compress_b = nrm((1, D))
    obs_w3 = backbone_w_t @ compress_w_t                       # (3, D)
    obs_b = backbone_b @ compress_w_t + compress_b              # (1, D)
    obs_w = jnp.repeat(obs_w3 / float(img_hw), img_hw, axis=0)  # (3*HW, D)

    goal_w = nrm((2, D))
    goal_b = nrm((1, D))

    # PositionalEncoding buffer (exactly as the PyTorch module computes it).
    pos = jnp.arange(S, dtype=jnp.float32)[:, None]
    div = jnp.exp(jnp.arange(0, D, 2, dtype=jnp.float32) * (-math.log(10000.0) / D))
    pe = jnp.zeros((S, D), jnp.float32)
    pe = pe.at[:, 0::2].set(jnp.sin(pos * div))
    pe = pe.at[:, 1::2].set(jnp.cos(pos * div))
    # Fold the obs/goal linear biases into a single per-row additive table.
    rowbias = pe + jnp.concatenate([jnp.tile(obs_b, (C, 1)), goal_b], axis=0)  # (S, D)

    params = {
        'enc_dim': D, 'context_size': C, 'nhead': nhead, 'nlayers': nlayers,
        'img_hw': img_hw,
        'obs_w': obs_w, 'goal_w': goal_w, 'rowbias': rowbias,
    }

    # Transformer layers: fused QKV weights, stacked over layers.
    wqkv, bqkv, wo, bo = [], [], [], []
    g1, be1, w1, b1, w2, b2, g2, be2 = [], [], [], [], [], [], [], []
    for _ in range(nlayers):
        in_proj_w = nrm((3 * D, D))           # PyTorch MultiheadAttention in_proj_weight
        in_proj_b = nrm((3 * D,))
        out_proj_w = nrm((D, D))
        out_proj_b = nrm((D,))
        lin1_w = nrm((F, D)); lin1_b = nrm((F,))
        lin2_w = nrm((D, F)); lin2_b = nrm((D,))

        wqkv.append(in_proj_w.T)              # (D, 3D): x @ W.T -> [q | k | v]
        bqkv.append(in_proj_b.reshape(1, 3 * D))
        wo.append(out_proj_w.T)               # (D, D)
        bo.append(out_proj_b.reshape(1, D))
        g1.append(jnp.ones((1, D), jnp.float32)); be1.append(jnp.zeros((1, D), jnp.float32))
        w1.append(lin1_w.T); b1.append(lin1_b.reshape(1, F))
        w2.append(lin2_w.T); b2.append(lin2_b.reshape(1, D))
        g2.append(jnp.ones((1, D), jnp.float32)); be2.append(jnp.zeros((1, D), jnp.float32))

    params['wqkv'] = jnp.stack(wqkv).astype(MATMUL_DTYPE)
    params['bqkv'] = jnp.stack(bqkv)
    params['wo'] = jnp.stack(wo).astype(MATMUL_DTYPE)
    params['bo'] = jnp.stack(bo)
    params['g1'] = jnp.stack(g1); params['be1'] = jnp.stack(be1)
    params['w1'] = jnp.stack(w1).astype(MATMUL_DTYPE); params['b1'] = jnp.stack(b1)
    params['w2'] = jnp.stack(w2).astype(MATMUL_DTYPE); params['b2'] = jnp.stack(b2)
    params['g2'] = jnp.stack(g2); params['be2'] = jnp.stack(be2)
    return params


# ----------------------------------------------------------------------------- forward

def vision_encoder_forward(params, obs_imgs, goal_vec, goal_mask):
    BS, C = obs_imgs.shape[0], obs_imgs.shape[1]
    D = params['enc_dim']
    H = params['nhead']
    L = params['nlayers']
    HW = obs_imgs.shape[3] * obs_imgs.shape[4]
    assert 3 * HW == params['obs_w'].shape[0], "image spatial size must match init_params"
    assert C == params['context_size']

    imgs = obs_imgs.reshape(BS, C, 3 * HW)        # (BS, C, 3*H*W): channel-major flatten
    goal = goal_vec.reshape(BS, 1, 2)
    gmask = goal_mask.astype(jnp.int32)           # scalar-prefetch input

    kernel = functools.partial(vision_encoder_kernel, C=C, D=D, H=H, L=L)

    def full2(arr):
        return pl.BlockSpec(arr.shape, lambda b, gm: (0, 0))

    def full3(arr):
        return pl.BlockSpec(arr.shape, lambda b, gm: (0, 0, 0))

    grid_spec = pltpu.PrefetchScalarGridSpec(
        num_scalar_prefetch=1,
        grid=(BS,),
        in_specs=[
            pl.BlockSpec((1, C, 3 * HW), lambda b, gm: (b, 0, 0)),   # per-batch images
            pl.BlockSpec((1, 1, 2), lambda b, gm: (b, 0, 0)),        # per-batch goal vec
            full2(params['obs_w']),
            full2(params['goal_w']),
            full2(params['rowbias']),
            full3(params['wqkv']), full3(params['bqkv']),
            full3(params['wo']), full3(params['bo']),
            full3(params['g1']), full3(params['be1']),
            full3(params['w1']), full3(params['b1']),
            full3(params['w2']), full3(params['b2']),
            full3(params['g2']), full3(params['be2']),
        ],
        out_specs=pl.BlockSpec((1, 1, D), lambda b, gm: (b, 0, 0)),
    )

    out = pl.pallas_call(
        kernel,
        out_shape=jax.ShapeDtypeStruct((BS, 1, D), jnp.float32),
        grid_spec=grid_spec,
        compiler_params=pltpu.CompilerParams(
            dimension_semantics=("parallel",)),   # both TCs on v7x; no-op on v5e/v6e
    )(gmask, imgs, goal,
      params['obs_w'], params['goal_w'], params['rowbias'],
      params['wqkv'], params['bqkv'], params['wo'], params['bo'],
      params['g1'], params['be1'], params['w1'], params['b1'],
      params['w2'], params['b2'], params['g2'], params['be2'])

    return out.reshape(BS, D)


# ----------------------------------------------------------------------------- main

if __name__ == "__main__":
    enc_dim = 32
    context_size = 5
    BS = 2
    Himg = Wimg = 16

    key = jax.random.PRNGKey(0)
    k_img, k_goal, k_par = jax.random.split(key, 3)
    obs_imgs = jax.random.normal(k_img, (BS, context_size, 3, Himg, Wimg), jnp.float32)
    goal_vec = jax.random.normal(k_goal, (BS, 2), jnp.float32)
    goal_mask = jnp.array([0, 1], dtype=jnp.int32)

    params = init_params(k_par, enc_dim, context_size, img_hw=Himg * Wimg)

    out = vision_encoder_forward(params, obs_imgs, goal_vec, goal_mask)
    out = jax.block_until_ready(out)
    assert out.shape == (BS, enc_dim), out.shape
    assert bool(jnp.all(jnp.isfinite(out)))
    print("KERNEL_OK")
</pallas_src>

<mosaic_0001>
module attributes {stable_mosaic.version = 11 : i64} {
  func.func @vision_encoder_kernel(%arg0: i32, %arg1: memref<2xi32, #tpu.memory_space<smem>>, %arg2: memref<1x5x768xf32, #tpu.memory_space<vmem>>, %arg3: memref<1x1x2xf32, #tpu.memory_space<vmem>>, %arg4: memref<768x32xf32, #tpu.memory_space<vmem>>, %arg5: memref<2x32xf32, #tpu.memory_space<vmem>>, %arg6: memref<6x32xf32, #tpu.memory_space<vmem>>, %arg7: memref<4x32x96xbf16, #tpu.memory_space<vmem>>, %arg8: memref<4x1x96xf32, #tpu.memory_space<vmem>>, %arg9: memref<4x32x32xbf16, #tpu.memory_space<vmem>>, %arg10: memref<4x1x32xf32, #tpu.memory_space<vmem>>, %arg11: memref<4x1x32xf32, #tpu.memory_space<vmem>>, %arg12: memref<4x1x32xf32, #tpu.memory_space<vmem>>, %arg13: memref<4x32x128xbf16, #tpu.memory_space<vmem>>, %arg14: memref<4x1x128xf32, #tpu.memory_space<vmem>>, %arg15: memref<4x128x32xbf16, #tpu.memory_space<vmem>>, %arg16: memref<4x1x32xf32, #tpu.memory_space<vmem>>, %arg17: memref<4x1x32xf32, #tpu.memory_space<vmem>>, %arg18: memref<4x1x32xf32, #tpu.memory_space<vmem>>, %arg19: memref<1x1x32xf32, #tpu.memory_space<vmem>>) attributes {dimension_semantics = [#tpu.dimension_semantics<parallel>], iteration_bounds = array<i64: 2>, scalar_prefetch = 1 : i64, scratch_operands = 0 : i64, tpu.core_type = #tpu.core_type<tc>, window_params = [{transform_indices = @transform_0, window_bounds = array<i64: 1, 5, 768>}, {transform_indices = @transform_1, window_bounds = array<i64: 1, 1, 2>}, {pipeline_mode = #tpu.pipeline_mode<synchronous>, transform_indices = @transform_2, window_bounds = array<i64: 768, 32>}, {pipeline_mode = #tpu.pipeline_mode<synchronous>, transform_indices = @transform_3, window_bounds = array<i64: 2, 32>}, {pipeline_mode = #tpu.pipeline_mode<synchronous>, transform_indices = @transform_4, window_bounds = array<i64: 6, 32>}, {pipeline_mode = #tpu.pipeline_mode<synchronous>, transform_indices = @transform_5, window_bounds = array<i64: 4, 32, 96>}, {pipeline_mode = #tpu.pipeline_mode<synchronous>, transform_indices = @transform_6, window_bounds = array<i64: 4, 1, 96>}, {pipeline_mode = #tpu.pipeline_mode<synchronous>, transform_indices = @transform_7, window_bounds = array<i64: 4, 32, 32>}, {pipeline_mode = #tpu.pipeline_mode<synchronous>, transform_indices = @transform_8, window_bounds = array<i64: 4, 1, 32>}, {pipeline_mode = #tpu.pipeline_mode<synchronous>, transform_indices = @transform_9, window_bounds = array<i64: 4, 1, 32>}, {pipeline_mode = #tpu.pipeline_mode<synchronous>, transform_indices = @transform_10, window_bounds = array<i64: 4, 1, 32>}, {pipeline_mode = #tpu.pipeline_mode<synchronous>, transform_indices = @transform_11, window_bounds = array<i64: 4, 32, 128>}, {pipeline_mode = #tpu.pipeline_mode<synchronous>, transform_indices = @transform_12, window_bounds = array<i64: 4, 1, 128>}, {pipeline_mode = #tpu.pipeline_mode<synchronous>, transform_indices = @transform_13, window_bounds = array<i64: 4, 128, 32>}, {pipeline_mode = #tpu.pipeline_mode<synchronous>, transform_indices = @transform_14, window_bounds = array<i64: 4, 1, 32>}, {pipeline_mode = #tpu.pipeline_mode<synchronous>, transform_indices = @transform_15, window_bounds = array<i64: 4, 1, 32>}, {pipeline_mode = #tpu.pipeline_mode<synchronous>, transform_indices = @transform_16, window_bounds = array<i64: 4, 1, 32>}, {transform_indices = @transform_17, window_bounds = array<i64: 1, 1, 32>}]} {
    %0 = arith.index_cast %arg0 : i32 to index
    %1 = memref.load %arg1[%0] : memref<2xi32, #tpu.memory_space<smem>>
    %c1_i32 = arith.constant 1 : i32
    %2 = arith.cmpi eq, %1, %c1_i32 : i32
    %c0 = arith.constant 0 : index
    %c0_0 = arith.constant 0 : index
    %c0_1 = arith.constant 0 : index
    %3 = vector.load %arg2[%c0, %c0_0, %c0_1] : memref<1x5x768xf32, #tpu.memory_space<vmem>>, vector<1x5x768xf32>
    %4 = vector.shape_cast %3 : vector<1x5x768xf32> to vector<5x768xf32>
    %c0_2 = arith.constant 0 : index
    %c0_3 = arith.constant 0 : index
    %5 = vector.load %arg4[%c0_2, %c0_3] : memref<768x32xf32, #tpu.memory_space<vmem>>, vector<768x32xf32>
    %cst = arith.constant dense<0.000000e+00> : vector<5x32xf32>
    %6 = tpu.matmul %4, %5, %cst {dimension_numbers = #tpu.dot_dimension_numbers<[1], [0], [0], [1], [0, 0, 1, 1], [], []>} : vector<5x768xf32>, vector<768x32xf32>, vector<5x32xf32> -> vector<5x32xf32>
    %c0_4 = arith.constant 0 : index
    %c0_5 = arith.constant 0 : index
    %c0_6 = arith.constant 0 : index
    %7 = vector.load %arg3[%c0_4, %c0_5, %c0_6] : memref<1x1x2xf32, #tpu.memory_space<vmem>>, vector<1x1x2xf32>
    %8 = vector.shape_cast %7 : vector<1x1x2xf32> to vector<1x2xf32>
    %c0_7 = arith.constant 0 : index
    %c0_8 = arith.constant 0 : index
    %9 = vector.load %arg5[%c0_7, %c0_8] : memref<2x32xf32, #tpu.memory_space<vmem>>, vector<2x32xf32>
    %cst_9 = arith.constant dense<0.000000e+00> : vector<1x32xf32>
    %10 = tpu.matmul %8, %9, %cst_9 {dimension_numbers = #tpu.dot_dimension_numbers<[1], [0], [0], [1], [0, 0, 1, 1], [], []>} : vector<1x2xf32>, vector<2x32xf32>, vector<1x32xf32> -> vector<1x32xf32>
    %11 = tpu.concatenate %6, %10 in 0 : vector<5x32xf32>, vector<1x32xf32> -> vector<6x32xf32>
    %c0_10 = arith.constant 0 : index
    %c0_11 = arith.constant 0 : index
    %12 = vector.load %arg6[%c0_10, %c0_11] : memref<6x32xf32, #tpu.memory_space<vmem>>, vector<6x32xf32>
    %13 = arith.addf %11, %12 : vector<6x32xf32>
    %14 = tpu.iota {dimensions = array<i32: 1>} : vector<1x6xi32>
    %c5_i32 = arith.constant 5 : i32
    %15 = vector.broadcast %c5_i32 : i32 to vector<1x6xi32>
    %16 = arith.cmpi eq, %14, %15 : vector<1x6xi32>
    %17 = vector.broadcast %2 : i1 to vector<1x6xi1>
    %18 = arith.andi %16, %17 : vector<1x6xi1>
    %cst_12 = arith.constant -1.000000e+30 : f32
    %cst_13 = arith.constant 0.000000e+00 : f32
    %19 = vector.broadcast %cst_12 : f32 to vector<1x6xf32>
    %20 = vector.broadcast %cst_13 : f32 to vector<1x6xf32>
    %21 = arith.select %18, %19, %20 : vector<1x6xi1>, vector<1x6xf32>
    %22 = arith.truncf %13 : vector<6x32xf32> to vector<6x32xbf16>
    %c0_14 = arith.constant 0 : index
    %c0_15 = arith.constant 0 : index
    %c0_16 = arith.constant 0 : index
    %23 = vector.load %arg7[%c0_14, %c0_15, %c0_16] : memref<4x32x96xbf16, #tpu.memory_space<vmem>>, vector<1x32x96xbf16>
    %24 = vector.shape_cast %23 : vector<1x32x96xbf16> to vector<32x96xbf16>
    %cst_17 = arith.constant dense<0.000000e+00> : vector<6x96xf32>
    %25 = tpu.matmul %22, %24, %cst_17 {dimension_numbers = #tpu.dot_dimension_numbers<[1], [0], [0], [1], [0, 0, 1, 1], [], []>} : vector<6x32xbf16>, vector<32x96xbf16>, vector<6x96xf32> -> vector<6x96xf32>
    %c0_18 = arith.constant 0 : index
    %c0_19 = arith.constant 0 : index
    %c0_20 = arith.constant 0 : index
    %26 = vector.load %arg8[%c0_18, %c0_19, %c0_20] : memref<4x1x96xf32, #tpu.memory_space<vmem>>, vector<1x1x96xf32>
    %27 = vector.shape_cast %26 : vector<1x1x96xf32> to vector<1x96xf32>
    %28 = vector.broadcast %27 : vector<1x96xf32> to vector<6x96xf32>
    %29 = arith.addf %25, %28 : vector<6x96xf32>
    %30 = vector.extract_strided_slice %29 {offsets = [0, 0], sizes = [6, 32], strides = [1, 1]} : vector<6x96xf32> to vector<6x32xf32>
    %31 = arith.truncf %30 : vector<6x32xf32> to vector<6x32xbf16>
    %32 = vector.extract_strided_slice %29 {offsets = [0, 32], sizes = [6, 32], strides = [1, 1]} : vector<6x96xf32> to vector<6x32xf32>
    %33 = tpu.transpose %32, [1, 0] : vector<6x32xf32> -> vector<32x6xf32>
    %34 = arith.truncf %33 : vector<32x6xf32> to vector<32x6xbf16>
    %35 = vector.extract_strided_slice %29 {offsets = [0, 64], sizes = [6, 32], strides = [1, 1]} : vector<6x96xf32> to vector<6x32xf32>
    %36 = arith.truncf %35 : vector<6x32xf32> to vector<6x32xbf16>
    %c0_21 = arith.constant 0 : index
    %c0_22 = arith.constant 0 : index
    %c0_23 = arith.constant 0 : index
    %37 = vector.load %arg9[%c0_21, %c0_22, %c0_23] : memref<4x32x32xbf16, #tpu.memory_space<vmem>>, vector<1x32x32xbf16>
    %38 = vector.shape_cast %37 : vector<1x32x32xbf16> to vector<32x32xbf16>
    %c0_24 = arith.constant 0 : index
    %c0_25 = arith.constant 0 : index
    %c0_26 = arith.constant 0 : index
    %39 = vector.load %arg10[%c0_24, %c0_25, %c0_26] : memref<4x1x32xf32, #tpu.memory_space<vmem>>, vector<1x1x32xf32>
    %40 = vector.shape_cast %39 : vector<1x1x32xf32> to vector<1x32xf32>
    %41 = vector.extract_strided_slice %31 {offsets = [0, 0], sizes = [6, 16], strides = [1, 1]} : vector<6x32xbf16> to vector<6x16xbf16>
    %42 = vector.extract_strided_slice %34 {offsets = [0, 0], sizes = [16, 6], strides = [1, 1]} : vector<32x6xbf16> to vector<16x6xbf16>
    %43 = vector.extract_strided_slice %36 {offsets = [0, 0], sizes = [6, 16], strides = [1, 1]} : vector<6x32xbf16> to vector<6x16xbf16>
    %cst_27 = arith.constant dense<0.000000e+00> : vector<6x6xf32>
    %44 = tpu.matmul %41, %42, %cst_27 {dimension_numbers = #tpu.dot_dimension_numbers<[1], [0], [0], [1], [0, 0, 1, 1], [], []>} : vector<6x16xbf16>, vector<16x6xbf16>, vector<6x6xf32> -> vector<6x6xf32>
    %cst_28 = arith.constant 2.500000e-01 : f32
    %45 = vector.broadcast %cst_28 : f32 to vector<6x6xf32>
    %46 = arith.mulf %44, %45 : vector<6x6xf32>
    %47 = vector.broadcast %21 : vector<1x6xf32> to vector<6x6xf32>
    %48 = arith.addf %46, %47 : vector<6x6xf32>
    %cst_29 = arith.constant dense<0xFF800000> : vector<6xf32>
    %49 = vector.multi_reduction <maximumf>, %48, %cst_29 [1] : vector<6x6xf32> to vector<6xf32>
    %50 = vector.shape_cast %49 : vector<6xf32> to vector<6x1xf32>
    %51 = vector.broadcast %50 : vector<6x1xf32> to vector<6x6xf32>
    %52 = arith.subf %48, %51 : vector<6x6xf32>
    %53 = math.exp %52 : vector<6x6xf32>
    %cst_30 = arith.constant dense<0.000000e+00> : vector<6xf32>
    %54 = vector.multi_reduction <add>, %53, %cst_30 [1] : vector<6x6xf32> to vector<6xf32>
    %55 = vector.shape_cast %54 : vector<6xf32> to vector<6x1xf32>
    %56 = tpu.reciprocal %55 {approx = true} : vector<6x1xf32> -> vector<6x1xf32>
    %57 = vector.broadcast %56 : vector<6x1xf32> to vector<6x6xf32>
    %58 = arith.mulf %53, %57 : vector<6x6xf32>
    %59 = arith.truncf %58 : vector<6x6xf32> to vector<6x6xbf16>
    %cst_31 = arith.constant dense<0.000000e+00> : vector<6x16xf32>
    %60 = tpu.matmul %59, %43, %cst_31 {dimension_numbers = #tpu.dot_dimension_numbers<[1], [0], [0], [1], [0, 0, 1, 1], [], []>} : vector<6x6xbf16>, vector<6x16xbf16>, vector<6x16xf32> -> vector<6x16xf32>
    %61 = arith.truncf %60 : vector<6x16xf32> to vector<6x16xbf16>
    %62 = vector.extract_strided_slice %38 {offsets = [0, 0], sizes = [16, 32], strides = [1, 1]} : vector<32x32xbf16> to vector<16x32xbf16>
    %cst_32 = arith.constant dense<0.000000e+00> : vector<6x32xf32>
    %63 = tpu.matmul %61, %62, %cst_32 {dimension_numbers = #tpu.dot_dimension_numbers<[1], [0], [0], [1], [0, 0, 1, 1], [], []>} : vector<6x16xbf16>, vector<16x32xbf16>, vector<6x32xf32> -> vector<6x32xf32>
    %64 = vector.broadcast %40 : vector<1x32xf32> to vector<6x32xf32>
    %65 = arith.addf %64, %63 : vector<6x32xf32>
    %66 = vector.extract_strided_slice %31 {offsets = [0, 16], sizes = [6, 16], strides = [1, 1]} : vector<6x32xbf16> to vector<6x16xbf16>
    %67 = vector.extract_strided_slice %34 {offsets = [16, 0], sizes = [16, 6], strides = [1, 1]} : vector<32x6xbf16> to vector<16x6xbf16>
    %68 = vector.extract_strided_slice %36 {offsets = [0, 16], sizes = [6, 16], strides = [1, 1]} : vector<6x32xbf16> to vector<6x16xbf16>
    %cst_33 = arith.constant dense<0.000000e+00> : vector<6x6xf32>
    %69 = tpu.matmul %66, %67, %cst_33 {dimension_numbers = #tpu.dot_dimension_numbers<[1], [0], [0], [1], [0, 0, 1, 1], [], []>} : vector<6x16xbf16>, vector<16x6xbf16>, vector<6x6xf32> -> vector<6x6xf32>
    %cst_34 = arith.constant 2.500000e-01 : f32
    %70 = vector.broadcast %cst_34 : f32 to vector<6x6xf32>
    %71 = arith.mulf %69, %70 : vector<6x6xf32>
    %72 = vector.broadcast %21 : vector<1x6xf32> to vector<6x6xf32>
    %73 = arith.addf %71, %72 : vector<6x6xf32>
    %cst_35 = arith.constant dense<0xFF800000> : vector<6xf32>
    %74 = vector.multi_reduction <maximumf>, %73, %cst_35 [1] : vector<6x6xf32> to vector<6xf32>
    %75 = vector.shape_cast %74 : vector<6xf32> to vector<6x1xf32>
    %76 = vector.broadcast %75 : vector<6x1xf32> to vector<6x6xf32>
    %77 = arith.subf %73, %76 : vector<6x6xf32>
    %78 = math.exp %77 : vector<6x6xf32>
    %cst_36 = arith.constant dense<0.000000e+00> : vector<6xf32>
    %79 = vector.multi_reduction <add>, %78, %cst_36 [1] : vector<6x6xf32> to vector<6xf32>
    %80 = vector.shape_cast %79 : vector<6xf32> to vector<6x1xf32>
    %81 = tpu.reciprocal %80 {approx = true} : vector<6x1xf32> -> vector<6x1xf32>
    %82 = vector.broadcast %81 : vector<6x1xf32> to vector<6x6xf32>
    %83 = arith.mulf %78, %82 : vector<6x6xf32>
    %84 = arith.truncf %83 : vector<6x6xf32> to vector<6x6xbf16>
    %cst_37 = arith.constant dense<0.000000e+00> : vector<6x16xf32>
    %85 = tpu.matmul %84, %68, %cst_37 {dimension_numbers = #tpu.dot_dimension_numbers<[1], [0], [0], [1], [0, 0, 1, 1], [], []>} : vector<6x6xbf16>, vector<6x16xbf16>, vector<6x16xf32> -> vector<6x16xf32>
    %86 = arith.truncf %85 : vector<6x16xf32> to vector<6x16xbf16>
    %87 = vector.extract_strided_slice %38 {offsets = [16, 0], sizes = [16, 32], strides = [1, 1]} : vector<32x32xbf16> to vector<16x32xbf16>
    %cst_38 = arith.constant dense<0.000000e+00> : vector<6x32xf32>
    %88 = tpu.matmul %86, %87, %cst_38 {dimension_numbers = #tpu.dot_dimension_numbers<[1], [0], [0], [1], [0, 0, 1, 1], [], []>} : vector<6x16xbf16>, vector<16x32xbf16>, vector<6x32xf32> -> vector<6x32xf32>
    %89 = arith.addf %65, %88 : vector<6x32xf32>
    %90 = arith.addf %13, %89 : vector<6x32xf32>
    %c0_39 = arith.constant 0 : index
    %c0_40 = arith.constant 0 : index
    %c0_41 = arith.constant 0 : index
    %91 = vector.load %arg11[%c0_39, %c0_40, %c0_41] : memref<4x1x32xf32, #tpu.memory_space<vmem>>, vector<1x1x32xf32>
    %92 = vector.shape_cast %91 : vector<1x1x32xf32> to vector<1x32xf32>
    %c0_42 = arith.constant 0 : index
    %c0_43 = arith.constant 0 : index
    %c0_44 = arith.constant 0 : index
    %93 = vector.load %arg12[%c0_42, %c0_43, %c0_44] : memref<4x1x32xf32, #tpu.memory_space<vmem>>, vector<1x1x32xf32>
    %94 = vector.shape_cast %93 : vector<1x1x32xf32> to vector<1x32xf32>
    %cst_45 = arith.constant dense<0.000000e+00> : vector<6xf32>
    %95 = vector.multi_reduction <add>, %90, %cst_45 [1] : vector<6x32xf32> to vector<6xf32>
    %96 = vector.shape_cast %95 : vector<6xf32> to vector<6x1xf32>
    %cst_46 = arith.constant 3.200000e+01 : f32
    %97 = vector.broadcast %cst_46 : f32 to vector<6x1xf32>
    %98 = arith.divf %96, %97 : vector<6x1xf32>
    %99 = vector.broadcast %98 : vector<6x1xf32> to vector<6x32xf32>
    %100 = arith.subf %90, %99 : vector<6x32xf32>
    %101 = arith.mulf %100, %100 : vector<6x32xf32>
    %cst_47 = arith.constant dense<0.000000e+00> : vector<6xf32>
    %102 = vector.multi_reduction <add>, %101, %cst_47 [1] : vector<6x32xf32> to vector<6xf32>
    %103 = vector.shape_cast %102 : vector<6xf32> to vector<6x1xf32>
    %cst_48 = arith.constant 3.200000e+01 : f32
    %104 = vector.broadcast %cst_48 : f32 to vector<6x1xf32>
    %105 = arith.divf %103, %104 : vector<6x1xf32>
    %cst_49 = arith.constant 9.99999974E-6 : f32
    %106 = vector.broadcast %cst_49 : f32 to vector<6x1xf32>
    %107 = arith.addf %105, %106 : vector<6x1xf32>
    %108 = math.rsqrt %107 : vector<6x1xf32>
    %109 = vector.broadcast %108 : vector<6x1xf32> to vector<6x32xf32>
    %110 = arith.mulf %100, %109 : vector<6x32xf32>
    %111 = vector.broadcast %92 : vector<1x32xf32> to vector<6x32xf32>
    %112 = arith.mulf %110, %111 : vector<6x32xf32>
    %113 = vector.broadcast %94 : vector<1x32xf32> to vector<6x32xf32>
    %114 = arith.addf %112, %113 : vector<6x32xf32>
    %115 = arith.truncf %114 : vector<6x32xf32> to vector<6x32xbf16>
    %c0_50 = arith.constant 0 : index
    %c0_51 = arith.constant 0 : index
    %c0_52 = arith.constant 0 : index
    %116 = vector.load %arg13[%c0_50, %c0_51, %c0_52] : memref<4x32x128xbf16, #tpu.memory_space<vmem>>, vector<1x32x128xbf16>
    %117 = vector.shape_cast %116 : vector<1x32x128xbf16> to vector<32x128xbf16>
    %cst_53 = arith.constant dense<0.000000e+00> : vector<6x128xf32>
    %118 = tpu.matmul %115, %117, %cst_53 {dimension_numbers = #tpu.dot_dimension_numbers<[1], [0], [0], [1], [0, 0, 1, 1], [], []>} : vector<6x32xbf16>, vector<32x128xbf16>, vector<6x128xf32> -> vector<6x128xf32>
    %c0_54 = arith.constant 0 : index
    %c0_55 = arith.constant 0 : index
    %c0_56 = arith.constant 0 : index
    %119 = vector.load %arg14[%c0_54, %c0_55, %c0_56] : memref<4x1x128xf32, #tpu.memory_space<vmem>>, vector<1x1x128xf32>
    %120 = vector.shape_cast %119 : vector<1x1x128xf32> to vector<1x128xf32>
    %121 = vector.broadcast %120 : vector<1x128xf32> to vector<6x128xf32>
    %122 = arith.addf %118, %121 : vector<6x128xf32>
    %cst_57 = arith.constant 5.000000e-01 : f32
    %123 = vector.broadcast %cst_57 : f32 to vector<6x128xf32>
    %124 = arith.mulf %123, %122 : vector<6x128xf32>
    %cst_58 = arith.constant 4.471500e-02 : f32
    %125 = vector.broadcast %cst_58 : f32 to vector<6x128xf32>
    %126 = arith.mulf %125, %122 : vector<6x128xf32>
    %127 = arith.mulf %126, %122 : vector<6x128xf32>
    %128 = arith.mulf %127, %122 : vector<6x128xf32>
    %129 = arith.addf %122, %128 : vector<6x128xf32>
    %cst_59 = arith.constant 0.797884583 : f32
    %130 = vector.broadcast %cst_59 : f32 to vector<6x128xf32>
    %131 = arith.mulf %130, %129 : vector<6x128xf32>
    %132 = math.tanh %131 : vector<6x128xf32>
    %cst_60 = arith.constant 1.000000e+00 : f32
    %133 = vector.broadcast %cst_60 : f32 to vector<6x128xf32>
    %134 = arith.addf %133, %132 : vector<6x128xf32>
    %135 = arith.mulf %124, %134 : vector<6x128xf32>
    %136 = arith.truncf %135 : vector<6x128xf32> to vector<6x128xbf16>
    %c0_61 = arith.constant 0 : index
    %c0_62 = arith.constant 0 : index
    %c0_63 = arith.constant 0 : index
    %137 = vector.load %arg15[%c0_61, %c0_62, %c0_63] : memref<4x128x32xbf16, #tpu.memory_space<vmem>>, vector<1x128x32xbf16>
    %138 = vector.shape_cast %137 : vector<1x128x32xbf16> to vector<128x32xbf16>
    %cst_64 = arith.constant dense<0.000000e+00> : vector<6x32xf32>
    %139 = tpu.matmul %136, %138, %cst_64 {dimension_numbers = #tpu.dot_dimension_numbers<[1], [0], [0], [1], [0, 0, 1, 1], [], []>} : vector<6x128xbf16>, vector<128x32xbf16>, vector<6x32xf32> -> vector<6x32xf32>
    %c0_65 = arith.constant 0 : index
    %c0_66 = arith.constant 0 : index
    %c0_67 = arith.constant 0 : index
    %140 = vector.load %arg16[%c0_65, %c0_66, %c0_67] : memref<4x1x32xf32, #tpu.memory_space<vmem>>, vector<1x1x32xf32>
    %141 = vector.shape_cast %140 : vector<1x1x32xf32> to vector<1x32xf32>
    %142 = vector.broadcast %141 : vector<1x32xf32> to vector<6x32xf32>
    %143 = arith.addf %139, %142 : vector<6x32xf32>
    %144 = arith.addf %114, %143 : vector<6x32xf32>
    %c0_68 = arith.constant 0 : index
    %c0_69 = arith.constant 0 : index
    %c0_70 = arith.constant 0 : index
    %145 = vector.load %arg17[%c0_68, %c0_69, %c0_70] : memref<4x1x32xf32, #tpu.memory_space<vmem>>, vector<1x1x32xf32>
    %146 = vector.shape_cast %145 : vector<1x1x32xf32> to vector<1x32xf32>
    %c0_71 = arith.constant 0 : index
    %c0_72 = arith.constant 0 : index
    %c0_73 = arith.constant 0 : index
    %147 = vector.load %arg18[%c0_71, %c0_72, %c0_73] : memref<4x1x32xf32, #tpu.memory_space<vmem>>, vector<1x1x32xf32>
    %148 = vector.shape_cast %147 : vector<1x1x32xf32> to vector<1x32xf32>
    %cst_74 = arith.constant dense<0.000000e+00> : vector<6xf32>
    %149 = vector.multi_reduction <add>, %144, %cst_74 [1] : vector<6x32xf32> to vector<6xf32>
    %150 = vector.shape_cast %149 : vector<6xf32> to vector<6x1xf32>
    %cst_75 = arith.constant 3.200000e+01 : f32
    %151 = vector.broadcast %cst_75 : f32 to vector<6x1xf32>
    %152 = arith.divf %150, %151 : vector<6x1xf32>
    %153 = vector.broadcast %152 : vector<6x1xf32> to vector<6x32xf32>
    %154 = arith.subf %144, %153 : vector<6x32xf32>
    %155 = arith.mulf %154, %154 : vector<6x32xf32>
    %cst_76 = arith.constant dense<0.000000e+00> : vector<6xf32>
    %156 = vector.multi_reduction <add>, %155, %cst_76 [1] : vector<6x32xf32> to vector<6xf32>
    %157 = vector.shape_cast %156 : vector<6xf32> to vector<6x1xf32>
    %cst_77 = arith.constant 3.200000e+01 : f32
    %158 = vector.broadcast %cst_77 : f32 to vector<6x1xf32>
    %159 = arith.divf %157, %158 : vector<6x1xf32>
    %cst_78 = arith.constant 9.99999974E-6 : f32
    %160 = vector.broadcast %cst_78 : f32 to vector<6x1xf32>
    %161 = arith.addf %159, %160 : vector<6x1xf32>
    %162 = math.rsqrt %161 : vector<6x1xf32>
    %163 = vector.broadcast %162 : vector<6x1xf32> to vector<6x32xf32>
    %164 = arith.mulf %154, %163 : vector<6x32xf32>
    %165 = vector.broadcast %146 : vector<1x32xf32> to vector<6x32xf32>
    %166 = arith.mulf %164, %165 : vector<6x32xf32>
    %167 = vector.broadcast %148 : vector<1x32xf32> to vector<6x32xf32>
    %168 = arith.addf %166, %167 : vector<6x32xf32>
    %169 = arith.truncf %168 : vector<6x32xf32> to vector<6x32xbf16>
    %c1 = arith.constant 1 : index
    %c0_79 = arith.constant 0 : index
    %c0_80 = arith.constant 0 : index
    %170 = vector.load %arg7[%c1, %c0_79, %c0_80] : memref<4x32x96xbf16, #tpu.memory_space<vmem>>, vector<1x32x96xbf16>
    %171 = vector.shape_cast %170 : vector<1x32x96xbf16> to vector<32x96xbf16>
    %cst_81 = arith.constant dense<0.000000e+00> : vector<6x96xf32>
    %172 = tpu.matmul %169, %171, %cst_81 {dimension_numbers = #tpu.dot_dimension_numbers<[1], [0], [0], [1], [0, 0, 1, 1], [], []>} : vector<6x32xbf16>, vector<32x96xbf16>, vector<6x96xf32> -> vector<6x96xf32>
    %c1_82 = arith.constant 1 : index
    %c0_83 = arith.constant 0 : index
    %c0_84 = arith.constant 0 : index
    %173 = vector.load %arg8[%c1_82, %c0_83, %c0_84] : memref<4x1x96xf32, #tpu.memory_space<vmem>>, vector<1x1x96xf32>
    %174 = vector.shape_cast %173 : vector<1x1x96xf32> to vector<1x96xf32>
    %175 = vector.broadcast %174 : vector<1x96xf32> to vector<6x96xf32>
    %176 = arith.addf %172, %175 : vector<6x96xf32>
    %177 = vector.extract_strided_slice %176 {offsets = [0, 0], sizes = [6, 32], strides = [1, 1]} : vector<6x96xf32> to vector<6x32xf32>
    %178 = arith.truncf %177 : vector<6x32xf32> to vector<6x32xbf16>
    %179 = vector.extract_strided_slice %176 {offsets = [0, 32], sizes = [6, 32], strides = [1, 1]} : vector<6x96xf32> to vector<6x32xf32>
    %180 = tpu.transpose %179, [1, 0] : vector<6x32xf32> -> vector<32x6xf32>
    %181 = arith.truncf %180 : vector<32x6xf32> to vector<32x6xbf16>
    %182 = vector.extract_strided_slice %176 {offsets = [0, 64], sizes = [6, 32], strides = [1, 1]} : vector<6x96xf32> to vector<6x32xf32>
    %183 = arith.truncf %182 : vector<6x32xf32> to vector<6x32xbf16>
    %c1_85 = arith.constant 1 : index
    %c0_86 = arith.constant 0 : index
    %c0_87 = arith.constant 0 : index
    %184 = vector.load %arg9[%c1_85, %c0_86, %c0_87] : memref<4x32x32xbf16, #tpu.memory_space<vmem>>, vector<1x32x32xbf16>
    %185 = vector.shape_cast %184 : vector<1x32x32xbf16> to vector<32x32xbf16>
    %c1_88 = arith.constant 1 : index
    %c0_89 = arith.constant 0 : index
    %c0_90 = arith.constant 0 : index
    %186 = vector.load %arg10[%c1_88, %c0_89, %c0_90] : memref<4x1x32xf32, #tpu.memory_space<vmem>>, vector<1x1x32xf32>
    %187 = vector.shape_cast %186 : vector<1x1x32xf32> to vector<1x32xf32>
    %188 = vector.extract_strided_slice %178 {offsets = [0, 0], sizes = [6, 16], strides = [1, 1]} : vector<6x32xbf16> to vector<6x16xbf16>
    %189 = vector.extract_strided_slice %181 {offsets = [0, 0], sizes = [16, 6], strides = [1, 1]} : vector<32x6xbf16> to vector<16x6xbf16>
    %190 = vector.extract_strided_slice %183 {offsets = [0, 0], sizes = [6, 16], strides = [1, 1]} : vector<6x32xbf16> to vector<6x16xbf16>
    %cst_91 = arith.constant dense<0.000000e+00> : vector<6x6xf32>
    %191 = tpu.matmul %188, %189, %cst_91 {dimension_numbers = #tpu.dot_dimension_numbers<[1], [0], [0], [1], [0, 0, 1, 1], [], []>} : vector<6x16xbf16>, vector<16x6xbf16>, vector<6x6xf32> -> vector<6x6xf32>
    %cst_92 = arith.constant 2.500000e-01 : f32
    %192 = vector.broadcast %cst_92 : f32 to vector<6x6xf32>
    %193 = arith.mulf %191, %192 : vector<6x6xf32>
    %194 = vector.broadcast %21 : vector<1x6xf32> to vector<6x6xf32>
    %195 = arith.addf %193, %194 : vector<6x6xf32>
    %cst_93 = arith.constant dense<0xFF800000> : vector<6xf32>
    %196 = vector.multi_reduction <maximumf>, %195, %cst_93 [1] : vector<6x6xf32> to vector<6xf32>
    %197 = vector.shape_cast %196 : vector<6xf32> to vector<6x1xf32>
    %198 = vector.broadcast %197 : vector<6x1xf32> to vector<6x6xf32>
    %199 = arith.subf %195, %198 : vector<6x6xf32>
    %200 = math.exp %199 : vector<6x6xf32>
    %cst_94 = arith.constant dense<0.000000e+00> : vector<6xf32>
    %201 = vector.multi_reduction <add>, %200, %cst_94 [1] : vector<6x6xf32> to vector<6xf32>
    %202 = vector.shape_cast %201 : vector<6xf32> to vector<6x1xf32>
    %203 = tpu.reciprocal %202 {approx = true} : vector<6x1xf32> -> vector<6x1xf32>
    %204 = vector.broadcast %203 : vector<6x1xf32> to vector<6x6xf32>
    %205 = arith.mulf %200, %204 : vector<6x6xf32>
    %206 = arith.truncf %205 : vector<6x6xf32> to vector<6x6xbf16>
    %cst_95 = arith.constant dense<0.000000e+00> : vector<6x16xf32>
    %207 = tpu.matmul %206, %190, %cst_95 {dimension_numbers = #tpu.dot_dimension_numbers<[1], [0], [0], [1], [0, 0, 1, 1], [], []>} : vector<6x6xbf16>, vector<6x16xbf16>, vector<6x16xf32> -> vector<6x16xf32>
    %208 = arith.truncf %207 : vector<6x16xf32> to vector<6x16xbf16>
    %209 = vector.extract_strided_slice %185 {offsets = [0, 0], sizes = [16, 32], strides = [1, 1]} : vector<32x32xbf16> to vector<16x32xbf16>
    %cst_96 = arith.constant dense<0.000000e+00> : vector<6x32xf32>
    %210 = tpu.matmul %208, %209, %cst_96 {dimension_numbers = #tpu.dot_dimension_numbers<[1], [0], [0], [1], [0, 0, 1, 1], [], []>} : vector<6x16xbf16>, vector<16x32xbf16>, vector<6x32xf32> -> vector<6x32xf32>
    %211 = vector.broadcast %187 : vector<1x32xf32> to vector<6x32xf32>
    %212 = arith.addf %211, %210 : vector<6x32xf32>
    %213 = vector.extract_strided_slice %178 {offsets = [0, 16], sizes = [6, 16], strides = [1, 1]} : vector<6x32xbf16> to vector<6x16xbf16>
    %214 = vector.extract_strided_slice %181 {offsets = [16, 0], sizes = [16, 6], strides = [1, 1]} : vector<32x6xbf16> to vector<16x6xbf16>
    %215 = vector.extract_strided_slice %183 {offsets = [0, 16], sizes = [6, 16], strides = [1, 1]} : vector<6x32xbf16> to vector<6x16xbf16>
    %cst_97 = arith.constant dense<0.000000e+00> : vector<6x6xf32>
    %216 = tpu.matmul %213, %214, %cst_97 {dimension_numbers = #tpu.dot_dimension_numbers<[1], [0], [0], [1], [0, 0, 1, 1], [], []>} : vector<6x16xbf16>, vector<16x6xbf16>, vector<6x6xf32> -> vector<6x6xf32>
    %cst_98 = arith.constant 2.500000e-01 : f32
    %217 = vector.broadcast %cst_98 : f32 to vector<6x6xf32>
    %218 = arith.mulf %216, %217 : vector<6x6xf32>
    %219 = vector.broadcast %21 : vector<1x6xf32> to vector<6x6xf32>
    %220 = arith.addf %218, %219 : vector<6x6xf32>
    %cst_99 = arith.constant dense<0xFF800000> : vector<6xf32>
    %221 = vector.multi_reduction <maximumf>, %220, %cst_99 [1] : vector<6x6xf32> to vector<6xf32>
    %222 = vector.shape_cast %221 : vector<6xf32> to vector<6x1xf32>
    %223 = vector.broadcast %222 : vector<6x1xf32> to vector<6x6xf32>
    %224 = arith.subf %220, %223 : vector<6x6xf32>
    %225 = math.exp %224 : vector<6x6xf32>
    %cst_100 = arith.constant dense<0.000000e+00> : vector<6xf32>
    %226 = vector.multi_reduction <add>, %225, %cst_100 [1] : vector<6x6xf32> to vector<6xf32>
    %227 = vector.shape_cast %226 : vector<6xf32> to vector<6x1xf32>
    %228 = tpu.reciprocal %227 {approx = true} : vector<6x1xf32> -> vector<6x1xf32>
    %229 = vector.broadcast %228 : vector<6x1xf32> to vector<6x6xf32>
    %230 = arith.mulf %225, %229 : vector<6x6xf32>
    %231 = arith.truncf %230 : vector<6x6xf32> to vector<6x6xbf16>
    %cst_101 = arith.constant dense<0.000000e+00> : vector<6x16xf32>
    %232 = tpu.matmul %231, %215, %cst_101 {dimension_numbers = #tpu.dot_dimension_numbers<[1], [0], [0], [1], [0, 0, 1, 1], [], []>} : vector<6x6xbf16>, vector<6x16xbf16>, vector<6x16xf32> -> vector<6x16xf32>
    %233 = arith.truncf %232 : vector<6x16xf32> to vector<6x16xbf16>
    %234 = vector.extract_strided_slice %185 {offsets = [16, 0], sizes = [16, 32], strides = [1, 1]} : vector<32x32xbf16> to vector<16x32xbf16>
    %cst_102 = arith.constant dense<0.000000e+00> : vector<6x32xf32>
    %235 = tpu.matmul %233, %234, %cst_102 {dimension_numbers = #tpu.dot_dimension_numbers<[1], [0], [0], [1], [0, 0, 1, 1], [], []>} : vector<6x16xbf16>, vector<16x32xbf16>, vector<6x32xf32> -> vector<6x32xf32>
    %236 = arith.addf %212, %235 : vector<6x32xf32>
    %237 = arith.addf %168, %236 : vector<6x32xf32>
    %c1_103 = arith.constant 1 : index
    %c0_104 = arith.constant 0 : index
    %c0_105 = arith.constant 0 : index
    %238 = vector.load %arg11[%c1_103, %c0_104, %c0_105] : memref<4x1x32xf32, #tpu.memory_space<vmem>>, vector<1x1x32xf32>
    %239 = vector.shape_cast %238 : vector<1x1x32xf32> to vector<1x32xf32>
    %c1_106 = arith.constant 1 : index
    %c0_107 = arith.constant 0 : index
    %c0_108 = arith.constant 0 : index
    %240 = vector.load %arg12[%c1_106, %c0_107, %c0_108] : memref<4x1x32xf32, #tpu.memory_space<vmem>>, vector<1x1x32xf32>
    %241 = vector.shape_cast %240 : vector<1x1x32xf32> to vector<1x32xf32>
    %cst_109 = arith.constant dense<0.000000e+00> : vector<6xf32>
    %242 = vector.multi_reduction <add>, %237, %cst_109 [1] : vector<6x32xf32> to vector<6xf32>
    %243 = vector.shape_cast %242 : vector<6xf32> to vector<6x1xf32>
    %cst_110 = arith.constant 3.200000e+01 : f32
    %244 = vector.broadcast %cst_110 : f32 to vector<6x1xf32>
    %245 = arith.divf %243, %244 : vector<6x1xf32>
    %246 = vector.broadcast %245 : vector<6x1xf32> to vector<6x32xf32>
    %247 = arith.subf %237, %246 : vector<6x32xf32>
    %248 = arith.mulf %247, %247 : vector<6x32xf32>
    %cst_111 = arith.constant dense<0.000000e+00> : vector<6xf32>
    %249 = vector.multi_reduction <add>, %248, %cst_111 [1] : vector<6x32xf32> to vector<6xf32>
    %250 = vector.shape_cast %249 : vector<6xf32> to vector<6x1xf32>
    %cst_112 = arith.constant 3.200000e+01 : f32
    %251 = vector.broadcast %cst_112 : f32 to vector<6x1xf32>
    %252 = arith.divf %250, %251 : vector<6x1xf32>
    %cst_113 = arith.constant 9.99999974E-6 : f32
    %253 = vector.broadcast %cst_113 : f32 to vector<6x1xf32>
    %254 = arith.addf %252, %253 : vector<6x1xf32>
    %255 = math.rsqrt %254 : vector<6x1xf32>
    %256 = vector.broadcast %255 : vector<6x1xf32> to vector<6x32xf32>
    %257 = arith.mulf %247, %256 : vector<6x32xf32>
    %258 = vector.broadcast %239 : vector<1x32xf32> to vector<6x32xf32>
    %259 = arith.mulf %257, %258 : vector<6x32xf32>
    %260 = vector.broadcast %241 : vector<1x32xf32> to vector<6x32xf32>
    %261 = arith.addf %259, %260 : vector<6x32xf32>
    %262 = arith.truncf %261 : vector<6x32xf32> to vector<6x32xbf16>
    %c1_114 = arith.constant 1 : index
    %c0_115 = arith.constant 0 : index
    %c0_116 = arith.constant 0 : index
    %263 = vector.load %arg13[%c1_114, %c0_115, %c0_116] : memref<4x32x128xbf16, #tpu.memory_space<vmem>>, vector<1x32x128xbf16>
    %264 = vector.shape_cast %263 : vector<1x32x128xbf16> to vector<32x128xbf16>
    %cst_117 = arith.constant dense<0.000000e+00> : vector<6x128xf32>
    %265 = tpu.matmul %262, %264, %cst_117 {dimension_numbers = #tpu.dot_dimension_numbers<[1], [0], [0], [1], [0, 0, 1, 1], [], []>} : vector<6x32xbf16>, vector<32x128xbf16>, vector<6x128xf32> -> vector<6x128xf32>
    %c1_118 = arith.constant 1 : index
    %c0_119 = arith.constant 0 : index
    %c0_120 = arith.constant 0 : index
    %266 = vector.load %arg14[%c1_118, %c0_119, %c0_120] : memref<4x1x128xf32, #tpu.memory_space<vmem>>, vector<1x1x128xf32>
    %267 = vector.shape_cast %266 : vector<1x1x128xf32> to vector<1x128xf32>
    %268 = vector.broadcast %267 : vector<1x128xf32> to vector<6x128xf32>
    %269 = arith.addf %265, %268 : vector<6x128xf32>
    %cst_121 = arith.constant 5.000000e-01 : f32
    %270 = vector.broadcast %cst_121 : f32 to vector<6x128xf32>
    %271 = arith.mulf %270, %269 : vector<6x128xf32>
    %cst_122 = arith.constant 4.471500e-02 : f32
    %272 = vector.broadcast %cst_122 : f32 to vector<6x128xf32>
    %273 = arith.mulf %272, %269 : vector<6x128xf32>
    %274 = arith.mulf %273, %269 : vector<6x128xf32>
    %275 = arith.mulf %274, %269 : vector<6x128xf32>
    %276 = arith.addf %269, %275 : vector<6x128xf32>
    %cst_123 = arith.constant 0.797884583 : f32
    %277 = vector.broadcast %cst_123 : f32 to vector<6x128xf32>
    %278 = arith.mulf %277, %276 : vector<6x128xf32>
    %279 = math.tanh %278 : vector<6x128xf32>
    %cst_124 = arith.constant 1.000000e+00 : f32
    %280 = vector.broadcast %cst_124 : f32 to vector<6x128xf32>
    %281 = arith.addf %280, %279 : vector<6x128xf32>
    %282 = arith.mulf %271, %281 : vector<6x128xf32>
    %283 = arith.truncf %282 : vector<6x128xf32> to vector<6x128xbf16>
    %c1_125 = arith.constant 1 : index
    %c0_126 = arith.constant 0 : index
    %c0_127 = arith.constant 0 : index
    %284 = vector.load %arg15[%c1_125, %c0_126, %c0_127] : memref<4x128x32xbf16, #tpu.memory_space<vmem>>, vector<1x128x32xbf16>
    %285 = vector.shape_cast %284 : vector<1x128x32xbf16> to vector<128x32xbf16>
    %cst_128 = arith.constant dense<0.000000e+00> : vector<6x32xf32>
    %286 = tpu.matmul %283, %285, %cst_128 {dimension_numbers = #tpu.dot_dimension_numbers<[1], [0], [0], [1], [0, 0, 1, 1], [], []>} : vector<6x128xbf16>, vector<128x32xbf16>, vector<6x32xf32> -> vector<6x32xf32>
    %c1_129 = arith.constant 1 : index
    %c0_130 = arith.constant 0 : index
    %c0_131 = arith.constant 0 : index
    %287 = vector.load %arg16[%c1_129, %c0_130, %c0_131] : memref<4x1x32xf32, #tpu.memory_space<vmem>>, vector<1x1x32xf32>
    %288 = vector.shape_cast %287 : vector<1x1x32xf32> to vector<1x32xf32>
    %289 = vector.broadcast %288 : vector<1x32xf32> to vector<6x32xf32>
    %290 = arith.addf %286, %289 : vector<6x32xf32>
    %291 = arith.addf %261, %290 : vector<6x32xf32>
    %c1_132 = arith.constant 1 : index
    %c0_133 = arith.constant 0 : index
    %c0_134 = arith.constant 0 : index
    %292 = vector.load %arg17[%c1_132, %c0_133, %c0_134] : memref<4x1x32xf32, #tpu.memory_space<vmem>>, vector<1x1x32xf32>
    %293 = vector.shape_cast %292 : vector<1x1x32xf32> to vector<1x32xf32>
    %c1_135 = arith.constant 1 : index
    %c0_136 = arith.constant 0 : index
    %c0_137 = arith.constant 0 : index
    %294 = vector.load %arg18[%c1_135, %c0_136, %c0_137] : memref<4x1x32xf32, #tpu.memory_space<vmem>>, vector<1x1x32xf32>
    %295 = vector.shape_cast %294 : vector<1x1x32xf32> to vector<1x32xf32>
    %cst_138 = arith.constant dense<0.000000e+00> : vector<6xf32>
    %296 = vector.multi_reduction <add>, %291, %cst_138 [1] : vector<6x32xf32> to vector<6xf32>
    %297 = vector.shape_cast %296 : vector<6xf32> to vector<6x1xf32>
    %cst_139 = arith.constant 3.200000e+01 : f32
    %298 = vector.broadcast %cst_139 : f32 to vector<6x1xf32>
    %299 = arith.divf %297, %298 : vector<6x1xf32>
    %300 = vector.broadcast %299 : vector<6x1xf32> to vector<6x32xf32>
    %301 = arith.subf %291, %300 : vector<6x32xf32>
    %302 = arith.mulf %301, %301 : vector<6x32xf32>
    %cst_140 = arith.constant dense<0.000000e+00> : vector<6xf32>
    %303 = vector.multi_reduction <add>, %302, %cst_140 [1] : vector<6x32xf32> to vector<6xf32>
    %304 = vector.shape_cast %303 : vector<6xf32> to vector<6x1xf32>
    %cst_141 = arith.constant 3.200000e+01 : f32
    %305 = vector.broadcast %cst_141 : f32 to vector<6x1xf32>
    %306 = arith.divf %304, %305 : vector<6x1xf32>
    %cst_142 = arith.constant 9.99999974E-6 : f32
    %307 = vector.broadcast %cst_142 : f32 to vector<6x1xf32>
    %308 = arith.addf %306, %307 : vector<6x1xf32>
    %309 = math.rsqrt %308 : vector<6x1xf32>
    %310 = vector.broadcast %309 : vector<6x1xf32> to vector<6x32xf32>
    %311 = arith.mulf %301, %310 : vector<6x32xf32>
    %312 = vector.broadcast %293 : vector<1x32xf32> to vector<6x32xf32>
    %313 = arith.mulf %311, %312 : vector<6x32xf32>
    %314 = vector.broadcast %295 : vector<1x32xf32> to vector<6x32xf32>
    %315 = arith.addf %313, %314 : vector<6x32xf32>
    %316 = arith.truncf %315 : vector<6x32xf32> to vector<6x32xbf16>
    %c2 = arith.constant 2 : index
    %c0_143 = arith.constant 0 : index
    %c0_144 = arith.constant 0 : index
    %317 = vector.load %arg7[%c2, %c0_143, %c0_144] : memref<4x32x96xbf16, #tpu.memory_space<vmem>>, vector<1x32x96xbf16>
    %318 = vector.shape_cast %317 : vector<1x32x96xbf16> to vector<32x96xbf16>
    %cst_145 = arith.constant dense<0.000000e+00> : vector<6x96xf32>
    %319 = tpu.matmul %316, %318, %cst_145 {dimension_numbers = #tpu.dot_dimension_numbers<[1], [0], [0], [1], [0, 0, 1, 1], [], []>} : vector<6x32xbf16>, vector<32x96xbf16>, vector<6x96xf32> -> vector<6x96xf32>
    %c2_146 = arith.constant 2 : index
    %c0_147 = arith.constant 0 : index
    %c0_148 = arith.constant 0 : index
    %320 = vector.load %arg8[%c2_146, %c0_147, %c0_148] : memref<4x1x96xf32, #tpu.memory_space<vmem>>, vector<1x1x96xf32>
    %321 = vector.shape_cast %320 : vector<1x1x96xf32> to vector<1x96xf32>
    %322 = vector.broadcast %321 : vector<1x96xf32> to vector<6x96xf32>
    %323 = arith.addf %319, %322 : vector<6x96xf32>
    %324 = vector.extract_strided_slice %323 {offsets = [0, 0], sizes = [6, 32], strides = [1, 1]} : vector<6x96xf32> to vector<6x32xf32>
    %325 = arith.truncf %324 : vector<6x32xf32> to vector<6x32xbf16>
    %326 = vector.extract_strided_slice %323 {offsets = [0, 32], sizes = [6, 32], strides = [1, 1]} : vector<6x96xf32> to vector<6x32xf32>
    %327 = tpu.transpose %326, [1, 0] : vector<6x32xf32> -> vector<32x6xf32>
    %328 = arith.truncf %327 : vector<32x6xf32> to vector<32x6xbf16>
    %329 = vector.extract_strided_slice %323 {offsets = [0, 64], sizes = [6, 32], strides = [1, 1]} : vector<6x96xf32> to vector<6x32xf32>
    %330 = arith.truncf %329 : vector<6x32xf32> to vector<6x32xbf16>
    %c2_149 = arith.constant 2 : index
    %c0_150 = arith.constant 0 : index
    %c0_151 = arith.constant 0 : index
    %331 = vector.load %arg9[%c2_149, %c0_150, %c0_151] : memref<4x32x32xbf16, #tpu.memory_space<vmem>>, vector<1x32x32xbf16>
    %332 = vector.shape_cast %331 : vector<1x32x32xbf16> to vector<32x32xbf16>
    %c2_152 = arith.constant 2 : index
    %c0_153 = arith.constant 0 : index
    %c0_154 = arith.constant 0 : index
    %333 = vector.load %arg10[%c2_152, %c0_153, %c0_154] : memref<4x1x32xf32, #tpu.memory_space<vmem>>, vector<1x1x32xf32>
    %334 = vector.shape_cast %333 : vector<1x1x32xf32> to vector<1x32xf32>
    %335 = vector.extract_strided_slice %325 {offsets = [0, 0], sizes = [6, 16], strides = [1, 1]} : vector<6x32xbf16> to vector<6x16xbf16>
    %336 = vector.extract_strided_slice %328 {offsets = [0, 0], sizes = [16, 6], strides = [1, 1]} : vector<32x6xbf16> to vector<16x6xbf16>
    %337 = vector.extract_strided_slice %330 {offsets = [0, 0], sizes = [6, 16], strides = [1, 1]} : vector<6x32xbf16> to vector<6x16xbf16>
    %cst_155 = arith.constant dense<0.000000e+00> : vector<6x6xf32>
    %338 = tpu.matmul %335, %336, %cst_155 {dimension_numbers = #tpu.dot_dimension_numbers<[1], [0], [0], [1], [0, 0, 1, 1], [], []>} : vector<6x16xbf16>, vector<16x6xbf16>, vector<6x6xf32> -> vector<6x6xf32>
    %cst_156 = arith.constant 2.500000e-01 : f32
    %339 = vector.broadcast %cst_156 : f32 to vector<6x6xf32>
    %340 = arith.mulf %338, %339 : vector<6x6xf32>
    %341 = vector.broadcast %21 : vector<1x6xf32> to vector<6x6xf32>
    %342 = arith.addf %340, %341 : vector<6x6xf32>
    %cst_157 = arith.constant dense<0xFF800000> : vector<6xf32>
    %343 = vector.multi_reduction <maximumf>, %342, %cst_157 [1] : vector<6x6xf32> to vector<6xf32>
    %344 = vector.shape_cast %343 : vector<6xf32> to vector<6x1xf32>
    %345 = vector.broadcast %344 : vector<6x1xf32> to vector<6x6xf32>
    %346 = arith.subf %342, %345 : vector<6x6xf32>
    %347 = math.exp %346 : vector<6x6xf32>
    %cst_158 = arith.constant dense<0.000000e+00> : vector<6xf32>
    %348 = vector.multi_reduction <add>, %347, %cst_158 [1] : vector<6x6xf32> to vector<6xf32>
    %349 = vector.shape_cast %348 : vector<6xf32> to vector<6x1xf32>
    %350 = tpu.reciprocal %349 {approx = true} : vector<6x1xf32> -> vector<6x1xf32>
    %351 = vector.broadcast %350 : vector<6x1xf32> to vector<6x6xf32>
    %352 = arith.mulf %347, %351 : vector<6x6xf32>
    %353 = arith.truncf %352 : vector<6x6xf32> to vector<6x6xbf16>
    %cst_159 = arith.constant dense<0.000000e+00> : vector<6x16xf32>
    %354 = tpu.matmul %353, %337, %cst_159 {dimension_numbers = #tpu.dot_dimension_numbers<[1], [0], [0], [1], [0, 0, 1, 1], [], []>} : vector<6x6xbf16>, vector<6x16xbf16>, vector<6x16xf32> -> vector<6x16xf32>
    %355 = arith.truncf %354 : vector<6x16xf32> to vector<6x16xbf16>
    %356 = vector.extract_strided_slice %332 {offsets = [0, 0], sizes = [16, 32], strides = [1, 1]} : vector<32x32xbf16> to vector<16x32xbf16>
    %cst_160 = arith.constant dense<0.000000e+00> : vector<6x32xf32>
    %357 = tpu.matmul %355, %356, %cst_160 {dimension_numbers = #tpu.dot_dimension_numbers<[1], [0], [0], [1], [0, 0, 1, 1], [], []>} : vector<6x16xbf16>, vector<16x32xbf16>, vector<6x32xf32> -> vector<6x32xf32>
    %358 = vector.broadcast %334 : vector<1x32xf32> to vector<6x32xf32>
    %359 = arith.addf %358, %357 : vector<6x32xf32>
    %360 = vector.extract_strided_slice %325 {offsets = [0, 16], sizes = [6, 16], strides = [1, 1]} : vector<6x32xbf16> to vector<6x16xbf16>
    %361 = vector.extract_strided_slice %328 {offsets = [16, 0], sizes = [16, 6], strides = [1, 1]} : vector<32x6xbf16> to vector<16x6xbf16>
    %362 = vector.extract_strided_slice %330 {offsets = [0, 16], sizes = [6, 16], strides = [1, 1]} : vector<6x32xbf16> to vector<6x16xbf16>
    %cst_161 = arith.constant dense<0.000000e+00> : vector<6x6xf32>
    %363 = tpu.matmul %360, %361, %cst_161 {dimension_numbers = #tpu.dot_dimension_numbers<[1], [0], [0], [1], [0, 0, 1, 1], [], []>} : vector<6x16xbf16>, vector<16x6xbf16>, vector<6x6xf32> -> vector<6x6xf32>
    %cst_162 = arith.constant 2.500000e-01 : f32
    %364 = vector.broadcast %cst_162 : f32 to vector<6x6xf32>
    %365 = arith.mulf %363, %364 : vector<6x6xf32>
    %366 = vector.broadcast %21 : vector<1x6xf32> to vector<6x6xf32>
    %367 = arith.addf %365, %366 : vector<6x6xf32>
    %cst_163 = arith.constant dense<0xFF800000> : vector<6xf32>
    %368 = vector.multi_reduction <maximumf>, %367, %cst_163 [1] : vector<6x6xf32> to vector<6xf32>
    %369 = vector.shape_cast %368 : vector<6xf32> to vector<6x1xf32>
    %370 = vector.broadcast %369 : vector<6x1xf32> to vector<6x6xf32>
    %371 = arith.subf %367, %370 : vector<6x6xf32>
    %372 = math.exp %371 : vector<6x6xf32>
    %cst_164 = arith.constant dense<0.000000e+00> : vector<6xf32>
    %373 = vector.multi_reduction <add>, %372, %cst_164 [1] : vector<6x6xf32> to vector<6xf32>
    %374 = vector.shape_cast %373 : vector<6xf32> to vector<6x1xf32>
    %375 = tpu.reciprocal %374 {approx = true} : vector<6x1xf32> -> vector<6x1xf32>
    %376 = vector.broadcast %375 : vector<6x1xf32> to vector<6x6xf32>
    %377 = arith.mulf %372, %376 : vector<6x6xf32>
    %378 = arith.truncf %377 : vector<6x6xf32> to vector<6x6xbf16>
    %cst_165 = arith.constant dense<0.000000e+00> : vector<6x16xf32>
    %379 = tpu.matmul %378, %362, %cst_165 {dimension_numbers = #tpu.dot_dimension_numbers<[1], [0], [0], [1], [0, 0, 1, 1], [], []>} : vector<6x6xbf16>, vector<6x16xbf16>, vector<6x16xf32> -> vector<6x16xf32>
    %380 = arith.truncf %379 : vector<6x16xf32> to vector<6x16xbf16>
    %381 = vector.extract_strided_slice %332 {offsets = [16, 0], sizes = [16, 32], strides = [1, 1]} : vector<32x32xbf16> to vector<16x32xbf16>
    %cst_166 = arith.constant dense<0.000000e+00> : vector<6x32xf32>
    %382 = tpu.matmul %380, %381, %cst_166 {dimension_numbers = #tpu.dot_dimension_numbers<[1], [0], [0], [1], [0, 0, 1, 1], [], []>} : vector<6x16xbf16>, vector<16x32xbf16>, vector<6x32xf32> -> vector<6x32xf32>
    %383 = arith.addf %359, %382 : vector<6x32xf32>
    %384 = arith.addf %315, %383 : vector<6x32xf32>
    %c2_167 = arith.constant 2 : index
    %c0_168 = arith.constant 0 : index
    %c0_169 = arith.constant 0 : index
    %385 = vector.load %arg11[%c2_167, %c0_168, %c0_169] : memref<4x1x32xf32, #tpu.memory_space<vmem>>, vector<1x1x32xf32>
    %386 = vector.shape_cast %385 : vector<1x1x32xf32> to vector<1x32xf32>
    %c2_170 = arith.constant 2 : index
    %c0_171 = arith.constant 0 : index
    %c0_172 = arith.constant 0 : index
    %387 = vector.load %arg12[%c2_170, %c0_171, %c0_172] : memref<4x1x32xf32, #tpu.memory_space<vmem>>, vector<1x1x32xf32>
    %388 = vector.shape_cast %387 : vector<1x1x32xf32> to vector<1x32xf32>
    %cst_173 = arith.constant dense<0.000000e+00> : vector<6xf32>
    %389 = vector.multi_reduction <add>, %384, %cst_173 [1] : vector<6x32xf32> to vector<6xf32>
    %390 = vector.shape_cast %389 : vector<6xf32> to vector<6x1xf32>
    %cst_174 = arith.constant 3.200000e+01 : f32
    %391 = vector.broadcast %cst_174 : f32 to vector<6x1xf32>
    %392 = arith.divf %390, %391 : vector<6x1xf32>
    %393 = vector.broadcast %392 : vector<6x1xf32> to vector<6x32xf32>
    %394 = arith.subf %384, %393 : vector<6x32xf32>
    %395 = arith.mulf %394, %394 : vector<6x32xf32>
    %cst_175 = arith.constant dense<0.000000e+00> : vector<6xf32>
    %396 = vector.multi_reduction <add>, %395, %cst_175 [1] : vector<6x32xf32> to vector<6xf32>
    %397 = vector.shape_cast %396 : vector<6xf32> to vector<6x1xf32>
    %cst_176 = arith.constant 3.200000e+01 : f32
    %398 = vector.broadcast %cst_176 : f32 to vector<6x1xf32>
    %399 = arith.divf %397, %398 : vector<6x1xf32>
    %cst_177 = arith.constant 9.99999974E-6 : f32
    %400 = vector.broadcast %cst_177 : f32 to vector<6x1xf32>
    %401 = arith.addf %399, %400 : vector<6x1xf32>
    %402 = math.rsqrt %401 : vector<6x1xf32>
    %403 = vector.broadcast %402 : vector<6x1xf32> to vector<6x32xf32>
    %404 = arith.mulf %394, %403 : vector<6x32xf32>
    %405 = vector.broadcast %386 : vector<1x32xf32> to vector<6x32xf32>
    %406 = arith.mulf %404, %405 : vector<6x32xf32>
    %407 = vector.broadcast %388 : vector<1x32xf32> to vector<6x32xf32>
    %408 = arith.addf %406, %407 : vector<6x32xf32>
    %409 = arith.truncf %408 : vector<6x32xf32> to vector<6x32xbf16>
    %c2_178 = arith.constant 2 : index
    %c0_179 = arith.constant 0 : index
    %c0_180 = arith.constant 0 : index
    %410 = vector.load %arg13[%c2_178, %c0_179, %c0_180] : memref<4x32x128xbf16, #tpu.memory_space<vmem>>, vector<1x32x128xbf16>
    %411 = vector.shape_cast %410 : vector<1x32x128xbf16> to vector<32x128xbf16>
    %cst_181 = arith.constant dense<0.000000e+00> : vector<6x128xf32>
    %412 = tpu.matmul %409, %411, %cst_181 {dimension_numbers = #tpu.dot_dimension_numbers<[1], [0], [0], [1], [0, 0, 1, 1], [], []>} : vector<6x32xbf16>, vector<32x128xbf16>, vector<6x128xf32> -> vector<6x128xf32>
    %c2_182 = arith.constant 2 : index
    %c0_183 = arith.constant 0 : index
    %c0_184 = arith.constant 0 : index
    %413 = vector.load %arg14[%c2_182, %c0_183, %c0_184] : memref<4x1x128xf32, #tpu.memory_space<vmem>>, vector<1x1x128xf32>
    %414 = vector.shape_cast %413 : vector<1x1x128xf32> to vector<1x128xf32>
    %415 = vector.broadcast %414 : vector<1x128xf32> to vector<6x128xf32>
    %416 = arith.addf %412, %415 : vector<6x128xf32>
    %cst_185 = arith.constant 5.000000e-01 : f32
    %417 = vector.broadcast %cst_185 : f32 to vector<6x128xf32>
    %418 = arith.mulf %417, %416 : vector<6x128xf32>
    %cst_186 = arith.constant 4.471500e-02 : f32
    %419 = vector.broadcast %cst_186 : f32 to vector<6x128xf32>
    %420 = arith.mulf %419, %416 : vector<6x128xf32>
    %421 = arith.mulf %420, %416 : vector<6x128xf32>
    %422 = arith.mulf %421, %416 : vector<6x128xf32>
    %423 = arith.addf %416, %422 : vector<6x128xf32>
    %cst_187 = arith.constant 0.797884583 : f32
    %424 = vector.broadcast %cst_187 : f32 to vector<6x128xf32>
    %425 = arith.mulf %424, %423 : vector<6x128xf32>
    %426 = math.tanh %425 : vector<6x128xf32>
    %cst_188 = arith.constant 1.000000e+00 : f32
    %427 = vector.broadcast %cst_188 : f32 to vector<6x128xf32>
    %428 = arith.addf %427, %426 : vector<6x128xf32>
    %429 = arith.mulf %418, %428 : vector<6x128xf32>
    %430 = arith.truncf %429 : vector<6x128xf32> to vector<6x128xbf16>
    %c2_189 = arith.constant 2 : index
    %c0_190 = arith.constant 0 : index
    %c0_191 = arith.constant 0 : index
    %431 = vector.load %arg15[%c2_189, %c0_190, %c0_191] : memref<4x128x32xbf16, #tpu.memory_space<vmem>>, vector<1x128x32xbf16>
    %432 = vector.shape_cast %431 : vector<1x128x32xbf16> to vector<128x32xbf16>
    %cst_192 = arith.constant dense<0.000000e+00> : vector<6x32xf32>
    %433 = tpu.matmul %430, %432, %cst_192 {dimension_numbers = #tpu.dot_dimension_numbers<[1], [0], [0], [1], [0, 0, 1, 1], [], []>} : vector<6x128xbf16>, vector<128x32xbf16>, vector<6x32xf32> -> vector<6x32xf32>
    %c2_193 = arith.constant 2 : index
    %c0_194 = arith.constant 0 : index
    %c0_195 = arith.constant 0 : index
    %434 = vector.load %arg16[%c2_193, %c0_194, %c0_195] : memref<4x1x32xf32, #tpu.memory_space<vmem>>, vector<1x1x32xf32>
    %435 = vector.shape_cast %434 : vector<1x1x32xf32> to vector<1x32xf32>
    %436 = vector.broadcast %435 : vector<1x32xf32> to vector<6x32xf32>
    %437 = arith.addf %433, %436 : vector<6x32xf32>
    %438 = arith.addf %408, %437 : vector<6x32xf32>
    %c2_196 = arith.constant 2 : index
    %c0_197 = arith.constant 0 : index
    %c0_198 = arith.constant 0 : index
    %439 = vector.load %arg17[%c2_196, %c0_197, %c0_198] : memref<4x1x32xf32, #tpu.memory_space<vmem>>, vector<1x1x32xf32>
    %440 = vector.shape_cast %439 : vector<1x1x32xf32> to vector<1x32xf32>
    %c2_199 = arith.constant 2 : index
    %c0_200 = arith.constant 0 : index
    %c0_201 = arith.constant 0 : index
    %441 = vector.load %arg18[%c2_199, %c0_200, %c0_201] : memref<4x1x32xf32, #tpu.memory_space<vmem>>, vector<1x1x32xf32>
    %442 = vector.shape_cast %441 : vector<1x1x32xf32> to vector<1x32xf32>
    %cst_202 = arith.constant dense<0.000000e+00> : vector<6xf32>
    %443 = vector.multi_reduction <add>, %438, %cst_202 [1] : vector<6x32xf32> to vector<6xf32>
    %444 = vector.shape_cast %443 : vector<6xf32> to vector<6x1xf32>
    %cst_203 = arith.constant 3.200000e+01 : f32
    %445 = vector.broadcast %cst_203 : f32 to vector<6x1xf32>
    %446 = arith.divf %444, %445 : vector<6x1xf32>
    %447 = vector.broadcast %446 : vector<6x1xf32> to vector<6x32xf32>
    %448 = arith.subf %438, %447 : vector<6x32xf32>
    %449 = arith.mulf %448, %448 : vector<6x32xf32>
    %cst_204 = arith.constant dense<0.000000e+00> : vector<6xf32>
    %450 = vector.multi_reduction <add>, %449, %cst_204 [1] : vector<6x32xf32> to vector<6xf32>
    %451 = vector.shape_cast %450 : vector<6xf32> to vector<6x1xf32>
    %cst_205 = arith.constant 3.200000e+01 : f32
    %452 = vector.broadcast %cst_205 : f32 to vector<6x1xf32>
    %453 = arith.divf %451, %452 : vector<6x1xf32>
    %cst_206 = arith.constant 9.99999974E-6 : f32
    %454 = vector.broadcast %cst_206 : f32 to vector<6x1xf32>
    %455 = arith.addf %453, %454 : vector<6x1xf32>
    %456 = math.rsqrt %455 : vector<6x1xf32>
    %457 = vector.broadcast %456 : vector<6x1xf32> to vector<6x32xf32>
    %458 = arith.mulf %448, %457 : vector<6x32xf32>
    %459 = vector.broadcast %440 : vector<1x32xf32> to vector<6x32xf32>
    %460 = arith.mulf %458, %459 : vector<6x32xf32>
    %461 = vector.broadcast %442 : vector<1x32xf32> to vector<6x32xf32>
    %462 = arith.addf %460, %461 : vector<6x32xf32>
    %463 = arith.truncf %462 : vector<6x32xf32> to vector<6x32xbf16>
    %c3 = arith.constant 3 : index
    %c0_207 = arith.constant 0 : index
    %c0_208 = arith.constant 0 : index
    %464 = vector.load %arg7[%c3, %c0_207, %c0_208] : memref<4x32x96xbf16, #tpu.memory_space<vmem>>, vector<1x32x96xbf16>
    %465 = vector.shape_cast %464 : vector<1x32x96xbf16> to vector<32x96xbf16>
    %cst_209 = arith.constant dense<0.000000e+00> : vector<6x96xf32>
    %466 = tpu.matmul %463, %465, %cst_209 {dimension_numbers = #tpu.dot_dimension_numbers<[1], [0], [0], [1], [0, 0, 1, 1], [], []>} : vector<6x32xbf16>, vector<32x96xbf16>, vector<6x96xf32> -> vector<6x96xf32>
    %c3_210 = arith.constant 3 : index
    %c0_211 = arith.constant 0 : index
    %c0_212 = arith.constant 0 : index
    %467 = vector.load %arg8[%c3_210, %c0_211, %c0_212] : memref<4x1x96xf32, #tpu.memory_space<vmem>>, vector<1x1x96xf32>
    %468 = vector.shape_cast %467 : vector<1x1x96xf32> to vector<1x96xf32>
    %469 = vector.broadcast %468 : vector<1x96xf32> to vector<6x96xf32>
    %470 = arith.addf %466, %469 : vector<6x96xf32>
    %471 = vector.extract_strided_slice %470 {offsets = [0, 0], sizes = [6, 32], strides = [1, 1]} : vector<6x96xf32> to vector<6x32xf32>
    %472 = arith.truncf %471 : vector<6x32xf32> to vector<6x32xbf16>
    %473 = vector.extract_strided_slice %470 {offsets = [0, 32], sizes = [6, 32], strides = [1, 1]} : vector<6x96xf32> to vector<6x32xf32>
    %474 = tpu.transpose %473, [1, 0] : vector<6x32xf32> -> vector<32x6xf32>
    %475 = arith.truncf %474 : vector<32x6xf32> to vector<32x6xbf16>
    %476 = vector.extract_strided_slice %470 {offsets = [0, 64], sizes = [6, 32], strides = [1, 1]} : vector<6x96xf32> to vector<6x32xf32>
    %477 = arith.truncf %476 : vector<6x32xf32> to vector<6x32xbf16>
    %c3_213 = arith.constant 3 : index
    %c0_214 = arith.constant 0 : index
    %c0_215 = arith.constant 0 : index
    %478 = vector.load %arg9[%c3_213, %c0_214, %c0_215] : memref<4x32x32xbf16, #tpu.memory_space<vmem>>, vector<1x32x32xbf16>
    %479 = vector.shape_cast %478 : vector<1x32x32xbf16> to vector<32x32xbf16>
    %c3_216 = arith.constant 3 : index
    %c0_217 = arith.constant 0 : index
    %c0_218 = arith.constant 0 : index
    %480 = vector.load %arg10[%c3_216, %c0_217, %c0_218] : memref<4x1x32xf32, #tpu.memory_space<vmem>>, vector<1x1x32xf32>
    %481 = vector.shape_cast %480 : vector<1x1x32xf32> to vector<1x32xf32>
    %482 = vector.extract_strided_slice %472 {offsets = [0, 0], sizes = [6, 16], strides = [1, 1]} : vector<6x32xbf16> to vector<6x16xbf16>
    %483 = vector.extract_strided_slice %475 {offsets = [0, 0], sizes = [16, 6], strides = [1, 1]} : vector<32x6xbf16> to vector<16x6xbf16>
    %484 = vector.extract_strided_slice %477 {offsets = [0, 0], sizes = [6, 16], strides = [1, 1]} : vector<6x32xbf16> to vector<6x16xbf16>
    %cst_219 = arith.constant dense<0.000000e+00> : vector<6x6xf32>
    %485 = tpu.matmul %482, %483, %cst_219 {dimension_numbers = #tpu.dot_dimension_numbers<[1], [0], [0], [1], [0, 0, 1, 1], [], []>} : vector<6x16xbf16>, vector<16x6xbf16>, vector<6x6xf32> -> vector<6x6xf32>
    %cst_220 = arith.constant 2.500000e-01 : f32
    %486 = vector.broadcast %cst_220 : f32 to vector<6x6xf32>
    %487 = arith.mulf %485, %486 : vector<6x6xf32>
    %488 = vector.broadcast %21 : vector<1x6xf32> to vector<6x6xf32>
    %489 = arith.addf %487, %488 : vector<6x6xf32>
    %cst_221 = arith.constant dense<0xFF800000> : vector<6xf32>
    %490 = vector.multi_reduction <maximumf>, %489, %cst_221 [1] : vector<6x6xf32> to vector<6xf32>
    %491 = vector.shape_cast %490 : vector<6xf32> to vector<6x1xf32>
    %492 = vector.broadcast %491 : vector<6x1xf32> to vector<6x6xf32>
    %493 = arith.subf %489, %492 : vector<6x6xf32>
    %494 = math.exp %493 : vector<6x6xf32>
    %cst_222 = arith.constant dense<0.000000e+00> : vector<6xf32>
    %495 = vector.multi_reduction <add>, %494, %cst_222 [1] : vector<6x6xf32> to vector<6xf32>
    %496 = vector.shape_cast %495 : vector<6xf32> to vector<6x1xf32>
    %497 = tpu.reciprocal %496 {approx = true} : vector<6x1xf32> -> vector<6x1xf32>
    %498 = vector.broadcast %497 : vector<6x1xf32> to vector<6x6xf32>
    %499 = arith.mulf %494, %498 : vector<6x6xf32>
    %500 = arith.truncf %499 : vector<6x6xf32> to vector<6x6xbf16>
    %cst_223 = arith.constant dense<0.000000e+00> : vector<6x16xf32>
    %501 = tpu.matmul %500, %484, %cst_223 {dimension_numbers = #tpu.dot_dimension_numbers<[1], [0], [0], [1], [0, 0, 1, 1], [], []>} : vector<6x6xbf16>, vector<6x16xbf16>, vector<6x16xf32> -> vector<6x16xf32>
    %502 = arith.truncf %501 : vector<6x16xf32> to vector<6x16xbf16>
    %503 = vector.extract_strided_slice %479 {offsets = [0, 0], sizes = [16, 32], strides = [1, 1]} : vector<32x32xbf16> to vector<16x32xbf16>
    %cst_224 = arith.constant dense<0.000000e+00> : vector<6x32xf32>
    %504 = tpu.matmul %502, %503, %cst_224 {dimension_numbers = #tpu.dot_dimension_numbers<[1], [0], [0], [1], [0, 0, 1, 1], [], []>} : vector<6x16xbf16>, vector<16x32xbf16>, vector<6x32xf32> -> vector<6x32xf32>
    %505 = vector.broadcast %481 : vector<1x32xf32> to vector<6x32xf32>
    %506 = arith.addf %505, %504 : vector<6x32xf32>
    %507 = vector.extract_strided_slice %472 {offsets = [0, 16], sizes = [6, 16], strides = [1, 1]} : vector<6x32xbf16> to vector<6x16xbf16>
    %508 = vector.extract_strided_slice %475 {offsets = [16, 0], sizes = [16, 6], strides = [1, 1]} : vector<32x6xbf16> to vector<16x6xbf16>
    %509 = vector.extract_strided_slice %477 {offsets = [0, 16], sizes = [6, 16], strides = [1, 1]} : vector<6x32xbf16> to vector<6x16xbf16>
    %cst_225 = arith.constant dense<0.000000e+00> : vector<6x6xf32>
    %510 = tpu.matmul %507, %508, %cst_225 {dimension_numbers = #tpu.dot_dimension_numbers<[1], [0], [0], [1], [0, 0, 1, 1], [], []>} : vector<6x16xbf16>, vector<16x6xbf16>, vector<6x6xf32> -> vector<6x6xf32>
    %cst_226 = arith.constant 2.500000e-01 : f32
    %511 = vector.broadcast %cst_226 : f32 to vector<6x6xf32>
    %512 = arith.mulf %510, %511 : vector<6x6xf32>
    %513 = vector.broadcast %21 : vector<1x6xf32> to vector<6x6xf32>
    %514 = arith.addf %512, %513 : vector<6x6xf32>
    %cst_227 = arith.constant dense<0xFF800000> : vector<6xf32>
    %515 = vector.multi_reduction <maximumf>, %514, %cst_227 [1] : vector<6x6xf32> to vector<6xf32>
    %516 = vector.shape_cast %515 : vector<6xf32> to vector<6x1xf32>
    %517 = vector.broadcast %516 : vector<6x1xf32> to vector<6x6xf32>
    %518 = arith.subf %514, %517 : vector<6x6xf32>
    %519 = math.exp %518 : vector<6x6xf32>
    %cst_228 = arith.constant dense<0.000000e+00> : vector<6xf32>
    %520 = vector.multi_reduction <add>, %519, %cst_228 [1] : vector<6x6xf32> to vector<6xf32>
    %521 = vector.shape_cast %520 : vector<6xf32> to vector<6x1xf32>
    %522 = tpu.reciprocal %521 {approx = true} : vector<6x1xf32> -> vector<6x1xf32>
    %523 = vector.broadcast %522 : vector<6x1xf32> to vector<6x6xf32>
    %524 = arith.mulf %519, %523 : vector<6x6xf32>
    %525 = arith.truncf %524 : vector<6x6xf32> to vector<6x6xbf16>
    %cst_229 = arith.constant dense<0.000000e+00> : vector<6x16xf32>
    %526 = tpu.matmul %525, %509, %cst_229 {dimension_numbers = #tpu.dot_dimension_numbers<[1], [0], [0], [1], [0, 0, 1, 1], [], []>} : vector<6x6xbf16>, vector<6x16xbf16>, vector<6x16xf32> -> vector<6x16xf32>
    %527 = arith.truncf %526 : vector<6x16xf32> to vector<6x16xbf16>
    %528 = vector.extract_strided_slice %479 {offsets = [16, 0], sizes = [16, 32], strides = [1, 1]} : vector<32x32xbf16> to vector<16x32xbf16>
    %cst_230 = arith.constant dense<0.000000e+00> : vector<6x32xf32>
    %529 = tpu.matmul %527, %528, %cst_230 {dimension_numbers = #tpu.dot_dimension_numbers<[1], [0], [0], [1], [0, 0, 1, 1], [], []>} : vector<6x16xbf16>, vector<16x32xbf16>, vector<6x32xf32> -> vector<6x32xf32>
    %530 = arith.addf %506, %529 : vector<6x32xf32>
    %531 = arith.addf %462, %530 : vector<6x32xf32>
    %c3_231 = arith.constant 3 : index
    %c0_232 = arith.constant 0 : index
    %c0_233 = arith.constant 0 : index
    %532 = vector.load %arg11[%c3_231, %c0_232, %c0_233] : memref<4x1x32xf32, #tpu.memory_space<vmem>>, vector<1x1x32xf32>
    %533 = vector.shape_cast %532 : vector<1x1x32xf32> to vector<1x32xf32>
    %c3_234 = arith.constant 3 : index
    %c0_235 = arith.constant 0 : index
    %c0_236 = arith.constant 0 : index
    %534 = vector.load %arg12[%c3_234, %c0_235, %c0_236] : memref<4x1x32xf32, #tpu.memory_space<vmem>>, vector<1x1x32xf32>
    %535 = vector.shape_cast %534 : vector<1x1x32xf32> to vector<1x32xf32>
    %cst_237 = arith.constant dense<0.000000e+00> : vector<6xf32>
    %536 = vector.multi_reduction <add>, %531, %cst_237 [1] : vector<6x32xf32> to vector<6xf32>
    %537 = vector.shape_cast %536 : vector<6xf32> to vector<6x1xf32>
    %cst_238 = arith.constant 3.200000e+01 : f32
    %538 = vector.broadcast %cst_238 : f32 to vector<6x1xf32>
    %539 = arith.divf %537, %538 : vector<6x1xf32>
    %540 = vector.broadcast %539 : vector<6x1xf32> to vector<6x32xf32>
    %541 = arith.subf %531, %540 : vector<6x32xf32>
    %542 = arith.mulf %541, %541 : vector<6x32xf32>
    %cst_239 = arith.constant dense<0.000000e+00> : vector<6xf32>
    %543 = vector.multi_reduction <add>, %542, %cst_239 [1] : vector<6x32xf32> to vector<6xf32>
    %544 = vector.shape_cast %543 : vector<6xf32> to vector<6x1xf32>
    %cst_240 = arith.constant 3.200000e+01 : f32
    %545 = vector.broadcast %cst_240 : f32 to vector<6x1xf32>
    %546 = arith.divf %544, %545 : vector<6x1xf32>
    %cst_241 = arith.constant 9.99999974E-6 : f32
    %547 = vector.broadcast %cst_241 : f32 to vector<6x1xf32>
    %548 = arith.addf %546, %547 : vector<6x1xf32>
    %549 = math.rsqrt %548 : vector<6x1xf32>
    %550 = vector.broadcast %549 : vector<6x1xf32> to vector<6x32xf32>
    %551 = arith.mulf %541, %550 : vector<6x32xf32>
    %552 = vector.broadcast %533 : vector<1x32xf32> to vector<6x32xf32>
    %553 = arith.mulf %551, %552 : vector<6x32xf32>
    %554 = vector.broadcast %535 : vector<1x32xf32> to vector<6x32xf32>
    %555 = arith.addf %553, %554 : vector<6x32xf32>
    %556 = arith.truncf %555 : vector<6x32xf32> to vector<6x32xbf16>
    %c3_242 = arith.constant 3 : index
    %c0_243 = arith.constant 0 : index
    %c0_244 = arith.constant 0 : index
    %557 = vector.load %arg13[%c3_242, %c0_243, %c0_244] : memref<4x32x128xbf16, #tpu.memory_space<vmem>>, vector<1x32x128xbf16>
    %558 = vector.shape_cast %557 : vector<1x32x128xbf16> to vector<32x128xbf16>
    %cst_245 = arith.constant dense<0.000000e+00> : vector<6x128xf32>
    %559 = tpu.matmul %556, %558, %cst_245 {dimension_numbers = #tpu.dot_dimension_numbers<[1], [0], [0], [1], [0, 0, 1, 1], [], []>} : vector<6x32xbf16>, vector<32x128xbf16>, vector<6x128xf32> -> vector<6x128xf32>
    %c3_246 = arith.constant 3 : index
    %c0_247 = arith.constant 0 : index
    %c0_248 = arith.constant 0 : index
    %560 = vector.load %arg14[%c3_246, %c0_247, %c0_248] : memref<4x1x128xf32, #tpu.memory_space<vmem>>, vector<1x1x128xf32>
    %561 = vector.shape_cast %560 : vector<1x1x128xf32> to vector<1x128xf32>
    %562 = vector.broadcast %561 : vector<1x128xf32> to vector<6x128xf32>
    %563 = arith.addf %559, %562 : vector<6x128xf32>
    %cst_249 = arith.constant 5.000000e-01 : f32
    %564 = vector.broadcast %cst_249 : f32 to vector<6x128xf32>
    %565 = arith.mulf %564, %563 : vector<6x128xf32>
    %cst_250 = arith.constant 4.471500e-02 : f32
    %566 = vector.broadcast %cst_250 : f32 to vector<6x128xf32>
    %567 = arith.mulf %566, %563 : vector<6x128xf32>
    %568 = arith.mulf %567, %563 : vector<6x128xf32>
    %569 = arith.mulf %568, %563 : vector<6x128xf32>
    %570 = arith.addf %563, %569 : vector<6x128xf32>
    %cst_251 = arith.constant 0.797884583 : f32
    %571 = vector.broadcast %cst_251 : f32 to vector<6x128xf32>
    %572 = arith.mulf %571, %570 : vector<6x128xf32>
    %573 = math.tanh %572 : vector<6x128xf32>
    %cst_252 = arith.constant 1.000000e+00 : f32
    %574 = vector.broadcast %cst_252 : f32 to vector<6x128xf32>
    %575 = arith.addf %574, %573 : vector<6x128xf32>
    %576 = arith.mulf %565, %575 : vector<6x128xf32>
    %577 = arith.truncf %576 : vector<6x128xf32> to vector<6x128xbf16>
    %c3_253 = arith.constant 3 : index
    %c0_254 = arith.constant 0 : index
    %c0_255 = arith.constant 0 : index
    %578 = vector.load %arg15[%c3_253, %c0_254, %c0_255] : memref<4x128x32xbf16, #tpu.memory_space<vmem>>, vector<1x128x32xbf16>
    %579 = vector.shape_cast %578 : vector<1x128x32xbf16> to vector<128x32xbf16>
    %cst_256 = arith.constant dense<0.000000e+00> : vector<6x32xf32>
    %580 = tpu.matmul %577, %579, %cst_256 {dimension_numbers = #tpu.dot_dimension_numbers<[1], [0], [0], [1], [0, 0, 1, 1], [], []>} : vector<6x128xbf16>, vector<128x32xbf16>, vector<6x32xf32> -> vector<6x32xf32>
    %c3_257 = arith.constant 3 : index
    %c0_258 = arith.constant 0 : index
    %c0_259 = arith.constant 0 : index
    %581 = vector.load %arg16[%c3_257, %c0_258, %c0_259] : memref<4x1x32xf32, #tpu.memory_space<vmem>>, vector<1x1x32xf32>
    %582 = vector.shape_cast %581 : vector<1x1x32xf32> to vector<1x32xf32>
    %583 = vector.broadcast %582 : vector<1x32xf32> to vector<6x32xf32>
    %584 = arith.addf %580, %583 : vector<6x32xf32>
    %585 = arith.addf %555, %584 : vector<6x32xf32>
    %c3_260 = arith.constant 3 : index
    %c0_261 = arith.constant 0 : index
    %c0_262 = arith.constant 0 : index
    %586 = vector.load %arg17[%c3_260, %c0_261, %c0_262] : memref<4x1x32xf32, #tpu.memory_space<vmem>>, vector<1x1x32xf32>
    %587 = vector.shape_cast %586 : vector<1x1x32xf32> to vector<1x32xf32>
    %c3_263 = arith.constant 3 : index
    %c0_264 = arith.constant 0 : index
    %c0_265 = arith.constant 0 : index
    %588 = vector.load %arg18[%c3_263, %c0_264, %c0_265] : memref<4x1x32xf32, #tpu.memory_space<vmem>>, vector<1x1x32xf32>
    %589 = vector.shape_cast %588 : vector<1x1x32xf32> to vector<1x32xf32>
    %cst_266 = arith.constant dense<0.000000e+00> : vector<6xf32>
    %590 = vector.multi_reduction <add>, %585, %cst_266 [1] : vector<6x32xf32> to vector<6xf32>
    %591 = vector.shape_cast %590 : vector<6xf32> to vector<6x1xf32>
    %cst_267 = arith.constant 3.200000e+01 : f32
    %592 = vector.broadcast %cst_267 : f32 to vector<6x1xf32>
    %593 = arith.divf %591, %592 : vector<6x1xf32>
    %594 = vector.broadcast %593 : vector<6x1xf32> to vector<6x32xf32>
    %595 = arith.subf %585, %594 : vector<6x32xf32>
    %596 = arith.mulf %595, %595 : vector<6x32xf32>
    %cst_268 = arith.constant dense<0.000000e+00> : vector<6xf32>
    %597 = vector.multi_reduction <add>, %596, %cst_268 [1] : vector<6x32xf32> to vector<6xf32>
    %598 = vector.shape_cast %597 : vector<6xf32> to vector<6x1xf32>
    %cst_269 = arith.constant 3.200000e+01 : f32
    %599 = vector.broadcast %cst_269 : f32 to vector<6x1xf32>
    %600 = arith.divf %598, %599 : vector<6x1xf32>
    %cst_270 = arith.constant 9.99999974E-6 : f32
    %601 = vector.broadcast %cst_270 : f32 to vector<6x1xf32>
    %602 = arith.addf %600, %601 : vector<6x1xf32>
    %603 = math.rsqrt %602 : vector<6x1xf32>
    %604 = vector.broadcast %603 : vector<6x1xf32> to vector<6x32xf32>
    %605 = arith.mulf %595, %604 : vector<6x32xf32>
    %606 = vector.broadcast %587 : vector<1x32xf32> to vector<6x32xf32>
    %607 = arith.mulf %605, %606 : vector<6x32xf32>
    %608 = vector.broadcast %589 : vector<1x32xf32> to vector<6x32xf32>
    %609 = arith.addf %607, %608 : vector<6x32xf32>
    %cst_271 = arith.constant 0.000000e+00 : f32
    %cst_272 = arith.constant 2.000000e-01 : f32
    %610 = vector.broadcast %cst_271 : f32 to vector<1x6xf32>
    %611 = vector.broadcast %cst_272 : f32 to vector<1x6xf32>
    %612 = arith.select %16, %610, %611 : vector<1x6xi1>, vector<1x6xf32>
    %cst_273 = arith.constant 0.166666672 : f32
    %613 = vector.broadcast %cst_273 : f32 to vector<1x6xf32>
    %614 = arith.select %2, %612, %613 : vector<1x6xf32>
    %cst_274 = arith.constant dense<0.000000e+00> : vector<1x32xf32>
    %615 = tpu.matmul %614, %609, %cst_274 {dimension_numbers = #tpu.dot_dimension_numbers<[1], [0], [0], [1], [0, 0, 1, 1], [], []>} : vector<1x6xf32>, vector<6x32xf32>, vector<1x32xf32> -> vector<1x32xf32>
    %c0_275 = arith.constant 0 : index
    %c0_276 = arith.constant 0 : index
    %c0_277 = arith.constant 0 : index
    %616 = vector.load %arg19[%c0_275, %c0_276, %c0_277] : memref<1x1x32xf32, #tpu.memory_space<vmem>>, vector<1x1x32xf32>
    %617 = vector.shape_cast %616 : vector<1x1x32xf32> to vector<1x32xf32>
    %618 = vector.shape_cast %615 : vector<1x32xf32> to vector<1x1x32xf32>
    tpu.vector_store %arg19[%c0_275, %c0_276, %c0_277], %618 {strides = array<i32>} : memref<1x1x32xf32, #tpu.memory_space<vmem>>, vector<1x1x32xf32>,
    return
  }
  func.func @transform_0(%arg0: i32, %arg1: memref<2xi32, #tpu.memory_space<smem>>) -> (i32, i32, i32) {
    %c0_i32 = arith.constant 0 : i32
    %c0_i32_0 = arith.constant 0 : i32
    %c0_i32_1 = arith.constant 0 : i32
    return %arg0, %c0_i32, %c0_i32_0 : i32, i32, i32
  }
  func.func @transform_1(%arg0: i32, %arg1: memref<2xi32, #tpu.memory_space<smem>>) -> (i32, i32, i32) {
    %c0_i32 = arith.constant 0 : i32
    %c0_i32_0 = arith.constant 0 : i32
    %c0_i32_1 = arith.constant 0 : i32
    return %arg0, %c0_i32, %c0_i32_0 : i32, i32, i32
  }
  func.func @transform_2(%arg0: i32, %arg1: memref<2xi32, #tpu.memory_space<smem>>) -> (i32, i32) {
    %c0_i32 = arith.constant 0 : i32
    %c0_i32_0 = arith.constant 0 : i32
    %c0_i32_1 = arith.constant 0 : i32
    return %c0_i32, %c0_i32_0 : i32, i32
  }
  func.func @transform_3(%arg0: i32, %arg1: memref<2xi32, #tpu.memory_space<smem>>) -> (i32, i32) {
    %c0_i32 = arith.constant 0 : i32
    %c0_i32_0 = arith.constant 0 : i32
    %c0_i32_1 = arith.constant 0 : i32
    return %c0_i32, %c0_i32_0 : i32, i32
  }
  func.func @transform_4(%arg0: i32, %arg1: memref<2xi32, #tpu.memory_space<smem>>) -> (i32, i32) {
    %c0_i32 = arith.constant 0 : i32
    %c0_i32_0 = arith.constant 0 : i32
    %c0_i32_1 = arith.constant 0 : i32
    return %c0_i32, %c0_i32_0 : i32, i32
  }
  func.func @transform_5(%arg0: i32, %arg1: memref<2xi32, #tpu.memory_space<smem>>) -> (i32, i32, i32) {
    %c0_i32 = arith.constant 0 : i32
    %c0_i32_0 = arith.constant 0 : i32
    %c0_i32_1 = arith.constant 0 : i32
    %c0_i32_2 = arith.constant 0 : i32
    return %c0_i32, %c0_i32_0, %c0_i32_1 : i32, i32, i32
  }
  func.func @transform_6(%arg0: i32, %arg1: memref<2xi32, #tpu.memory_space<smem>>) -> (i32, i32, i32) {
    %c0_i32 = arith.constant 0 : i32
    %c0_i32_0 = arith.constant 0 : i32
    %c0_i32_1 = arith.constant 0 : i32
    %c0_i32_2 = arith.constant 0 : i32
    return %c0_i32, %c0_i32_0, %c0_i32_1 : i32, i32, i32
  }
  func.func @transform_7(%arg0: i32, %arg1: memref<2xi32, #tpu.memory_space<smem>>) -> (i32, i32, i32) {
    %c0_i32 = arith.constant 0 : i32
    %c0_i32_0 = arith.constant 0 : i32
    %c0_i32_1 = arith.constant 0 : i32
    %c0_i32_2 = arith.constant 0 : i32
    return %c0_i32, %c0_i32_0, %c0_i32_1 : i32, i32, i32
  }
  func.func @transform_8(%arg0: i32, %arg1: memref<2xi32, #tpu.memory_space<smem>>) -> (i32, i32, i32) {
    %c0_i32 = arith.constant 0 : i32
    %c0_i32_0 = arith.constant 0 : i32
    %c0_i32_1 = arith.constant 0 : i32
    %c0_i32_2 = arith.constant 0 : i32
    return %c0_i32, %c0_i32_0, %c0_i32_1 : i32, i32, i32
  }
  func.func @transform_9(%arg0: i32, %arg1: memref<2xi32, #tpu.memory_space<smem>>) -> (i32, i32, i32) {
    %c0_i32 = arith.constant 0 : i32
    %c0_i32_0 = arith.constant 0 : i32
    %c0_i32_1 = arith.constant 0 : i32
    %c0_i32_2 = arith.constant 0 : i32
    return %c0_i32, %c0_i32_0, %c0_i32_1 : i32, i32, i32
  }
  func.func @transform_10(%arg0: i32, %arg1: memref<2xi32, #tpu.memory_space<smem>>) -> (i32, i32, i32) {
    %c0_i32 = arith.constant 0 : i32
    %c0_i32_0 = arith.constant 0 : i32
    %c0_i32_1 = arith.constant 0 : i32
    %c0_i32_2 = arith.constant 0 : i32
    return %c0_i32, %c0_i32_0, %c0_i32_1 : i32, i32, i32
  }
  func.func @transform_11(%arg0: i32, %arg1: memref<2xi32, #tpu.memory_space<smem>>) -> (i32, i32, i32) {
    %c0_i32 = arith.constant 0 : i32
    %c0_i32_0 = arith.constant 0 : i32
    %c0_i32_1 = arith.constant 0 : i32
    %c0_i32_2 = arith.constant 0 : i32
    return %c0_i32, %c0_i32_0, %c0_i32_1 : i32, i32, i32
  }
  func.func @transform_12(%arg0: i32, %arg1: memref<2xi32, #tpu.memory_space<smem>>) -> (i32, i32, i32) {
    %c0_i32 = arith.constant 0 : i32
    %c0_i32_0 = arith.constant 0 : i32
    %c0_i32_1 = arith.constant 0 : i32
    %c0_i32_2 = arith.constant 0 : i32
    return %c0_i32, %c0_i32_0, %c0_i32_1 : i32, i32, i32
  }
  func.func @transform_13(%arg0: i32, %arg1: memref<2xi32, #tpu.memory_space<smem>>) -> (i32, i32, i32) {
    %c0_i32 = arith.constant 0 : i32
    %c0_i32_0 = arith.constant 0 : i32
    %c0_i32_1 = arith.constant 0 : i32
    %c0_i32_2 = arith.constant 0 : i32
    return %c0_i32, %c0_i32_0, %c0_i32_1 : i32, i32, i32
  }
  func.func @transform_14(%arg0: i32, %arg1: memref<2xi32, #tpu.memory_space<smem>>) -> (i32, i32, i32) {
    %c0_i32 = arith.constant 0 : i32
    %c0_i32_0 = arith.constant 0 : i32
    %c0_i32_1 = arith.constant 0 : i32
    %c0_i32_2 = arith.constant 0 : i32
    return %c0_i32, %c0_i32_0, %c0_i32_1 : i32, i32, i32
  }
  func.func @transform_15(%arg0: i32, %arg1: memref<2xi32, #tpu.memory_space<smem>>) -> (i32, i32, i32) {
    %c0_i32 = arith.constant 0 : i32
    %c0_i32_0 = arith.constant 0 : i32
    %c0_i32_1 = arith.constant 0 : i32
    %c0_i32_2 = arith.constant 0 : i32
    return %c0_i32, %c0_i32_0, %c0_i32_1 : i32, i32, i32
  }
  func.func @transform_16(%arg0: i32, %arg1: memref<2xi32, #tpu.memory_space<smem>>) -> (i32, i32, i32) {
    %c0_i32 = arith.constant 0 : i32
    %c0_i32_0 = arith.constant 0 : i32
    %c0_i32_1 = arith.constant 0 : i32
    %c0_i32_2 = arith.constant 0 : i32
    return %c0_i32, %c0_i32_0, %c0_i32_1 : i32, i32, i32
  }
  func.func @transform_17(%arg0: i32, %arg1: memref<2xi32, #tpu.memory_space<smem>>) -> (i32, i32, i32) {
    %c0_i32 = arith.constant 0 : i32
    %c0_i32_0 = arith.constant 0 : i32
    %c0_i32_1 = arith.constant 0 : i32
    return %arg0, %c0_i32, %c0_i32_0 : i32, i32, i32
  }
}

</mosaic_0001>

<bundles_post_ra>
// kernel: tpu_custom_call.1
= control target key start
LH: loop header
LB: loop body
LE: loop exit
PB: predicated region body
PF: predicated region fallthrough
CT: control target
= control target key end

     0   :  { %s6063_s0 = inlined_call_operand.vmem [shape: s32[2], index: 0, kind: input, shape index: {}]   ;;  %s6064_s1 = inlined_call_operand.vmem [shape: f32[2,5,768], index: 1, kind: input, shape index: {}]   ;;  %s6065_s2 = inlined_call_operand.vmem [shape: f32[2,1,2], index: 2, kind: input, shape index: {}]   ;;  %s6066_s3 = inlined_call_operand.vmem [shape: f32[768,32], index: 3, kind: input, shape index: {}]   ;;  %s6067_s4 = inlined_call_operand.vmem [shape: f32[2,32], index: 4, kind: input, shape index: {}]   ;;  %s6068_s5 = inlined_call_operand.vmem [shape: f32[6,32], index: 5, kind: input, shape index: {}]   ;;  %s6069_s6 = inlined_call_operand.vmem [shape: bf16[4,32,96], index: 6, kind: input, shape index: {}]   ;;  %s6070_s7 = inlined_call_operand.vmem [shape: f32[4,1,96], index: 7, kind: input, shape index: {}]   ;;  %s6071_s8 = inlined_call_operand.vmem [shape: bf16[4,32,32], index: 8, kind: input, shape index: {}]   ;;  %s6072_s9 = inlined_call_operand.vmem [shape: f32[4,1,32], index: 9, kind: input, shape index: {}]   ;;  %s6073_s10 = inlined_call_operand.vmem [shape: f32[4,1,32], index: 10, kind: input, shape index: {}]   ;;  %s6074_s11 = inlined_call_operand.vmem [shape: f32[4,1,32], index: 11, kind: input, shape index: {}]   ;;  %s6075_s12 = inlined_call_operand.vmem [shape: bf16[4,32,128], index: 12, kind: input, shape index: {}]   ;;  %s6076_s13 = inlined_call_operand.vmem [shape: f32[4,1,128], index: 13, kind: input, shape index: {}]   ;;  %s6077_s14 = inlined_call_operand.vmem [shape: bf16[4,128,32], index: 14, kind: input, shape index: {}]   ;;  %s6078_s15 = inlined_call_operand.vmem [shape: f32[4,1,32], index: 15, kind: input, shape index: {}]   ;;  %s6079_s16 = inlined_call_operand.vmem [shape: f32[4,1,32], index: 16, kind: input, shape index: {}]   ;;  %s6080_s17 = inlined_call_operand.vmem [shape: f32[4,1,32], index: 17, kind: input, shape index: {}]   ;;  %s6081_s18 = inlined_call_operand.hbm [shape: f32[2,1,32], index: 18, kind: output, shape index: {}]  }
   0x1   :  { %6090 = sst [smem:[#allocation14_spill]] %s6063_s0 }
   0x2   :  { %6091 = sst [smem:[#allocation15_spill]] %s6064_s1  ;;  %s6095_s29 = sld [smem:[#allocation14_spill]] }
   0x3   :  { %6092 = sst [smem:[#allocation16_spill]] %s6065_s2 }
   0x4   :  { %6093 = sst [smem:[#allocation17_spill]] %s6074_s11 }
   0x5   :  { %6094 = sst [smem:[#allocation18_spill]] %s6081_s18 }
   0x8   :  { %s23_s11 = sshll.u32 %s6095_s29, 4  ;;  %s24_s11 = int_to_ptr.vmem [resolvable:$true] %s23_s11 }
   0x9   :  { %s4909_s30 = scalar_lea.vmem %s24_s11, 16  ;;  %p4914_p1 = scmp.lt.s32.totalorder %s24_s11, %s24_s11 }
   0xa   :  { %p4910_p0 = scmp.ne.s32.totalorder %s24_s11, %s4909_s30  ;;  %p4915_p2 = scmp.lt.s32.totalorder %s4909_s30, %s4909_s30 }
   0xc   :  { %p4916_p3 = por %p4915_p2, %p4914_p1 }
   0xe   :  { %p4917_p4 = pnand %p4916_p3, %p4910_p0 }
  0x10   :  { %4920 = shalt.err (!%p4917_p4)  }
  0x11   :  { %s4987_s0 = smov [#allocation3]  }
  0x12   :  { %26 = dma.vmem_to_smem %s24_s11, 16, %s4987_s0, [#allocation2] }
  0x13   :  { %4965 = dma.done.wait [#allocation2], 16 }
  0x14   :  { %4966 = vsyncadd [#allocation2], 4294967280 }
  0x15   :  { %28 = sfence }
  0x16   :  { %29 = vsyncpa [#allocation5], 0 }
  0x17   :  { %31 = vsyncpa [#allocation5 + $0x1], 0  ;;  %s5094_s19 = smov 0   ;;  %s5096_s1 = smov 0  }
  0x18   :  { %s5098_s20 = smov 0   ;;  %s5100_s21 = smov 0  }
  0x19 LB: > { %6096 = sst [smem:[#allocation8_spill]] %s4973_s19  ;;  %s5115_s11 = sadd.s32 4294967295, %s4985_s21   ;;  %s4985_s21 = sphi %s5100_s21, %s6113_s21   ;;  %s4981_s20 = sphi %s5098_s20, %s6115_s20   ;;  %s4977_s1 = sphi %s5096_s1, %s6117_s1   ;;  %s4973_s19 = sphi %s5094_s19, %s6116_s19  }
  0x1a   : > { %6097 = sst [smem:[#allocation9_spill]] %s4981_s20  ;;  %s3898_s22 = sadd.s32 4294967294, %s4985_s21  }
  0x1b   : > { %6098 = sst [smem:[#allocation10_spill]] %s4985_s21  ;;  %s5119_s2 = sadd.s32 1, %s4985_s21  }
  0x1c   : > { %6099 = sst [smem:[#allocation11_spill]] %s5119_s2  ;;  %s411_s23 = sadd.s32 1, %s4981_s20 }
  0x1d   : > { %s408_s24 = ssub.s32 %s4985_s21, %s5119_s2  ;;  %p421_p5 = scmp.ne.s32.totalorder %s4981_s20, %s4977_s1 }
  0x1e   : > { %p409_p6 = scmp.eq.s32.totalorder %s408_s24, 0  ;;  %p422_p7 = scmp.eq.s32.totalorder %s5115_s11, 1 }
  0x1f   : > { %p427_p8 = scmp.ne.s32.totalorder %s4977_s1, %s4973_s19  ;;  %p428_p9 = scmp.eq.s32.totalorder %s3898_s22, 1 }
  0x20   : > { %s5130_s25 = scalar_select %p409_p6, %s4981_s20, %s411_s23  }
  0x21   : > { %p5132_p10 = por %p422_p7, %p421_p5  ;;  %p5136_p11 = por %p428_p9, %p427_p8 }
  0x22   : > { %6100 = sst [smem:[#allocation12_spill]] %s5130_s25  ;;  %p3901_p12 = scmp.ge.s32.totalorder %s4985_s21, 1 }
  0x23   : > { %s6102_s27 = scalar_select %p5136_p11, 1, 0 }
  0x24   : > { %p505_p13 = scmp.lt.s32.totalorder %s4985_s21, 3 }
  0x25   : > { %6103 = sst [smem:[#allocation13_spill]] %s6102_s27 }
  0x26   : > { %p506_p0 = pnand %p3901_p12, %p505_p13 }
  0x27   : > { %v592_v0 = vld [vmem:[%s6066_s3 + $0x80] sm:$0xff] (!%p506_p0)  ;;  %v593_v1 = vld [vmem:[%s6066_s3 + $0x88] sm:$0xff] (!%p506_p0)  ;;  %v594_v11 = vld [vmem:[%s6066_s3 + $0x90] sm:$0xff] (!%p506_p0)  ;;  %p559_p1 = scmp.lt.s32.totalorder (!%p506_p0), %s5115_s11, 1  ;;  %s6104_s21 = sld [smem:[#allocation15_spill]] (!%p506_p0)  ;;  %vm888_vm0 = vcmask (!%p506_p0), 1041408  }
  0x28   : > { %509 = sbr.rel (%p506_p0) target bundleno = 11824 (0x2e30), region = 88  ;;  %v624_v2 = vld [vmem:[%s6066_s3 + $0x180] sm:$0xff] (!%p506_p0)  ;;  %v4653_v3 = vpack.c.bf16 (!%p506_p0), %v593_v1, %v592_v0  ;;  %v625_v4 = vld [vmem:[%s6066_s3 + $0x188] sm:$0xff] (!%p506_p0)  ;;  %v595_v13 = vld [vmem:[%s6066_s3 + $0x98] sm:$0xff] (!%p506_p0)  ;;  %vm884_vm1 = vcmask (!%p506_p0), 15360   ;;  %vm4989_vm2 = vmmov (!%p506_p0), 0  }
  0x29   : > { %v576_v5 = vld [vmem:[%s6066_s3] sm:$0xff] (!%p506_p0)  ;;  %v577_v6 = vld [vmem:[%s6066_s3 + $0x8] sm:$0xff] (!%p506_p0)  ;;  %v4685_v7 = vpack.c.bf16 (!%p506_p0), %v625_v4, %v624_v2  ;;  %v626_v14 = vld [vmem:[%s6066_s3 + $0x190] sm:$0xff] (!%p506_p0)  ;;  %v4657_v16 = vpack.c.bf16 (!%p506_p0), %v595_v13, %v594_v11  ;;  %vm965_vm3 = vcmask (!%p506_p0), 1044480   ;;  %vm1001_vm4 = vcmask (!%p506_p0), 261120   ;;  %s4990_s29 = smov (!%p506_p0), 96  }
  0x2a   : > { %v4655_v8 = vpack.c.bf16 (!%p506_p0), %v577_v6, %v576_v5  ;;  %v608_v9 = vld [vmem:[%s6066_s3 + $0x100] sm:$0xff] (!%p506_p0)  ;;  %v609_v10 = vld [vmem:[%s6066_s3 + $0x108] sm:$0xff] (!%p506_p0)  ;;  %4654 = vmatprep.subr.bf16.mxu0 (!%p506_p0), %v4653_v3  ;;  %v627_v15 = vld [vmem:[%s6066_s3 + $0x198] sm:$0xff] (!%p506_p0)  ;;  %vm1089_vm5 = vcmask (!%p506_p0), 130048   ;;  %s568_s30 = sld [smem:[#allocation3 + %s5115_s11]] (!%p506_p0)  ;;  %vm1135_vm9 = vcmask (!%p506_p0), 46080  }
  0x2b   : > { %v4687_v12 = vpack.c.bf16 (!%p506_p0), %v609_v10, %v608_v9  ;;  %4686 = vmatprep.subr.bf16.mxu1 (!%p506_p0), %v4685_v7  ;;  %v4689_v17 = vpack.c.bf16 (!%p506_p0), %v627_v15, %v626_v14  ;;  %v578_v18 = vld [vmem:[%s6066_s3 + $0x10] sm:$0xff] (!%p506_p0)  ;;  %v579_v19 = vld [vmem:[%s6066_s3 + $0x18] sm:$0xff] (!%p506_p0)  ;;  %v596_v23 = vld [vmem:[%s6066_s3 + $0xa0] sm:$0xff] (!%p506_p0)  ;;  %s4991_s22 = smov (!%p506_p0), 64   ;;  %vm1155_vm10 = vcmask (!%p506_p0), 1042432   ;;  %vm1151_vm11 = vcmask (!%p506_p0), 48128  }
  0x2c   : > { %4656 = vmatpush3.bf16.msra.mxu0 (!%p506_p0), %v4655_v8  ;;  %v610_v20 = vld [vmem:[%s6066_s3 + $0x110] sm:$0xff] (!%p506_p0)  ;;  %v4659_v21 = vpack.c.bf16 (!%p506_p0), %v579_v19, %v578_v18  ;;  %v611_v22 = vld [vmem:[%s6066_s3 + $0x118] sm:$0xff] (!%p506_p0)  ;;  %v597_v24 = vld [vmem:[%s6066_s3 + $0xa8] sm:$0xff] (!%p506_p0)  ;;  %s4993_s19 = smov (!%p506_p0), 48   ;;  %vm1417_vm12 = vcmask (!%p506_p0), 259072   ;;  %s6108_s24 = sld [smem:[#allocation17_spill]] (!%p506_p0) }
  0x2d   : > { %4688 = vmatpush3.bf16.msra.mxu1 (!%p506_p0), %v4687_v12  ;;  %4658 = vmatprep.subr.bf16.mxu0 (!%p506_p0), %v4657_v16  ;;  %v4691_v25 = vpack.c.bf16 (!%p506_p0), %v611_v22, %v610_v20  ;;  %v4661_v26 = vpack.c.bf16 (!%p506_p0), %v597_v24, %v596_v23  ;;  %v628_v27 = vld [vmem:[%s6066_s3 + $0x1a0] sm:$0xff] (!%p506_p0)  ;;  %v629_v28 = vld [vmem:[%s6066_s3 + $0x1a8] sm:$0xff] (!%p506_p0)  ;;  %v598_v35 = vld [vmem:[%s6066_s3 + $0xb0] sm:$0xff] (!%p506_p0)  ;;  %vm3745_vm13 = vcmask (!%p506_p0), 1045504   ;;  %vm3819_vm14 = vcmask (!%p506_p0), 253952  }
  0x2e   : > { %4690 = vmatprep.subr.bf16.mxu1 (!%p506_p0), %v4689_v17  ;;  %v580_v29 = vld [vmem:[%s6066_s3 + $0x20] sm:$0xff] (!%p506_p0)  ;;  %v4693_v30 = vpack.c.bf16 (!%p506_p0), %v629_v28, %v628_v27  ;;  %v581_v31 = vld [vmem:[%s6066_s3 + $0x28] sm:$0xff] (!%p506_p0)  ;;  %v599_v36 = vld [vmem:[%s6066_s3 + $0xb8] sm:$0xff] (!%p506_p0) }
  0x2f   : > { %v612_v32 = vld [vmem:[%s6066_s3 + $0x120] sm:$0xff]  ;;  %v613_v33 = vld [vmem:[%s6066_s3 + $0x128] sm:$0xff]  ;;  %v4663_v34 = vpack.c.bf16 %v581_v31, %v580_v29  ;;  %v630_v37 = vld [vmem:[%s6066_s3 + $0x1b0] sm:$0xff]  ;;  %v4665_v39 = vpack.c.bf16 %v599_v36, %v598_v35  ;;  %s5245_s28 = scalar_select %p559_p1, %s5115_s11, 1 }
  0x30   : > { %4660 = vmatpush3.bf16.msra.mxu0 %v4659_v21  ;;  %v4695_v38 = vpack.c.bf16 %v613_v33, %v612_v32  ;;  %v631_v40 = vld [vmem:[%s6066_s3 + $0x1b8] sm:$0xff]  ;;  %v582_v41 = vld [vmem:[%s6066_s3 + $0x30] sm:$0xff]  ;;  %v600_v46 = vld [vmem:[%s6066_s3 + $0xc0] sm:$0xff]  ;;  %p569_p2 = scmp.eq.s32.totalorder %s568_s30, 1 }
  0x31   : > { %4692 = vmatpush3.bf16.msra.mxu1 %v4691_v25  ;;  %4662 = vmatprep.subr.bf16.mxu0 %v4661_v26  ;;  %v583_v42 = vld [vmem:[%s6066_s3 + $0x38] sm:$0xff]  ;;  %v4697_v43 = vpack.c.bf16 %v631_v40, %v630_v37  ;;  %v614_v44 = vld [vmem:[%s6066_s3 + $0x130] sm:$0xff]  ;;  %v601_v47 = vld [vmem:[%s6066_s3 + $0xc8] sm:$0xff]  ;;  %s4749_s27 = smul.u32 48, %s5245_s28 }
  0x32   : > { %4694 = vmatprep.subr.bf16.mxu1 %v4693_v30  ;;  %v615_v45 = vld [vmem:[%s6066_s3 + $0x138] sm:$0xff]  ;;  %v632_v48 = vld [vmem:[%s6066_s3 + $0x1c0] sm:$0xff]  ;;  %v633_v49 = vld [vmem:[%s6066_s3 + $0x1c8] sm:$0xff]  ;;  %v4667_v50 = vpack.c.bf16 %v583_v42, %v582_v41  ;;  %v4669_v52 = vpack.c.bf16 %v601_v47, %v600_v46  ;;  %s972_s0 = scalar_select %p569_p2, 1, 0 }
  0x33   : > { %v4699_v51 = vpack.c.bf16 %v615_v45, %v614_v44  ;;  %v584_v53 = vld [vmem:[%s6066_s3 + $0x40] sm:$0xff]  ;;  %v585_v54 = vld [vmem:[%s6066_s3 + $0x48] sm:$0xff]  ;;  %v4701_v56 = vpack.c.bf16 %v633_v49, %v632_v48  ;;  %v602_v58 = vld [vmem:[%s6066_s3 + $0xd0] sm:$0xff]  ;;  %s5302_s18 = scalar_lea.vmem %s6104_s21, %s4749_s27  ;;  %s6105_s21 = sld [smem:[#allocation16_spill]] }
  0x34   : > { %4664 = vmatpush3.bf16.msra.mxu0 %v4663_v34  ;;  %v616_v55 = vld [vmem:[%s6066_s3 + $0x140] sm:$0xff]  ;;  %v617_v57 = vld [vmem:[%s6066_s3 + $0x148] sm:$0xff]  ;;  %v603_v59 = vld [vmem:[%s6066_s3 + $0xd8] sm:$0xff]  ;;  %v4671_v62 = vpack.c.bf16 %v585_v54, %v584_v53 }
  0x35   : > { %4696 = vmatpush3.bf16.msra.mxu1 %v4695_v38  ;;  %4666 = vmatprep.subr.bf16.mxu0 %v4665_v39  ;;  %v634_v60 = vld [vmem:[%s6066_s3 + $0x1d0] sm:$0xff]  ;;  %v635_v61 = vld [vmem:[%s6066_s3 + $0x1d8] sm:$0xff]  ;;  %v4703_v63 = vpack.c.bf16 %v617_v57, %v616_v55  ;;  %v4673_v0 = vpack.c.bf16 %v603_v59, %v602_v58  ;;  %v604_v6 = vld [vmem:[%s6066_s3 + $0xe0] sm:$0xff] }
  0x36   : > { %4698 = vmatprep.subr.bf16.mxu1 %v4697_v43  ;;  %v586_v1 = vld [vmem:[%s6066_s3 + $0x50] sm:$0xff]  ;;  %v587_v2 = vld [vmem:[%s6066_s3 + $0x58] sm:$0xff]  ;;  %v4705_v4 = vpack.c.bf16 %v635_v61, %v634_v60  ;;  %v605_v7 = vld [vmem:[%s6066_s3 + $0xe8] sm:$0xff] }
  0x37   : > { %v618_v3 = vld [vmem:[%s6066_s3 + $0x150] sm:$0xff]  ;;  %v619_v5 = vld [vmem:[%s6066_s3 + $0x158] sm:$0xff]  ;;  %v636_v8 = vld [vmem:[%s6066_s3 + $0x1e0] sm:$0xff]  ;;  %v4675_v10 = vpack.c.bf16 %v587_v2, %v586_v1  ;;  %v4677_v14 = vpack.c.bf16 %v605_v7, %v604_v6 }
  0x38   : > { %4668 = vmatpush3.bf16.msra.mxu0 %v4667_v50  ;;  %v637_v9 = vld [vmem:[%s6066_s3 + $0x1e8] sm:$0xff]  ;;  %v588_v11 = vld [vmem:[%s6066_s3 + $0x60] sm:$0xff]  ;;  %v4707_v13 = vpack.c.bf16 %v619_v5, %v618_v3  ;;  %v573_v17 = vld [vmem:[%s5302_s18 + $0x18] sm:$0x1f]  ;;  %v4988_v50 = vmov 0.0  }
  0x39   : > { %4700 = vmatpush3.bf16.msra.mxu1 %v4699_v51  ;;  %4670 = vmatprep.subr.bf16.mxu0 %v4669_v52  ;;  %v589_v12 = vld [vmem:[%s6066_s3 + $0x68] sm:$0xff]  ;;  %v620_v15 = vld [vmem:[%s6066_s3 + $0x160] sm:$0xff]  ;;  %v4709_v18 = vpack.c.bf16 %v637_v9, %v636_v8  ;;  %v606_v20 = vld [vmem:[%s6066_s3 + $0xf0] sm:$0xff]  ;;  %s566_s27 = scalar_lea.vmem %s6105_s21, %s5245_s28  ;;  %s4992_s21 = smov 112  }
  0x3a   : > { %4702 = vmatprep.subr.bf16.mxu1 %v4701_v56  ;;  %v571_v16 = vld [vmem:[%s5302_s18 + $0x8] sm:$0x1f]  ;;  %v607_v21 = vld [vmem:[%s6066_s3 + $0xf8] sm:$0xff]  ;;  %v638_v22 = vld [vmem:[%s6066_s3 + $0x1f0] sm:$0xff]  ;;  %806 = vmatprep.mubr.f32.mxu1 %v573_v17  ;;  %v4679_v24 = vpack.c.bf16 %v589_v12, %v588_v11  ;;  %s6109_s28 = sld [smem:[#allocation18_spill]] }
  0x3b   : > { %v621_v19 = vld [vmem:[%s6066_s3 + $0x168] sm:$0xff]  ;;  %736 = vmatprep.mubr.f32.mxu0 %v571_v16  ;;  %v639_v23 = vld [vmem:[%s6066_s3 + $0x1f8] sm:$0xff]  ;;  %v4681_v26 = vpack.c.bf16 %v607_v21, %v606_v20  ;;  %v590_v27 = vld [vmem:[%s6066_s3 + $0x70] sm:$0xff] }
  0x3c   : > { %4672 = vmatpush3.bf16.msra.mxu0 %v4671_v62  ;;  %v4711_v25 = vpack.c.bf16 %v621_v19, %v620_v15  ;;  %v591_v28 = vld [vmem:[%s6066_s3 + $0x78] sm:$0xff]  ;;  %v622_v29 = vld [vmem:[%s6066_s3 + $0x170] sm:$0xff]  ;;  %v4713_v30 = vpack.c.bf16 %v639_v23, %v638_v22  ;;  %v656_v32 = vld [vmem:[%s6066_s3 + $0x280] sm:$0xff] }
  0x3d   : > { %4704 = vmatpush3.bf16.msra.mxu1 %v4703_v63  ;;  %4674 = vmatprep.subr.bf16.mxu0 %v4673_v0  ;;  %v623_v31 = vld [vmem:[%s6066_s3 + $0x178] sm:$0xff]  ;;  %v657_v33 = vld [vmem:[%s6066_s3 + $0x288] sm:$0xff]  ;;  %v4683_v34 = vpack.c.bf16 %v591_v28, %v590_v27  ;;  %v640_v37 = vld [vmem:[%s6066_s3 + $0x200] sm:$0xff] }
  0x3e   : > { %4706 = vmatprep.subr.bf16.mxu1 %v4705_v4  ;;  %v4715_v35 = vpack.c.bf16 %v623_v31, %v622_v29  ;;  %v4717_v36 = vpack.c.bf16 %v657_v33, %v656_v32  ;;  %v641_v38 = vld [vmem:[%s6066_s3 + $0x208] sm:$0xff]  ;;  %v658_v39 = vld [vmem:[%s6066_s3 + $0x290] sm:$0xff]  ;;  %v659_v40 = vld [vmem:[%s6066_s3 + $0x298] sm:$0xff] }
  0x3f   : > { %v570_v41 = vld [vmem:[%s5302_s18] sm:$0x1f]  ;;  %v572_v42 = vld [vmem:[%s5302_s18 + $0x10] sm:$0x1f]  ;;  %v4719_v43 = vpack.c.bf16 %v641_v38, %v640_v37  ;;  %v4721_v45 = vpack.c.bf16 %v659_v40, %v658_v39  ;;  %v643_v46 = vld [vmem:[%s6066_s3 + $0x218] sm:$0xff] }
  0x40   : > { %4676 = vmatpush3.bf16.msra.mxu0 %v4675_v10  ;;  %v642_v44 = vld [vmem:[%s6066_s3 + $0x210] sm:$0xff]  ;;  %v660_v47 = vld [vmem:[%s6066_s3 + $0x2a0] sm:$0xff]  ;;  %v661_v48 = vld [vmem:[%s6066_s3 + $0x2a8] sm:$0xff] }
  0x41   : > { %4708 = vmatpush3.bf16.msra.mxu1 %v4707_v13  ;;  %4678 = vmatprep.subr.bf16.mxu0 %v4677_v14  ;;  %v575_v49 = vld [vmem:[%s5302_s18 + $0x28] sm:$0x1f]  ;;  %v883_v51 = vld [vmem:[%s6067_s4] sm:$0x3]  ;;  %v4723_v55 = vpack.c.bf16 %v643_v46, %v642_v44  ;;  %v662_v56 = vld [vmem:[%s6066_s3 + $0x2b0] sm:$0xff]  ;;  %v4725_v58 = vpack.c.bf16 %v661_v48, %v660_v47 }
  0x42   : > { %4710 = vmatprep.subr.bf16.mxu1 %v4709_v18  ;;  %v644_v52 = vld [vmem:[%s6066_s3 + $0x220] sm:$0xff]  ;;  %v645_v53 = vld [vmem:[%s6066_s3 + $0x228] sm:$0xff]  ;;  %v663_v57 = vld [vmem:[%s6066_s3 + $0x2b8] sm:$0xff] }
  0x43   : > { %v882_v54 = vld [vmem:[%s566_s27] sm:$0x1]  ;;  %v646_v59 = vld [vmem:[%s6066_s3 + $0x230] sm:$0xff]  ;;  %v647_v60 = vld [vmem:[%s6066_s3 + $0x238] sm:$0xff]  ;;  %v4727_v61 = vpack.c.bf16 %v645_v53, %v644_v52  ;;  %v4729_v0 = vpack.c.bf16 %v663_v57, %v662_v56  ;;  %v969_v57 = vlaneseq }
  0x44   : > { %4680 = vmatpush3.bf16.msra.mxu0 %v4679_v24  ;;  %v664_v62 = vld [vmem:[%s6066_s3 + $0x2c0] sm:$0xff]  ;;  %v665_v63 = vld [vmem:[%s6066_s3 + $0x2c8] sm:$0xff]  ;;  %v4731_v3 = vpack.c.bf16 %v647_v60, %v646_v59  ;;  %v666_v4 = vld [vmem:[%s6066_s3 + $0x2d0] sm:$0xff]  ;;  %v973_v59 = vstv %s972_s0 }
  0x45   : > { %4712 = vmatpush3.bf16.msra.mxu1 %v4711_v25  ;;  %4682 = vmatprep.subr.bf16.mxu0 %v4681_v26  ;;  %v648_v1 = vld [vmem:[%s6066_s3 + $0x240] sm:$0xff]  ;;  %v649_v2 = vld [vmem:[%s6066_s3 + $0x248] sm:$0xff]  ;;  %v667_v5 = vld [vmem:[%s6066_s3 + $0x2d8] sm:$0xff]  ;;  %v4733_v6 = vpack.c.bf16 %v665_v63, %v664_v62  ;;  %vm5499_vm7 = vcmp.eq.s32.totalorder %v973_v59, 1 }
  0x46   : > { %4714 = vmatprep.subr.bf16.mxu1 %v4713_v30  ;;  %v650_v7 = vld [vmem:[%s6066_s3 + $0x250] sm:$0xff]  ;;  %v651_v8 = vld [vmem:[%s6066_s3 + $0x258] sm:$0xff]  ;;  %v4735_v9 = vpack.c.bf16 %v649_v2, %v648_v1  ;;  %v668_v10 = vld [vmem:[%s6066_s3 + $0x2e0] sm:$0xff]  ;;  %v4737_v12 = vpack.c.bf16 %v667_v5, %v666_v4 }
  0x47   : > { %v669_v11 = vld [vmem:[%s6066_s3 + $0x2e8] sm:$0xff]  ;;  %v652_v13 = vld [vmem:[%s6066_s3 + $0x260] sm:$0xff]  ;;  %v4739_v15 = vpack.c.bf16 %v651_v8, %v650_v7  ;;  %v670_v16 = vld [vmem:[%s6066_s3 + $0x2f0] sm:$0xff] }
  0x48   : > { %4684 = vmatpush3.bf16.msra.mxu0 %v4683_v34  ;;  %v653_v14 = vld [vmem:[%s6066_s3 + $0x268] sm:$0xff]  ;;  %v671_v17 = vld [vmem:[%s6066_s3 + $0x2f8] sm:$0xff]  ;;  %v4741_v18 = vpack.c.bf16 %v669_v11, %v668_v10  ;;  %v654_v19 = vld [vmem:[%s6066_s3 + $0x270] sm:$0xff] }
  0x49   : > { %4716 = vmatpush3.bf16.msra.mxu1 %v4715_v35  ;;  %4718 = vmatprep.subr.bf16.mxu0 %v4717_v36  ;;  %v655_v20 = vld [vmem:[%s6066_s3 + $0x278] sm:$0xff]  ;;  %v4743_v21 = vpack.c.bf16 %v653_v14, %v652_v13  ;;  %v4745_v22 = vpack.c.bf16 %v671_v17, %v670_v16  ;;  %v574_v24 = vld [vmem:[%s5302_s18 + $0x20] sm:$0x1f]  ;;  %v4798_v26 = vld [vmem:[%s6069_s6 + $0x8] sm:$0xff]   ;;  %s557_s18 = sand.u32 1, %s4977_s1  }
  0x4a   : > { %4355 = vmatprep.subr.mxu1 %v4988_v50  ;;  %v4747_v23 = vpack.c.bf16 %v655_v20, %v654_v19  ;;  %v4797_v25 = vld [vmem:[%s6069_s6] sm:$0xff]   ;;  %s3822_s0 = scalar_lea.sflag [#allocation5], %s557_s18 }
  0x4b   : > { %737 = vmatmul.mubr.f32.vlgmr.msra.gmra.mrb[0].mxu0 %v570_v41  ;;  %v967_v41 = vld [vmem:[%s6068_s5] sm:$0x3f] }
  0x4c   : > { %807 = vmatmul.mubr.f32.vlgmr.msra.gmra.mrb[0].mxu1 %v572_v42  ;;  %4720 = vmatpush3.bf16.msra.mxu0 %v4719_v43  ;;  %v4799_v20 = vld [vmem:[%s6071_s8] sm:$0xff]  }
  0x4d   : > { %4722 = vmatprep.subr.bf16.mxu0 %v4721_v45  ;;  %876 = vmatprep.mubr.f32.mxu0 %v575_v49  ;;  %v3905_v45 = vld [vmem:[%s6070_s7] ss:$0 sm:$0xff] }
  0x4e   : > { %4356 = vmatpush3.msk.msra.mxu1 %vm888_vm0, %v883_v51  ;;  %4357 = vmatprep.mubr.msk.f32.mxu1 %vm4989_vm2, %v4988_v50 }
  0x4f   : > { %4368 = vmatprep.subr.bf16.mxu1 %v4988_v50 }
  0x50   : > { %4724 = vmatpush3.bf16.msra.mxu0 %v4723_v55  ;;  %4358 = vmatmul.mubr.msk.f32.vlgmr.msra.gmra.mrb[2].mxu1 %vm884_vm1, %v882_v54 }
  0x51   : > { %4726 = vmatprep.subr.bf16.mxu0 %v4725_v58  ;;  %4370 = vmatprep.mubr.msk.bf16.mxu1 %vm4989_vm2, %v4988_v50  ;;  %v5496_v58 = vand.u32 127, %v969_v57 }
  0x53   : > { %vm971_vm6 = vcmp.eq.s32.totalorder %v5496_v58, 5 }
  0x54   : > { %4728 = vmatpush3.bf16.msra.mxu0 %v4727_v61  ;;  %vm975_vm8 = vmand %vm971_vm6, %vm5499_vm7 }
  0x55   : > { %4730 = vmatprep.subr.bf16.mxu0 %v4729_v0  ;;  %v5508_v62 = vsel %vm975_vm8, -1e+30, %v4988_v50 }
  0x58   : > { %4732 = vmatpush3.bf16.msra.mxu0 %v4731_v3 }
  0x59   : > { %4734 = vmatprep.subr.bf16.mxu0 %v4733_v6 }
  0x5c   : > { %4736 = vmatpush3.bf16.msra.mxu0 %v4735_v9 }
  0x5d   : > { %4738 = vmatprep.subr.bf16.mxu0 %v4737_v12 }
  0x60   : > { %4740 = vmatpush3.bf16.msra.mxu0 %v4739_v15 }
  0x61   : > { %4742 = vmatprep.subr.bf16.mxu0 %v4741_v18 }
  0x64   : > { %4744 = vmatpush3.bf16.msra.mxu0 %v4743_v21 }
  0x65   : > { %4746 = vmatprep.subr.bf16.mxu0 %v4745_v22 }
  0x68   : > { %4748 = vmatpush3.bf16.msra.mxu0 %v4747_v23 }
  0x69   : > { %4360 = vmatprep.subr.bf16.mxu0 %v4988_v50 }
  0x6b   : > { %877 = vmatmul.mubr.f32.vlgmr.msra.gmra.mrb[2].mxu0 %v574_v24 }
  0x6c   : > { %4364 = vmatprep.mubr.msk.bf16.mxu0 %vm4989_vm2, %v4988_v50  ;;  %4361 = vmatpush3.bf16.msra.mxu0 %v4797_v25 }
  0x6d   : > { %4362 = vmatprep.subr.bf16.mxu0 %v4988_v50 }
  0x70   : > { %4363 = vmatpush3.bf16.msra.mxu0 %v4798_v26 }
  0x71   : > { %4380 = vmatprep.subr.bf16.mxu0 %v4988_v50 }
 0x11e   : > { %v4170_v27 = vpop.f32.mrb[0].mxu0 }
 0x11f   : > { %v4205_v28 = vpop.f32.mrb[0].mxu1  ;;  %v4171_v29 = vpop.f32.mrb[1].mxu0 }
 0x120   : > { %v4172_v30 = vadd.f32 %v4171_v29, %v4170_v27  ;;  %v4206_v31 = vpop.f32.mrb[1].mxu1 }
 0x121   : > { %v4207_v32 = vadd.f32 %v4206_v31, %v4205_v28 }
 0x123   : > { %v809_v33 = vadd.f32 %v4207_v32, %v4172_v30  ;;  %v958_v34 = vpop.f32.mrb[2].mxu1 }
 0x124   : > { %v4359_v35 = vpop.f32.mrb[3].mxu1  ;;  %v963_v39 = vrot.slane %v958_v34, 3 }
 0x13e   : > { %v4240_v36 = vpop.f32.mrb[2].mxu0 }
 0x13f   : > { %v4241_v37 = vpop.f32.mrb[3].mxu0 }
 0x140   : > { %v4242_v38 = vadd.f32 %v4241_v37, %v4240_v36 }
 0x142   : > { %v879_v40 = vadd.f32 %v4242_v38, %v809_v33 }
 0x144   : > { %v966_v42 = vsel %vm965_vm3, %v879_v40, %v963_v39 }
 0x145   : > { %v5477_v43 = vadd.f32 %v967_v41, %v966_v42 }
 0x147   : > { %v977_v44 = vpack.c.bf16 %v5477_v43, %v5477_v43 }
 0x149   : > { %4365 = vmatmul.mubr.msk.bf16.vlgmr.msra.gmra.mrb[4].mxu0 %vm1001_vm4, %v977_v44 }
 0x14a   : > { %4382 = vmatprep.mubr.msk.bf16.mxu0 %vm4989_vm2, %v4988_v50  ;;  %4381 = vmatpush3.bf16.msra.mxu0 %v4799_v20 }
 0x14b   : > { %4392 = vmatprep.subr.bf16.mxu0 %v4988_v50 }
 0x21c   : > { %v1039_v46 = vpop.f32.mrb[4].mxu0 }
 0x21d   : > { %v1040_v47 = vadd.f32 %v3905_v45, %v1039_v46  ;;  %v4366_v48 = vpop.f32.mrb[5].mxu0 }
 0x21e   : > { %v1042_v49 = vpop.f32.mrb[6].mxu0 }
 0x21f   : > { %1047 = vrot.lane.b32.xlu0 %v1040_v47, %s4990_s29  ;;  %v4367_v51 = vpop.f32.mrb[7].mxu0  ;;  %v5488_v56 = vpack.c.bf16 %v1040_v47, %v1040_v47  ;;  %v4800_v49 = vld [vmem:[%s6071_s8 + $0x8] sm:$0xff]  }
 0x291   : > { %v1048_v52 = vpop.permute.xlu0 %1047 }
 0x292   : > { %1050 = vxpose.xlu0.b32.start.end [1/1] (short) (narrow) %v1048_v52, 32 }
 0x312   : > { %v1066_v53 = vpop.trf.xlu0 }
 0x316   : > { %v1067_v54 = vpop.trf.xlu0 }
 0x317   : > { %v1082_v55 = vpack.c.bf16 %v1067_v54, %v1066_v53 }
 0x319   : > { %4369 = vmatpush3.bf16.msra.mxu1 %v1082_v55 }
 0x31a   : > { %4374 = vmatprep.subr.bf16.mxu1 %v4988_v50  ;;  %v1068_v12 = vpop.trf.xlu0 }
 0x31c   : > { %4371 = vmatmul.mubr.msk.bf16.vlgmr.msra.gmra.mrb[4].mxu1 %vm1089_vm5, %v5488_v56 }
 0x31d   : > { %4376 = vmatprep.mubr.msk.bf16.mxu1 %vm4989_vm2, %v4988_v50 }
 0x31e   : > { %v1069_v14 = vpop.trf.xlu0 }
 0x31f   : > { %v1083_v17 = vpack.c.bf16 %v1069_v14, %v1068_v12 }
 0x3ef   : > { %v1127_v61 = vpop.f32.mrb[4].mxu1 }
 0x3f0   : > { %v1133_v63 = vmul.f32 0.25, %v1127_v61  ;;  %v4372_v0 = vpop.f32.mrb[5].mxu1 }
 0x3f1   : > { %v1130_v1 = vpop.f32.mrb[6].mxu1 }
 0x3f2   : > { %v4373_v2 = vpop.f32.mrb[7].mxu1  ;;  %v1134_v3 = vadd.f32 %v1133_v63, %v5508_v62 }
 0x3f4   : > { %v1136_v4 = vsel %vm1135_vm9, %v1134_v3, -inf }
 0x3f5   : > { %1137 = vmax.xlane.f32.xlu1 %v1136_v4 }
 0x482   : > { %v1138_v5 = vpop.xlane.xlu1 %1137 }
 0x483   : > { %v1139_v6 = vsub.f32 %v1134_v3, %v1138_v5 }
 0x485   : > { %v1140_v7 = vmul.f32 1.442695, %v1139_v6 }
 0x487   : > { %4853 = vpow2.f32 %v1140_v7 }
 0x491   : > { %v4854_v8 = vpop.eup %4853 }
 0x492   : > { %v1142_v9 = vsel %vm1135_vm9, %v4854_v8, 0.0 }
 0x493   : > { %1143 = vadd.xlane.f32.xlu1 %v1142_v9  ;;  %v4801_v9 = vld [vmem:[%s6075_s12] sm:$0xff]  }
 0x4a4   : > { %1149 = vrot.lane.b32.xlu1 %v5488_v56, %s4991_s22 }
 0x4a8   : > { %1256 = vrot.lane.b32.xlu1 %v5488_v56, %s4992_s21 }
 0x520   : > { %v1144_v10 = vpop.xlane.xlu1 %1143 }
 0x521   : > { %4855 = vrcp.f32 %v1144_v10  ;;  %v4802_v10 = vld [vmem:[%s6075_s12 + $0x8] sm:$0xff]  }
 0x524   : > { %v1150_v11 = vpop.permute.xlu1 %1149 }
 0x525   : > { %v1157_v13 = vsel %vm1155_vm10, %v1150_v11, 0 }
 0x526   : > { %4375 = vmatpush3.bf16.msra.mxu1 %v1157_v13 }
 0x527   : > { %4386 = vmatprep.subr.bf16.mxu1 %v4988_v50 }
 0x528   : > { %v1257_v19 = vpop.permute.xlu1 %1256 }
 0x52b   : > { %v4856_v15 = vpop.eup %4855 }
 0x52c   : > { %v1146_v16 = vmul.f32 %v4856_v15, %v4854_v8  ;;  %v3918_v15 = vld [vmem:[%s6073_s10] ss:$0 sm:$0xff] }
 0x52e   : > { %v1147_v18 = vpack.c.bf16 %v1146_v16, %v1146_v16 }
 0x530   : > { %4377 = vmatmul.mubr.msk.bf16.vlgmr.msra.gmra.mrb[8].mxu1 %vm1151_vm11, %v1147_v18 }
 0x531   : > { %4387 = vmatpush3.bf16.msra.mxu1 %v1083_v17  ;;  %4388 = vmatprep.mubr.msk.bf16.mxu1 %vm4989_vm2, %v4988_v50  ;;  %v3919_v17 = vld [vmem:[%s6108_s24] ss:$0 sm:$0xff] }
 0x532   : > { %4398 = vmatprep.subr.bf16.mxu1 %v4988_v50 }
 0x538   : > { %4389 = vmatmul.mubr.msk.bf16.vlgmr.msra.gmra.mrb[12].mxu1 %vm1089_vm5, %v1257_v19 }
 0x539   : > { %4400 = vmatprep.mubr.msk.bf16.mxu1 %vm4989_vm2, %v4988_v50  ;;  %4399 = vmatpush3.bf16.msra.mxu1 %v4800_v49 }
 0x53a   : > { %4412 = vmatprep.subr.bf16.mxu1 %v4988_v50 }
 0x603   : > { %v1193_v21 = vpop.f32.mrb[8].mxu1 }
 0x604   : > { %v1199_v22 = vpack.c.bf16 %v1193_v21, %v1193_v21  ;;  %v4378_v23 = vpop.f32.mrb[9].mxu1  ;;  %v4804_v21 = vld [vmem:[%s6077_s14 + $0x8] sm:$0xff]  }
 0x605   : > { %v1196_v24 = vpop.f32.mrb[10].mxu1  ;;  %v4806_v23 = vld [vmem:[%s6077_s14 + $0x18] sm:$0xff]  }
 0x606   : > { %v4379_v25 = vpop.f32.mrb[11].mxu1  ;;  %4383 = vmatmul.mubr.msk.bf16.vlgmr.msra.gmra.mrb[8].mxu0 %vm1089_vm5, %v1199_v22  ;;  %v4805_v22 = vld [vmem:[%s6077_s14 + $0x10] sm:$0xff]   ;;  %v4807_v24 = vld [vmem:[%s6077_s14 + $0x20] sm:$0xff]  }
 0x607   : > { %4394 = vmatprep.mubr.msk.bf16.mxu0 %vm4989_vm2, %v4988_v50  ;;  %v4808_v25 = vld [vmem:[%s6077_s14 + $0x28] sm:$0xff]  }
 0x60b   : > { %v1295_v26 = vpop.f32.mrb[12].mxu1 }
 0x60c   : > { %v1301_v27 = vmul.f32 0.25, %v1295_v26  ;;  %v4390_v28 = vpop.f32.mrb[13].mxu1  ;;  %v4809_v26 = vld [vmem:[%s6077_s14 + $0x30] sm:$0xff]  }
 0x60d   : > { %v1298_v29 = vpop.f32.mrb[14].mxu1  ;;  %v3920_v28 = vld [vmem:[%s6076_s13] ss:$0 sm:$0xff] }
 0x60e   : > { %v4391_v30 = vpop.f32.mrb[15].mxu1  ;;  %v1302_v31 = vadd.f32 %v1301_v27, %v5508_v62  ;;  %v4810_v27 = vld [vmem:[%s6077_s14 + $0x38] sm:$0xff]  }
 0x610   : > { %v1303_v32 = vsel %vm1135_vm9, %v1302_v31, -inf }
 0x611   : > { %1304 = vmax.xlane.f32.xlu1 %v1303_v32 }
 0x622   : > { %1315 = vrot.lane.b32.xlu1 %v5488_v56, %s4993_s19  ;;  %v3913_v56 = vld [vmem:[%s6072_s9] ss:$0 sm:$0xff] }
 0x69e   : > { %v1305_v33 = vpop.xlane.xlu1 %1304 }
 0x69f   : > { %v1306_v34 = vsub.f32 %v1302_v31, %v1305_v33 }
 0x6a1   : > { %v1307_v35 = vmul.f32 1.442695, %v1306_v34 }
 0x6a2   : > { %v1316_v36 = vpop.permute.xlu1 %1315 }
 0x6a3   : > { %4857 = vpow2.f32 %v1307_v35  ;;  %v1321_v37 = vsel %vm1155_vm10, %v1316_v36, 0 }
 0x6a4   : > { %4393 = vmatpush3.bf16.msra.mxu0 %v1321_v37 }
 0x6a5   : > { %4404 = vmatprep.subr.bf16.mxu0 %v4988_v50 }
 0x6ad   : > { %v4858_v38 = vpop.eup %4857 }
 0x6ae   : > { %v1309_v39 = vsel %vm1135_vm9, %v4858_v38, 0.0 }
 0x6af   : > { %1310 = vadd.xlane.f32.xlu0 %v1309_v39 }
 0x6d9   : > { %v1243_v40 = vpop.f32.mrb[8].mxu0 }
 0x6da   : > { %v4384_v41 = vpop.f32.mrb[9].mxu0  ;;  %v1255_v57 = vadd.f32 %v3913_v56, %v1243_v40 }
 0x6db   : > { %v1246_v42 = vpop.f32.mrb[10].mxu0 }
 0x6dc   : > { %v4385_v44 = vpop.f32.mrb[11].mxu0 }
 0x73c   : > { %v1311_v45 = vpop.xlane.xlu0 %1310 }
 0x73d   : > { %4859 = vrcp.f32 %v1311_v45  ;;  %v3924_v45 = vld [vmem:[%s6078_s15] ss:$0 sm:$0xff] }
 0x747   : > { %v4860_v46 = vpop.eup %4859 }
 0x748   : > { %v1313_v47 = vmul.f32 %v4860_v46, %v4858_v38 }
 0x74a   : > { %v1314_v48 = vpack.c.bf16 %v1313_v47, %v1313_v47 }
 0x74c   : > { %4395 = vmatmul.mubr.msk.bf16.vlgmr.msra.gmra.mrb[12].mxu0 %vm1151_vm11, %v1314_v48 }
 0x74d   : > { %4408 = vmatprep.mubr.msk.bf16.mxu0 %vm4989_vm2, %v4988_v50  ;;  %4405 = vmatpush3.bf16.msra.mxu0 %v4801_v9 }
 0x74e   : > { %4406 = vmatprep.subr.bf16.mxu0 %v4988_v50 }
 0x751   : > { %4407 = vmatpush3.bf16.msra.mxu0 %v4802_v10  ;;  %v3940_v10 = vld [vmem:[%s6070_s7 + $0x1] ss:$0 sm:$0xff] }
 0x752   : > { %4432 = vmatprep.subr.bf16.mxu0 %v4988_v50 }
 0x81f   : > { %v1357_v51 = vpop.f32.mrb[12].mxu0 }
 0x820   : > { %v1363_v52 = vpack.c.bf16 %v1357_v51, %v1357_v51  ;;  %v4396_v53 = vpop.f32.mrb[13].mxu0 }
 0x821   : > { %v1360_v54 = vpop.f32.mrb[14].mxu0 }
 0x822   : > { %v4397_v55 = vpop.f32.mrb[15].mxu0  ;;  %4401 = vmatmul.mubr.msk.bf16.vlgmr.msra.gmra.mrb[16].mxu1 %vm1089_vm5, %v1363_v52 }
 0x823   : > { %4428 = vmatprep.mubr.msk.bf16.mxu1 %vm4989_vm2, %v4988_v50 }
 0x8f5   : > { %v1407_v59 = vpop.f32.mrb[16].mxu1 }
 0x8f6   : > { %v1413_v61 = vadd.f32 %v1407_v59, %v1255_v57  ;;  %v4402_v63 = vpop.f32.mrb[17].mxu1 }
 0x8f7   : > { %v1410_v0 = vpop.f32.mrb[18].mxu1  ;;  %v4812_v63 = vld [vmem:[%s6069_s6 + $0x18] sm:$0xff]  }
 0x8f8   : > { %v4403_v1 = vpop.f32.mrb[19].mxu1  ;;  %v1414_v2 = vadd.f32 %v1413_v61, %v5477_v43  ;;  %v4803_v43 = vld [vmem:[%s6077_s14] sm:$0xff]   ;;  %v4811_v61 = vld [vmem:[%s6069_s6 + $0x10] sm:$0xff]  }
 0x8f9   : > { %4413 = vmatpush3.bf16.msra.mxu1 %v4803_v43 }
 0x8fa   : > { %v1418_v3 = vsel %vm1417_vm12, %v1414_v2, 0.0  ;;  %4414 = vmatprep.subr.bf16.mxu1 %v4988_v50 }
 0x8fb   : > { %1419 = vadd.xlane.f32.xlu1 %v1418_v3 }
 0x8fd   : > { %4415 = vmatpush3.bf16.msra.mxu1 %v4804_v21 }
 0x8fe   : > { %4416 = vmatprep.subr.bf16.mxu1 %v4988_v50 }
 0x901   : > { %4417 = vmatpush3.bf16.msra.mxu1 %v4805_v22 }
 0x902   : > { %4418 = vmatprep.subr.bf16.mxu1 %v4988_v50 }
 0x905   : > { %4419 = vmatpush3.bf16.msra.mxu1 %v4806_v23 }
 0x906   : > { %4420 = vmatprep.subr.bf16.mxu1 %v4988_v50 }
 0x909   : > { %4421 = vmatpush3.bf16.msra.mxu1 %v4807_v24 }
 0x90a   : > { %4422 = vmatprep.subr.bf16.mxu1 %v4988_v50 }
 0x90d   : > { %4423 = vmatpush3.bf16.msra.mxu1 %v4808_v25 }
 0x90e   : > { %4424 = vmatprep.subr.bf16.mxu1 %v4988_v50 }
 0x911   : > { %4425 = vmatpush3.bf16.msra.mxu1 %v4809_v26 }
 0x912   : > { %4426 = vmatprep.subr.bf16.mxu1 %v4988_v50 }
 0x915   : > { %4427 = vmatpush3.bf16.msra.mxu1 %v4810_v27 }
 0x916   : > { %4458 = vmatprep.subr.bf16.mxu1 %v4988_v50 }
 0x988   : > { %v1420_v4 = vpop.xlane.xlu1 %1419 }
 0x989   : > { %v1422_v5 = vmul.f32 0.03125, %v1420_v4  ;;  %v3933_v4 = vld [vmem:[%s6079_s16] ss:$0 sm:$0xff] }
 0x98b   : > { %v1423_v6 = vsub.f32 %v1414_v2, %v1422_v5 }
 0x98d   : > { %v1424_v7 = vmul.f32 %v1423_v6, %v1423_v6 }
 0x98f   : > { %v1425_v8 = vsel %vm1417_vm12, %v1424_v7, 0.0 }
 0x990   : > { %1426 = vadd.xlane.f32.xlu0 %v1425_v8 }
 0xa1d   : > { %v1427_v11 = vpop.xlane.xlu0 %1426 }
 0xa1e   : > { %v1428_v12 = vmul.f32 0.03125, %v1427_v11 }
 0xa20   : > { %v1429_v13 = vadd.f32 1e-05, %v1428_v12 }
 0xa22   : > { %4861 = vrsqrt.f32 %v1429_v13 }
 0xa2c   : > { %v4862_v14 = vpop.eup %4861 }
 0xa2d   : > { %v1431_v16 = vmul.f32 %v4862_v14, %v1423_v6  ;;  %v3934_v6 = vld [vmem:[%s6080_s17] ss:$0 sm:$0xff] }
 0xa2f   : > { %v1438_v18 = vmul.f32 %v3918_v15, %v1431_v16 }
 0xa31   : > { %v1445_v19 = vadd.f32 %v3919_v17, %v1438_v18 }
 0xa33   : > { %v1446_v20 = vpack.c.bf16 %v1445_v19, %v1445_v19 }
 0xa35   : > { %4409 = vmatmul.mubr.msk.bf16.vlgmr.msra.gmra.mrb[16].mxu0 %vm1001_vm4, %v1446_v20 }
 0xa36   : > { %4436 = vmatprep.mubr.msk.bf16.mxu0 %vm4989_vm2, %v4988_v50  ;;  %4433 = vmatpush3.bf16.msra.mxu0 %v4811_v61 }
 0xa37   : > { %4434 = vmatprep.subr.bf16.mxu0 %v4988_v50 }
 0xa3a   : > { %4435 = vmatpush3.bf16.msra.mxu0 %v4812_v63 }
 0xa3b   : > { %4440 = vmatprep.subr.bf16.mxu0 %v4988_v50 }
 0xb08   : > { %v1507_v29 = vpop.f32.mrb[16].mxu0 }
 0xb09   : > { %v1508_v30 = vadd.f32 %v3920_v28, %v1507_v29  ;;  %v4410_v31 = vpop.f32.mrb[17].mxu0 }
 0xb0a   : > { %v1510_v32 = vpop.f32.mrb[18].mxu0 }
 0xb0b   : > { %v1514_v33 = vmul.f32 0.044715, %v1508_v30  ;;  %v4411_v34 = vpop.f32.mrb[19].mxu0  ;;  %v1513_v40 = vmul.f32 0.5, %v1508_v30 }
 0xb0d   : > { %v1515_v35 = vmul.f32 %v1514_v33, %v1508_v30 }
 0xb0f   : > { %v1516_v36 = vmul.f32 %v1515_v35, %v1508_v30 }
 0xb11   : > { %v1517_v37 = vadd.f32 %v1516_v36, %v1508_v30 }
 0xb13   : > { %v1518_v38 = vmul.f32 0.7978846, %v1517_v37 }
 0xb15   : > { %4863 = vtanh.f32 %v1518_v38 }
 0xb1f   : > { %v4864_v39 = vpop.eup %4863 }
 0xb20   : > { %v1520_v41 = vadd.f32 1.0, %v4864_v39 }
 0xb22   : > { %v1521_v42 = vmul.f32 %v1520_v41, %v1513_v40 }
 0xb24   : > { %v1522_v44 = vpack.c.bf16 %v1521_v42, %v1521_v42 }
 0xb26   : > { %4429 = vmatmul.mubr.bf16.vlgmr.msra.gmra.mrb[20].mxu1 %v1522_v44 }
 0xb27   : > { %4460 = vmatprep.mubr.msk.bf16.mxu1 %vm4989_vm2, %v4988_v50 }
 0xbf9   : > { %v1628_v46 = vpop.f32.mrb[20].mxu1 }
 0xbfa   : > { %v1629_v47 = vadd.f32 %v3924_v45, %v1628_v46  ;;  %v4430_v48 = vpop.f32.mrb[21].mxu1 }
 0xbfb   : > { %v1631_v49 = vpop.f32.mrb[22].mxu1 }
 0xbfc   : > { %v4431_v51 = vpop.f32.mrb[23].mxu1  ;;  %v1634_v52 = vadd.f32 %v1629_v47, %v1445_v19 }
 0xbfe   : > { %v1637_v53 = vsel %vm1417_vm12, %v1634_v52, 0.0 }
 0xbff   : > { %1638 = vadd.xlane.f32.xlu0 %v1637_v53 }
 0xc8c   : > { %v1639_v54 = vpop.xlane.xlu0 %1638 }
 0xc8d   : > { %v1640_v55 = vmul.f32 0.03125, %v1639_v54 }
 0xc8f   : > { %v1641_v56 = vsub.f32 %v1634_v52, %v1640_v55  ;;  %v4813_v55 = vld [vmem:[%s6071_s8 + $0x10] sm:$0xff]  }
 0xc91   : > { %v1642_v57 = vmul.f32 %v1641_v56, %v1641_v56 }
 0xc93   : > { %v1643_v59 = vsel %vm1417_vm12, %v1642_v57, 0.0 }
 0xc94   : > { %1644 = vadd.xlane.f32.xlu0 %v1643_v59 }
 0xd21   : > { %v1645_v0 = vpop.xlane.xlu0 %1644 }
 0xd22   : > { %v1646_v1 = vmul.f32 0.03125, %v1645_v0 }
 0xd24   : > { %v1647_v2 = vadd.f32 1e-05, %v1646_v1 }
 0xd26   : > { %4865 = vrsqrt.f32 %v1647_v2 }
 0xd30   : > { %v4866_v3 = vpop.eup %4865 }
 0xd31   : > { %v1649_v5 = vmul.f32 %v4866_v3, %v1641_v56 }
 0xd33   : > { %v1656_v7 = vmul.f32 %v3933_v4, %v1649_v5 }
 0xd35   : > { %v5629_v8 = vadd.f32 %v3934_v6, %v1656_v7  ;;  %v4814_v7 = vld [vmem:[%s6071_s8 + $0x18] sm:$0xff]  }
 0xd37   : > { %v1664_v9 = vpack.c.bf16 %v5629_v8, %v5629_v8 }
 0xd39   : > { %4437 = vmatmul.mubr.msk.bf16.vlgmr.msra.gmra.mrb[20].mxu0 %vm1001_vm4, %v1664_v9 }
 0xd3a   : > { %4442 = vmatprep.mubr.msk.bf16.mxu0 %vm4989_vm2, %v4988_v50 }
 0xe0c   : > { %v1727_v43 = vpop.f32.mrb[20].mxu0 }
 0xe0d   : > { %v1728_v11 = vadd.f32 %v3940_v10, %v1727_v43  ;;  %v4438_v12 = vpop.f32.mrb[21].mxu0 }
 0xe0e   : > { %v1730_v13 = vpop.f32.mrb[22].mxu0 }
 0xe0f   : > { %1735 = vrot.lane.b32.xlu0 %v1728_v11, %s4990_s29  ;;  %v4439_v14 = vpop.f32.mrb[23].mxu0  ;;  %v1733_v15 = vpack.c.bf16 %v1728_v11, %v1728_v11 }
 0xe13   : > { %1942 = vrot.lane.b32.xlu0 %v1733_v15, %s4992_s21 }
 0xe81   : > { %v1736_v16 = vpop.permute.xlu0 %1735 }
 0xe82   : > { %1738 = vxpose.xlu1.b32.start.end [1/1] (short) (narrow) %v1736_v16, 32 }
 0xe85   : > { %v1943_v23 = vpop.permute.xlu0 %1942 }
 0xf02   : > { %v1754_v17 = vpop.trf.xlu1 }
 0xf06   : > { %v1755_v18 = vpop.trf.xlu1 }
 0xf07   : > { %v1770_v19 = vpack.c.bf16 %v1755_v18, %v1754_v17  ;;  %v3953_v17 = vld [vmem:[%s6072_s9 + $0x1] ss:$0 sm:$0xff] }
 0xf09   : > { %4441 = vmatpush3.bf16.msra.mxu0 %v1770_v19 }
 0xf0a   : > { %v1756_v20 = vpop.trf.xlu1  ;;  %4446 = vmatprep.subr.bf16.mxu0 %v4988_v50 }
 0xf0c   : > { %4443 = vmatmul.mubr.msk.bf16.vlgmr.msra.gmra.mrb[24].mxu0 %vm1089_vm5, %v1733_v15 }
 0xf0d   : > { %4448 = vmatprep.mubr.msk.bf16.mxu0 %vm4989_vm2, %v4988_v50 }
 0xf0e   : > { %v1757_v21 = vpop.trf.xlu1 }
 0xf0f   : > { %v1771_v22 = vpack.c.bf16 %v1757_v21, %v1756_v20 }
 0xf11   : > { %4459 = vmatpush3.bf16.msra.mxu1 %v1771_v22 }
 0xf12   : > { %4470 = vmatprep.subr.bf16.mxu1 %v4988_v50 }
 0xf14   : > { %4461 = vmatmul.mubr.msk.bf16.vlgmr.msra.gmra.mrb[24].mxu1 %vm1089_vm5, %v1943_v23 }
 0xf15   : > { %4472 = vmatprep.mubr.msk.bf16.mxu1 %vm4989_vm2, %v4988_v50  ;;  %4471 = vmatpush3.bf16.msra.mxu1 %v4814_v7  ;;  %v3988_v7 = vld [vmem:[%s6078_s15 + $0x1] ss:$0 sm:$0xff] }
 0xf16   : > { %4484 = vmatprep.subr.bf16.mxu1 %v4988_v50 }
 0xfdf   : > { %v1816_v24 = vpop.f32.mrb[24].mxu0 }
 0xfe0   : > { %v1822_v25 = vmul.f32 0.25, %v1816_v24  ;;  %v4444_v26 = vpop.f32.mrb[25].mxu0 }
 0xfe1   : > { %v1819_v27 = vpop.f32.mrb[26].mxu0 }
 0xfe2   : > { %v4445_v28 = vpop.f32.mrb[27].mxu0  ;;  %v1823_v29 = vadd.f32 %v1822_v25, %v5508_v62 }
 0xfe4   : > { %v1824_v30 = vsel %vm1135_vm9, %v1823_v29, -inf }
 0xfe5   : > { %1825 = vmax.xlane.f32.xlu0 %v1824_v30 }
 0xfe7   : > { %v1981_v31 = vpop.f32.mrb[24].mxu1 }
 0xfe8   : > { %v1987_v32 = vmul.f32 0.25, %v1981_v31  ;;  %v4462_v33 = vpop.f32.mrb[25].mxu1  ;;  %v4815_v31 = vld [vmem:[%s6075_s12 + $0x10] sm:$0xff]  }
 0xfe9   : > { %v1984_v34 = vpop.f32.mrb[26].mxu1 }
 0xfea   : > { %v4463_v35 = vpop.f32.mrb[27].mxu1  ;;  %v1988_v36 = vadd.f32 %v1987_v32, %v5508_v62  ;;  %v4816_v32 = vld [vmem:[%s6075_s12 + $0x18] sm:$0xff]  }
 0xfec   : > { %v1989_v37 = vsel %vm1135_vm9, %v1988_v36, -inf }
 0xfed   : > { %1990 = vmax.xlane.f32.xlu1 %v1989_v37  ;;  %v3960_v37 = vld [vmem:[%s6073_s10 + $0x1] ss:$0 sm:$0xff] }
0x1072   : > { %v1826_v38 = vpop.xlane.xlu0 %1825 }
0x1073   : > { %v1827_v39 = vsub.f32 %v1823_v29, %v1826_v38 }
0x1075   : > { %v1828_v40 = vmul.f32 1.442695, %v1827_v39  ;;  %v3961_v39 = vld [vmem:[%s6108_s24 + $0x1] ss:$0 sm:$0xff] }
0x1077   : > { %4867 = vpow2.f32 %v1828_v40 }
0x107a   : > { %v1991_v44 = vpop.xlane.xlu1 %1990 }
0x107b   : > { %v1992_v45 = vsub.f32 %v1988_v36, %v1991_v44  ;;  %v4818_v44 = vld [vmem:[%s6077_s14 + $0x48] sm:$0xff]  }
0x107d   : > { %v1993_v46 = vmul.f32 1.442695, %v1992_v45  ;;  %v4819_v45 = vld [vmem:[%s6077_s14 + $0x50] sm:$0xff]  }
0x107f   : > { %4869 = vpow2.f32 %v1993_v46  ;;  %v4820_v46 = vld [vmem:[%s6077_s14 + $0x58] sm:$0xff]  }
0x1081   : > { %v4868_v41 = vpop.eup %4867 }
0x1082   : > { %v1830_v42 = vsel %vm1135_vm9, %v4868_v41, 0.0 }
0x1083   : > { %1831 = vadd.xlane.f32.xlu0 %v1830_v42 }
0x1089   : > { %v4870_v47 = vpop.eup %4869 }
0x108a   : > { %v1995_v48 = vsel %vm1135_vm9, %v4870_v47, 0.0 }
0x1099   : > { %1837 = vrot.lane.b32.xlu0 %v1733_v15, %s4991_s22 }
0x10b8   : > { %1996 = vadd.xlane.f32.xlu0 %v1995_v48  ;;  %v4822_v48 = vld [vmem:[%s6077_s14 + $0x68] sm:$0xff]  }
0x10ce   : > { %2001 = vrot.lane.b32.xlu0 %v1733_v15, %s4993_s19 }
0x1110   : > { %v1832_v49 = vpop.xlane.xlu0 %1831 }
0x1111   : > { %4871 = vrcp.f32 %v1832_v49  ;;  %v4823_v49 = vld [vmem:[%s6077_s14 + $0x70] sm:$0xff]  }
0x1114   : > { %v1838_v51 = vpop.permute.xlu0 %1837 }
0x1115   : > { %v1843_v52 = vsel %vm1155_vm10, %v1838_v51, 0  ;;  %v4824_v51 = vld [vmem:[%s6077_s14 + $0x78] sm:$0xff]  }
0x1116   : > { %4447 = vmatpush3.bf16.msra.mxu0 %v1843_v52  ;;  %v3967_v52 = vld [vmem:[%s6076_s13 + $0x1] ss:$0 sm:$0xff] }
0x1117   : > { %4452 = vmatprep.subr.bf16.mxu0 %v4988_v50 }
0x111b   : > { %v4872_v53 = vpop.eup %4871 }
0x111c   : > { %v1834_v54 = vmul.f32 %v4872_v53, %v4868_v41 }
0x111e   : > { %v1835_v56 = vpack.c.bf16 %v1834_v54, %v1834_v54 }
0x1120   : > { %4449 = vmatmul.mubr.msk.bf16.vlgmr.msra.gmra.mrb[28].mxu0 %vm1151_vm11, %v1835_v56 }
0x1121   : > { %4453 = vmatpush3.bf16.msra.mxu0 %v4813_v55  ;;  %4454 = vmatprep.mubr.msk.bf16.mxu0 %vm4989_vm2, %v4988_v50 }
0x1122   : > { %4464 = vmatprep.subr.bf16.mxu0 %v4988_v50 }
0x1145   : > { %v1997_v57 = vpop.xlane.xlu0 %1996 }
0x1146   : > { %4873 = vrcp.f32 %v1997_v57 }
0x1149   : > { %v2002_v59 = vpop.permute.xlu0 %2001 }
0x114a   : > { %v2007_v3 = vsel %vm1155_vm10, %v2002_v59, 0 }
0x1150   : > { %v4874_v1 = vpop.eup %4873 }
0x1151   : > { %v1999_v5 = vmul.f32 %v4874_v1, %v4870_v47  ;;  %v4821_v47 = vld [vmem:[%s6077_s14 + $0x60] sm:$0xff]  }
0x1153   : > { %v2000_v6 = vpack.c.bf16 %v1999_v5, %v1999_v5 }
0x11f3   : > { %v1879_v61 = vpop.f32.mrb[28].mxu0 }
0x11f4   : > { %v1885_v63 = vpack.c.bf16 %v1879_v61, %v1879_v61  ;;  %v4450_v0 = vpop.f32.mrb[29].mxu0 }
0x11f5   : > { %v1882_v2 = vpop.f32.mrb[30].mxu0 }
0x11f6   : > { %v4451_v4 = vpop.f32.mrb[31].mxu0  ;;  %4455 = vmatmul.mubr.msk.bf16.vlgmr.msra.gmra.mrb[32].mxu0 %vm1089_vm5, %v1885_v63 }
0x11f7   : > { %4465 = vmatpush3.bf16.msra.mxu0 %v2007_v3  ;;  %4466 = vmatprep.mubr.msk.bf16.mxu0 %vm4989_vm2, %v4988_v50 }
0x11f8   : > { %4476 = vmatprep.subr.bf16.mxu0 %v4988_v50 }
0x11fe   : > { %4467 = vmatmul.mubr.msk.bf16.vlgmr.msra.gmra.mrb[36].mxu0 %vm1151_vm11, %v2000_v6 }
0x11ff   : > { %4480 = vmatprep.mubr.msk.bf16.mxu0 %vm4989_vm2, %v4988_v50  ;;  %4477 = vmatpush3.bf16.msra.mxu0 %v4815_v31 }
0x1200   : > { %4478 = vmatprep.subr.bf16.mxu0 %v4988_v50 }
0x1203   : > { %4479 = vmatpush3.bf16.msra.mxu0 %v4816_v32  ;;  %v4006_v32 = vld [vmem:[%s6070_s7 + $0x2] ss:$0 sm:$0xff] }
0x1204   : > { %4504 = vmatprep.subr.bf16.mxu0 %v4988_v50 }
0x12c9   : > { %v1929_v9 = vpop.f32.mrb[32].mxu0 }
0x12ca   : > { %v4456_v10 = vpop.f32.mrb[33].mxu0  ;;  %v1941_v18 = vadd.f32 %v3953_v17, %v1929_v9 }
0x12cb   : > { %v1932_v43 = vpop.f32.mrb[34].mxu0 }
0x12cc   : > { %v4457_v11 = vpop.f32.mrb[35].mxu0 }
0x12d1   : > { %v2043_v12 = vpop.f32.mrb[36].mxu0 }
0x12d2   : > { %v2049_v13 = vpack.c.bf16 %v2043_v12, %v2043_v12  ;;  %v4468_v14 = vpop.f32.mrb[37].mxu0 }
0x12d3   : > { %v2046_v15 = vpop.f32.mrb[38].mxu0 }
0x12d4   : > { %v4469_v16 = vpop.f32.mrb[39].mxu0  ;;  %4473 = vmatmul.mubr.msk.bf16.vlgmr.msra.gmra.mrb[28].mxu1 %vm1089_vm5, %v2049_v13 }
0x12d5   : > { %4500 = vmatprep.mubr.msk.bf16.mxu1 %vm4989_vm2, %v4988_v50 }
0x13a7   : > { %v2093_v19 = vpop.f32.mrb[28].mxu1 }
0x13a8   : > { %v2099_v20 = vadd.f32 %v2093_v19, %v1941_v18  ;;  %v4474_v21 = vpop.f32.mrb[29].mxu1 }
0x13a9   : > { %v2096_v22 = vpop.f32.mrb[30].mxu1  ;;  %v4826_v21 = vld [vmem:[%s6069_s6 + $0x28] sm:$0xff]  }
0x13aa   : > { %v4475_v23 = vpop.f32.mrb[31].mxu1  ;;  %v2100_v24 = vadd.f32 %v2099_v20, %v5629_v8  ;;  %v4817_v8 = vld [vmem:[%s6077_s14 + $0x40] sm:$0xff]  }
0x13ab   : > { %4485 = vmatpush3.bf16.msra.mxu1 %v4817_v8  ;;  %v4825_v20 = vld [vmem:[%s6069_s6 + $0x20] sm:$0xff]  }
0x13ac   : > { %v2105_v25 = vsel %vm1417_vm12, %v2100_v24, 0.0  ;;  %4486 = vmatprep.subr.bf16.mxu1 %v4988_v50 }
0x13ad   : > { %2106 = vadd.xlane.f32.xlu1 %v2105_v25 }
0x13af   : > { %4487 = vmatpush3.bf16.msra.mxu1 %v4818_v44 }
0x13b0   : > { %4488 = vmatprep.subr.bf16.mxu1 %v4988_v50 }
0x13b3   : > { %4489 = vmatpush3.bf16.msra.mxu1 %v4819_v45 }
0x13b4   : > { %4490 = vmatprep.subr.bf16.mxu1 %v4988_v50 }
0x13b7   : > { %4491 = vmatpush3.bf16.msra.mxu1 %v4820_v46 }
0x13b8   : > { %4492 = vmatprep.subr.bf16.mxu1 %v4988_v50 }
0x13bb   : > { %4493 = vmatpush3.bf16.msra.mxu1 %v4821_v47 }
0x13bc   : > { %4494 = vmatprep.subr.bf16.mxu1 %v4988_v50 }
0x13bf   : > { %4495 = vmatpush3.bf16.msra.mxu1 %v4822_v48 }
0x13c0   : > { %4496 = vmatprep.subr.bf16.mxu1 %v4988_v50 }
0x13c3   : > { %4497 = vmatpush3.bf16.msra.mxu1 %v4823_v49 }
0x13c4   : > { %4498 = vmatprep.subr.bf16.mxu1 %v4988_v50 }
0x13c7   : > { %4499 = vmatpush3.bf16.msra.mxu1 %v4824_v51 }
0x13c8   : > { %4530 = vmatprep.subr.bf16.mxu1 %v4988_v50 }
0x143a   : > { %v2107_v26 = vpop.xlane.xlu1 %2106 }
0x143b   : > { %v2108_v27 = vmul.f32 0.03125, %v2107_v26  ;;  %v3999_v26 = vld [vmem:[%s6079_s16 + $0x1] ss:$0 sm:$0xff] }
0x143d   : > { %v2109_v28 = vsub.f32 %v2100_v24, %v2108_v27 }
0x143f   : > { %v2110_v29 = vmul.f32 %v2109_v28, %v2109_v28 }
0x1441   : > { %v2111_v30 = vsel %vm1417_vm12, %v2110_v29, 0.0 }
0x1442   : > { %2112 = vadd.xlane.f32.xlu1 %v2111_v30 }
0x14cf   : > { %v2113_v33 = vpop.xlane.xlu1 %2112 }
0x14d0   : > { %v2114_v34 = vmul.f32 0.03125, %v2113_v33 }
0x14d2   : > { %v2115_v35 = vadd.f32 1e-05, %v2114_v34 }
0x14d4   : > { %4875 = vrsqrt.f32 %v2115_v35 }
0x14de   : > { %v4876_v36 = vpop.eup %4875 }
0x14df   : > { %v2117_v38 = vmul.f32 %v4876_v36, %v2109_v28  ;;  %v4000_v28 = vld [vmem:[%s6080_s17 + $0x1] ss:$0 sm:$0xff] }
0x14e1   : > { %v2124_v40 = vmul.f32 %v3960_v37, %v2117_v38 }
0x14e3   : > { %v2131_v41 = vadd.f32 %v3961_v39, %v2124_v40 }
0x14e5   : > { %v2132_v42 = vpack.c.bf16 %v2131_v41, %v2131_v41 }
0x14e7   : > { %4481 = vmatmul.mubr.msk.bf16.vlgmr.msra.gmra.mrb[40].mxu0 %vm1001_vm4, %v2132_v42 }
0x14e8   : > { %4508 = vmatprep.mubr.msk.bf16.mxu0 %vm4989_vm2, %v4988_v50  ;;  %4505 = vmatpush3.bf16.msra.mxu0 %v4825_v20 }
0x14e9   : > { %4506 = vmatprep.subr.bf16.mxu0 %v4988_v50 }
0x14ec   : > { %4507 = vmatpush3.bf16.msra.mxu0 %v4826_v21 }
0x14ed   : > { %4512 = vmatprep.subr.bf16.mxu0 %v4988_v50 }
0x15ba   : > { %v2195_v53 = vpop.f32.mrb[40].mxu0 }
0x15bb   : > { %v2196_v54 = vadd.f32 %v3967_v52, %v2195_v53  ;;  %v4482_v55 = vpop.f32.mrb[41].mxu0 }
0x15bc   : > { %v2198_v56 = vpop.f32.mrb[42].mxu0 }
0x15bd   : > { %v2202_v57 = vmul.f32 0.044715, %v2196_v54  ;;  %v4483_v59 = vpop.f32.mrb[43].mxu0  ;;  %v2201_v3 = vmul.f32 0.5, %v2196_v54 }
0x15bf   : > { %v2203_v61 = vmul.f32 %v2202_v57, %v2196_v54 }
0x15c1   : > { %v2204_v63 = vmul.f32 %v2203_v61, %v2196_v54 }
0x15c3   : > { %v2205_v0 = vadd.f32 %v2204_v63, %v2196_v54 }
0x15c5   : > { %v2206_v1 = vmul.f32 0.7978846, %v2205_v0 }
0x15c7   : > { %4877 = vtanh.f32 %v2206_v1 }
0x15d1   : > { %v4878_v2 = vpop.eup %4877 }
0x15d2   : > { %v2208_v4 = vadd.f32 1.0, %v4878_v2 }
0x15d4   : > { %v2209_v5 = vmul.f32 %v2208_v4, %v2201_v3 }
0x15d6   : > { %v2210_v6 = vpack.c.bf16 %v2209_v5, %v2209_v5 }
0x15d8   : > { %4501 = vmatmul.mubr.bf16.vlgmr.msra.gmra.mrb[32].mxu1 %v2210_v6 }
0x15d9   : > { %4532 = vmatprep.mubr.msk.bf16.mxu1 %vm4989_vm2, %v4988_v50 }
0x16ab   : > { %v2318_v9 = vpop.f32.mrb[32].mxu1 }
0x16ac   : > { %v2319_v10 = vadd.f32 %v3988_v7, %v2318_v9  ;;  %v4502_v43 = vpop.f32.mrb[33].mxu1 }
0x16ad   : > { %v2321_v11 = vpop.f32.mrb[34].mxu1 }
0x16ae   : > { %v4503_v12 = vpop.f32.mrb[35].mxu1  ;;  %v2324_v13 = vadd.f32 %v2319_v10, %v2131_v41 }
0x16b0   : > { %v2329_v14 = vsel %vm1417_vm12, %v2324_v13, 0.0 }
0x16b1   : > { %2330 = vadd.xlane.f32.xlu1 %v2329_v14 }
0x173e   : > { %v2331_v15 = vpop.xlane.xlu1 %2330 }
0x173f   : > { %v2332_v16 = vmul.f32 0.03125, %v2331_v15 }
0x1741   : > { %v2333_v17 = vsub.f32 %v2324_v13, %v2332_v16  ;;  %v4827_v16 = vld [vmem:[%s6071_s8 + $0x20] sm:$0xff]  }
0x1743   : > { %v2334_v18 = vmul.f32 %v2333_v17, %v2333_v17 }
0x1745   : > { %v2335_v19 = vsel %vm1417_vm12, %v2334_v18, 0.0 }
0x1746   : > { %2336 = vadd.xlane.f32.xlu1 %v2335_v19 }
0x17d3   : > { %v2337_v22 = vpop.xlane.xlu1 %2336 }
0x17d4   : > { %v2338_v23 = vmul.f32 0.03125, %v2337_v22 }
0x17d6   : > { %v2339_v24 = vadd.f32 1e-05, %v2338_v23 }
0x17d8   : > { %4879 = vrsqrt.f32 %v2339_v24 }
0x17e2   : > { %v4880_v25 = vpop.eup %4879 }
0x17e3   : > { %v2341_v27 = vmul.f32 %v4880_v25, %v2333_v17 }
0x17e5   : > { %v2348_v29 = vmul.f32 %v3999_v26, %v2341_v27 }
0x17e7   : > { %v5760_v30 = vadd.f32 %v4000_v28, %v2348_v29  ;;  %v4828_v29 = vld [vmem:[%s6071_s8 + $0x28] sm:$0xff]  }
0x17e9   : > { %v2356_v31 = vpack.c.bf16 %v5760_v30, %v5760_v30 }
0x17eb   : > { %4509 = vmatmul.mubr.msk.bf16.vlgmr.msra.gmra.mrb[44].mxu0 %vm1001_vm4, %v2356_v31 }
0x17ec   : > { %4514 = vmatprep.mubr.msk.bf16.mxu0 %vm4989_vm2, %v4988_v50 }
0x18be   : > { %v2419_v8 = vpop.f32.mrb[44].mxu0 }
0x18bf   : > { %v2420_v33 = vadd.f32 %v4006_v32, %v2419_v8  ;;  %v4510_v34 = vpop.f32.mrb[45].mxu0 }
0x18c0   : > { %v2422_v35 = vpop.f32.mrb[46].mxu0 }
0x18c1   : > { %2427 = vrot.lane.b32.xlu1 %v2420_v33, %s4990_s29  ;;  %v4511_v36 = vpop.f32.mrb[47].mxu0  ;;  %v2425_v37 = vpack.c.bf16 %v2420_v33, %v2420_v33 }
0x18c5   : > { %2634 = vrot.lane.b32.xlu1 %v2425_v37, %s4992_s21 }
0x1933   : > { %v2428_v38 = vpop.permute.xlu1 %2427 }
0x1934   : > { %2430 = vxpose.xlu0.b32.start.end [1/1] (short) (narrow) %v2428_v38, 32 }
0x1937   : > { %v2635_v46 = vpop.permute.xlu1 %2634 }
0x19b4   : > { %v2446_v39 = vpop.trf.xlu0 }
0x19b8   : > { %v2447_v40 = vpop.trf.xlu0 }
0x19b9   : > { %v2462_v41 = vpack.c.bf16 %v2447_v40, %v2446_v39  ;;  %v4019_v39 = vld [vmem:[%s6072_s9 + $0x2] ss:$0 sm:$0xff] }
0x19bb   : > { %4513 = vmatpush3.bf16.msra.mxu0 %v2462_v41 }
0x19bc   : > { %v2448_v42 = vpop.trf.xlu0  ;;  %4518 = vmatprep.subr.bf16.mxu0 %v4988_v50 }
0x19be   : > { %4515 = vmatmul.mubr.msk.bf16.vlgmr.msra.gmra.mrb[48].mxu0 %vm1089_vm5, %v2425_v37 }
0x19bf   : > { %4520 = vmatprep.mubr.msk.bf16.mxu0 %vm4989_vm2, %v4988_v50 }
0x19c0   : > { %v2449_v44 = vpop.trf.xlu0 }
0x19c1   : > { %v2463_v45 = vpack.c.bf16 %v2449_v44, %v2448_v42 }
0x19c3   : > { %4531 = vmatpush3.bf16.msra.mxu1 %v2463_v45 }
0x19c4   : > { %4542 = vmatprep.subr.bf16.mxu1 %v4988_v50 }
0x19c6   : > { %4533 = vmatmul.mubr.msk.bf16.vlgmr.msra.gmra.mrb[36].mxu1 %vm1089_vm5, %v2635_v46 }
0x19c7   : > { %4544 = vmatprep.mubr.msk.bf16.mxu1 %vm4989_vm2, %v4988_v50  ;;  %4543 = vmatpush3.bf16.msra.mxu1 %v4828_v29  ;;  %v4054_v29 = vld [vmem:[%s6078_s15 + $0x2] ss:$0 sm:$0xff] }
0x19c8   : > { %4556 = vmatprep.subr.bf16.mxu1 %v4988_v50 }
0x1a91   : > { %v2508_v47 = vpop.f32.mrb[48].mxu0 }
0x1a92   : > { %v2514_v48 = vmul.f32 0.25, %v2508_v47  ;;  %v4516_v49 = vpop.f32.mrb[49].mxu0 }
0x1a93   : > { %v2511_v51 = vpop.f32.mrb[50].mxu0 }
0x1a94   : > { %v4517_v52 = vpop.f32.mrb[51].mxu0  ;;  %v2515_v53 = vadd.f32 %v2514_v48, %v5508_v62 }
0x1a96   : > { %v2516_v54 = vsel %vm1135_vm9, %v2515_v53, -inf }
0x1a97   : > { %2517 = vmax.xlane.f32.xlu1 %v2516_v54 }
0x1a99   : > { %v2673_v55 = vpop.f32.mrb[36].mxu1 }
0x1a9a   : > { %v4534_v56 = vpop.f32.mrb[37].mxu1  ;;  %v2679_v61 = vmul.f32 0.25, %v2673_v55  ;;  %v4829_v55 = vld [vmem:[%s6075_s12 + $0x20] sm:$0xff]  }
0x1a9b   : > { %v2676_v57 = vpop.f32.mrb[38].mxu1  ;;  %v4830_v56 = vld [vmem:[%s6075_s12 + $0x28] sm:$0xff]  }
0x1a9c   : > { %v4535_v59 = vpop.f32.mrb[39].mxu1  ;;  %v2680_v63 = vadd.f32 %v2679_v61, %v5508_v62 }
0x1a9e   : > { %v2681_v0 = vsel %vm1135_vm9, %v2680_v63, -inf }
0x1aa8   : > { %2529 = vrot.lane.b32.xlu1 %v2425_v37, %s4991_s22 }
0x1acc   : > { %2682 = vmax.xlane.f32.xlu1 %v2681_v0  ;;  %v4026_v0 = vld [vmem:[%s6073_s10 + $0x2] ss:$0 sm:$0xff] }
0x1b24   : > { %v2518_v1 = vpop.xlane.xlu1 %2517 }
0x1b25   : > { %v2519_v2 = vsub.f32 %v2515_v53, %v2518_v1 }
0x1b27   : > { %v2520_v3 = vmul.f32 1.442695, %v2519_v2  ;;  %v4027_v2 = vld [vmem:[%s6108_s24 + $0x2] ss:$0 sm:$0xff] }
0x1b28   : > { %v2530_v4 = vpop.permute.xlu1 %2529 }
0x1b29   : > { %4881 = vpow2.f32 %v2520_v3  ;;  %v2535_v5 = vsel %vm1155_vm10, %v2530_v4, 0 }
0x1b2a   : > { %4519 = vmatpush3.bf16.msra.mxu0 %v2535_v5 }
0x1b2b   : > { %4524 = vmatprep.subr.bf16.mxu0 %v4988_v50 }
0x1b33   : > { %v4882_v6 = vpop.eup %4881 }
0x1b34   : > { %v2522_v7 = vsel %vm1135_vm9, %v4882_v6, 0.0 }
0x1b35   : > { %2523 = vadd.xlane.f32.xlu0 %v2522_v7  ;;  %v4833_v7 = vld [vmem:[%s6077_s14 + $0x90] sm:$0xff]  }
0x1b59   : > { %v2683_v9 = vpop.xlane.xlu1 %2682 }
0x1b5a   : > { %v2684_v10 = vsub.f32 %v2680_v63, %v2683_v9  ;;  %v4834_v9 = vld [vmem:[%s6077_s14 + $0x98] sm:$0xff]  }
0x1b5c   : > { %v2685_v43 = vmul.f32 1.442695, %v2684_v10  ;;  %v4835_v10 = vld [vmem:[%s6077_s14 + $0xa0] sm:$0xff]  }
0x1b5e   : > { %4883 = vpow2.f32 %v2685_v43  ;;  %v4836_v43 = vld [vmem:[%s6077_s14 + $0xa8] sm:$0xff]  }
0x1b68   : > { %v4884_v11 = vpop.eup %4883 }
0x1b69   : > { %v2687_v12 = vsel %vm1135_vm9, %v4884_v11, 0.0 }
0x1b6a   : > { %2688 = vadd.xlane.f32.xlu0 %v2687_v12  ;;  %v4838_v12 = vld [vmem:[%s6077_s14 + $0xb8] sm:$0xff]  }
0x1b80   : > { %2693 = vrot.lane.b32.xlu0 %v2425_v37, %s4993_s19 }
0x1bc2   : > { %v2524_v13 = vpop.xlane.xlu0 %2523 }
0x1bc3   : > { %4885 = vrcp.f32 %v2524_v13  ;;  %v4033_v13 = vld [vmem:[%s6076_s13 + $0x2] ss:$0 sm:$0xff] }
0x1bcd   : > { %v4886_v14 = vpop.eup %4885 }
0x1bce   : > { %v2526_v15 = vmul.f32 %v4886_v14, %v4882_v6  ;;  %v4832_v6 = vld [vmem:[%s6077_s14 + $0x88] sm:$0xff]  }
0x1bd0   : > { %v2527_v17 = vpack.c.bf16 %v2526_v15, %v2526_v15 }
0x1bd2   : > { %4521 = vmatmul.mubr.msk.bf16.vlgmr.msra.gmra.mrb[52].mxu0 %vm1151_vm11, %v2527_v17 }
0x1bd3   : > { %4525 = vmatpush3.bf16.msra.mxu0 %v4827_v16  ;;  %4526 = vmatprep.mubr.msk.bf16.mxu0 %vm4989_vm2, %v4988_v50 }
0x1bd4   : > { %4536 = vmatprep.subr.bf16.mxu0 %v4988_v50 }
0x1bf7   : > { %v2689_v18 = vpop.xlane.xlu0 %2688 }
0x1bf8   : > { %4887 = vrcp.f32 %v2689_v18 }
0x1bfb   : > { %v2694_v19 = vpop.permute.xlu0 %2693 }
0x1bfc   : > { %v2699_v25 = vsel %vm1155_vm10, %v2694_v19, 0 }
0x1c02   : > { %v4888_v23 = vpop.eup %4887 }
0x1c03   : > { %v2691_v27 = vmul.f32 %v4888_v23, %v4884_v11  ;;  %v4837_v11 = vld [vmem:[%s6077_s14 + $0xb0] sm:$0xff]  }
0x1c05   : > { %v2692_v28 = vpack.c.bf16 %v2691_v27, %v2691_v27 }
0x1ca5   : > { %v2571_v20 = vpop.f32.mrb[52].mxu0 }
0x1ca6   : > { %v2577_v21 = vpack.c.bf16 %v2571_v20, %v2571_v20  ;;  %v4522_v22 = vpop.f32.mrb[53].mxu0 }
0x1ca7   : > { %v2574_v24 = vpop.f32.mrb[54].mxu0 }
0x1ca8   : > { %v4523_v26 = vpop.f32.mrb[55].mxu0  ;;  %4527 = vmatmul.mubr.msk.bf16.vlgmr.msra.gmra.mrb[56].mxu0 %vm1089_vm5, %v2577_v21 }
0x1ca9   : > { %4537 = vmatpush3.bf16.msra.mxu0 %v2699_v25  ;;  %4538 = vmatprep.mubr.msk.bf16.mxu0 %vm4989_vm2, %v4988_v50 }
0x1caa   : > { %4548 = vmatprep.subr.bf16.mxu0 %v4988_v50 }
0x1cb0   : > { %4539 = vmatmul.mubr.msk.bf16.vlgmr.msra.gmra.mrb[60].mxu0 %vm1151_vm11, %v2692_v28 }
0x1cb1   : > { %4552 = vmatprep.mubr.msk.bf16.mxu0 %vm4989_vm2, %v4988_v50  ;;  %4549 = vmatpush3.bf16.msra.mxu0 %v4829_v55 }
0x1cb2   : > { %4550 = vmatprep.subr.bf16.mxu0 %v4988_v50 }
0x1cb5   : > { %4551 = vmatpush3.bf16.msra.mxu0 %v4830_v56  ;;  %v4072_v56 = vld [vmem:[%s6070_s7 + $0x3] ss:$0 sm:$0xff] }
0x1cb6   : > { %4576 = vmatprep.subr.bf16.mxu0 %v4988_v50 }
0x1d7b   : > { %v2621_v31 = vpop.f32.mrb[56].mxu0 }
0x1d7c   : > { %v4528_v32 = vpop.f32.mrb[57].mxu0  ;;  %v2633_v40 = vadd.f32 %v4019_v39, %v2621_v31 }
0x1d7d   : > { %v2624_v8 = vpop.f32.mrb[58].mxu0 }
0x1d7e   : > { %v4529_v33 = vpop.f32.mrb[59].mxu0 }
0x1d83   : > { %v2735_v34 = vpop.f32.mrb[60].mxu0 }
0x1d84   : > { %v2741_v35 = vpack.c.bf16 %v2735_v34, %v2735_v34  ;;  %v4540_v36 = vpop.f32.mrb[61].mxu0 }
0x1d85   : > { %v2738_v37 = vpop.f32.mrb[62].mxu0 }
0x1d86   : > { %v4541_v38 = vpop.f32.mrb[63].mxu0  ;;  %4545 = vmatmul.mubr.msk.bf16.vlgmr.msra.gmra.mrb[40].mxu1 %vm1089_vm5, %v2741_v35 }
0x1d87   : > { %4572 = vmatprep.mubr.msk.bf16.mxu1 %vm4989_vm2, %v4988_v50 }
0x1e59   : > { %v2785_v41 = vpop.f32.mrb[40].mxu1 }
0x1e5a   : > { %v2791_v42 = vadd.f32 %v2785_v41, %v2633_v40  ;;  %v4546_v44 = vpop.f32.mrb[41].mxu1 }
0x1e5b   : > { %v2788_v45 = vpop.f32.mrb[42].mxu1  ;;  %v4840_v44 = vld [vmem:[%s6069_s6 + $0x38] sm:$0xff]  }
0x1e5c   : > { %v4547_v46 = vpop.f32.mrb[43].mxu1  ;;  %v2792_v47 = vadd.f32 %v2791_v42, %v5760_v30  ;;  %v4831_v30 = vld [vmem:[%s6077_s14 + $0x80] sm:$0xff]   ;;  %v4839_v42 = vld [vmem:[%s6069_s6 + $0x30] sm:$0xff]  }
0x1e5d   : > { %4557 = vmatpush3.bf16.msra.mxu1 %v4831_v30 }
0x1e5e   : > { %v2797_v48 = vsel %vm1417_vm12, %v2792_v47, 0.0  ;;  %4558 = vmatprep.subr.bf16.mxu1 %v4988_v50 }
0x1e5f   : > { %2798 = vadd.xlane.f32.xlu1 %v2797_v48 }
0x1e61   : > { %4559 = vmatpush3.bf16.msra.mxu1 %v4832_v6 }
0x1e62   : > { %4560 = vmatprep.subr.bf16.mxu1 %v4988_v50 }
0x1e65   : > { %4561 = vmatpush3.bf16.msra.mxu1 %v4833_v7 }
0x1e66   : > { %4562 = vmatprep.subr.bf16.mxu1 %v4988_v50 }
0x1e69   : > { %4563 = vmatpush3.bf16.msra.mxu1 %v4834_v9 }
0x1e6a   : > { %4564 = vmatprep.subr.bf16.mxu1 %v4988_v50 }
0x1e6d   : > { %4565 = vmatpush3.bf16.msra.mxu1 %v4835_v10 }
0x1e6e   : > { %4566 = vmatprep.subr.bf16.mxu1 %v4988_v50 }
0x1e71   : > { %4567 = vmatpush3.bf16.msra.mxu1 %v4836_v43 }
0x1e72   : > { %4568 = vmatprep.subr.bf16.mxu1 %v4988_v50 }
0x1e75   : > { %4569 = vmatpush3.bf16.msra.mxu1 %v4837_v11 }
0x1e76   : > { %4570 = vmatprep.subr.bf16.mxu1 %v4988_v50 }
0x1e79   : > { %4571 = vmatpush3.bf16.msra.mxu1 %v4838_v12 }
0x1e7a   : > { %4602 = vmatprep.subr.bf16.mxu1 %v4988_v50 }
0x1eec   : > { %v2799_v49 = vpop.xlane.xlu1 %2798 }
0x1eed   : > { %v2800_v51 = vmul.f32 0.03125, %v2799_v49  ;;  %v4065_v49 = vld [vmem:[%s6079_s16 + $0x2] ss:$0 sm:$0xff] }
0x1eef   : > { %v2801_v52 = vsub.f32 %v2792_v47, %v2800_v51 }
0x1ef1   : > { %v2802_v53 = vmul.f32 %v2801_v52, %v2801_v52 }
0x1ef3   : > { %v2803_v54 = vsel %vm1417_vm12, %v2802_v53, 0.0 }
0x1ef4   : > { %2804 = vadd.xlane.f32.xlu1 %v2803_v54 }
0x1f81   : > { %v2805_v57 = vpop.xlane.xlu1 %2804 }
0x1f82   : > { %v2806_v59 = vmul.f32 0.03125, %v2805_v57 }
0x1f84   : > { %v2807_v61 = vadd.f32 1e-05, %v2806_v59 }
0x1f86   : > { %4889 = vrsqrt.f32 %v2807_v61 }
0x1f90   : > { %v4890_v63 = vpop.eup %4889 }
0x1f91   : > { %v2809_v1 = vmul.f32 %v4890_v63, %v2801_v52  ;;  %v4066_v52 = vld [vmem:[%s6080_s17 + $0x2] ss:$0 sm:$0xff] }
0x1f93   : > { %v2816_v3 = vmul.f32 %v4026_v0, %v2809_v1 }
0x1f95   : > { %v2823_v4 = vadd.f32 %v4027_v2, %v2816_v3 }
0x1f97   : > { %v2824_v5 = vpack.c.bf16 %v2823_v4, %v2823_v4 }
0x1f99   : > { %4553 = vmatmul.mubr.msk.bf16.vlgmr.msra.gmra.mrb[64].mxu0 %vm1001_vm4, %v2824_v5 }
0x1f9a   : > { %4580 = vmatprep.mubr.msk.bf16.mxu0 %vm4989_vm2, %v4988_v50  ;;  %4577 = vmatpush3.bf16.msra.mxu0 %v4839_v42 }
0x1f9b   : > { %4578 = vmatprep.subr.bf16.mxu0 %v4988_v50 }
0x1f9e   : > { %4579 = vmatpush3.bf16.msra.mxu0 %v4840_v44 }
0x1f9f   : > { %4584 = vmatprep.subr.bf16.mxu0 %v4988_v50 }
0x206c   : > { %v2887_v14 = vpop.f32.mrb[64].mxu0 }
0x206d   : > { %v2888_v15 = vadd.f32 %v4033_v13, %v2887_v14  ;;  %v4554_v16 = vpop.f32.mrb[65].mxu0 }
0x206e   : > { %v2890_v17 = vpop.f32.mrb[66].mxu0 }
0x206f   : > { %v2894_v18 = vmul.f32 0.044715, %v2888_v15  ;;  %v4555_v19 = vpop.f32.mrb[67].mxu0  ;;  %v2893_v25 = vmul.f32 0.5, %v2888_v15 }
0x2071   : > { %v2895_v20 = vmul.f32 %v2894_v18, %v2888_v15 }
0x2073   : > { %v2896_v21 = vmul.f32 %v2895_v20, %v2888_v15 }
0x2075   : > { %v2897_v22 = vadd.f32 %v2896_v21, %v2888_v15 }
0x2077   : > { %v2898_v23 = vmul.f32 0.7978846, %v2897_v22 }
0x2079   : > { %4891 = vtanh.f32 %v2898_v23 }
0x2083   : > { %v4892_v24 = vpop.eup %4891 }
0x2084   : > { %v2900_v26 = vadd.f32 1.0, %v4892_v24 }
0x2086   : > { %v2901_v27 = vmul.f32 %v2900_v26, %v2893_v25 }
0x2088   : > { %v2902_v28 = vpack.c.bf16 %v2901_v27, %v2901_v27 }
0x208a   : > { %4573 = vmatmul.mubr.bf16.vlgmr.msra.gmra.mrb[44].mxu1 %v2902_v28 }
0x208b   : > { %4604 = vmatprep.mubr.msk.bf16.mxu1 %vm4989_vm2, %v4988_v50 }
0x215d   : > { %v3010_v31 = vpop.f32.mrb[44].mxu1 }
0x215e   : > { %v3011_v32 = vadd.f32 %v4054_v29, %v3010_v31  ;;  %v4574_v8 = vpop.f32.mrb[45].mxu1 }
0x215f   : > { %v3013_v33 = vpop.f32.mrb[46].mxu1 }
0x2160   : > { %v4575_v34 = vpop.f32.mrb[47].mxu1  ;;  %v3016_v35 = vadd.f32 %v3011_v32, %v2823_v4 }
0x2162   : > { %v3021_v36 = vsel %vm1417_vm12, %v3016_v35, 0.0 }
0x2163   : > { %3022 = vadd.xlane.f32.xlu0 %v3021_v36 }
0x21f0   : > { %v3023_v37 = vpop.xlane.xlu0 %3022 }
0x21f1   : > { %v3024_v38 = vmul.f32 0.03125, %v3023_v37  ;;  %v4841_v37 = vld [vmem:[%s6071_s8 + $0x30] sm:$0xff]  }
0x21f3   : > { %v3025_v39 = vsub.f32 %v3016_v35, %v3024_v38 }
0x21f5   : > { %v3026_v40 = vmul.f32 %v3025_v39, %v3025_v39 }
0x21f7   : > { %v3027_v41 = vsel %vm1417_vm12, %v3026_v40, 0.0 }
0x21f8   : > { %3028 = vadd.xlane.f32.xlu1 %v3027_v41 }
0x2285   : > { %v3029_v45 = vpop.xlane.xlu1 %3028 }
0x2286   : > { %v3030_v46 = vmul.f32 0.03125, %v3029_v45 }
0x2288   : > { %v3031_v47 = vadd.f32 1e-05, %v3030_v46 }
0x228a   : > { %4893 = vrsqrt.f32 %v3031_v47 }
0x2294   : > { %v4894_v48 = vpop.eup %4893 }
0x2295   : > { %v3033_v51 = vmul.f32 %v4894_v48, %v3025_v39 }
0x2297   : > { %v3040_v53 = vmul.f32 %v4065_v49, %v3033_v51 }
0x2299   : > { %v5891_v54 = vadd.f32 %v4066_v52, %v3040_v53  ;;  %v4842_v52 = vld [vmem:[%s6071_s8 + $0x38] sm:$0xff]  }
0x229b   : > { %v3048_v55 = vpack.c.bf16 %v5891_v54, %v5891_v54 }
0x229d   : > { %4581 = vmatmul.mubr.msk.bf16.vlgmr.msra.gmra.mrb[68].mxu0 %vm1001_vm4, %v3048_v55 }
0x229e   : > { %4586 = vmatprep.mubr.msk.bf16.mxu0 %vm4989_vm2, %v4988_v50 }
0x2370   : > { %v3111_v30 = vpop.f32.mrb[68].mxu0 }
0x2371   : > { %v3112_v57 = vadd.f32 %v4072_v56, %v3111_v30  ;;  %v4582_v59 = vpop.f32.mrb[69].mxu0 }
0x2372   : > { %v3114_v61 = vpop.f32.mrb[70].mxu0 }
0x2373   : > { %v3117_v63 = vpack.c.bf16 %v3112_v57, %v3112_v57  ;;  %3119 = vrot.lane.b32.xlu1 %v3112_v57, %s4990_s29  ;;  %v4583_v0 = vpop.f32.mrb[71].mxu0  ;;  %s4135_s29 = sshll.u32 %s5115_s11, 4  ;;  %s4995_s11 = smov [#allocation4]  }
0x2374   : > { %s6021_s30 = scalar_lea.hbm %s6109_s28, %s4135_s29  ;;  %s4925_s23 = sshll.u32 %s4995_s11, 4  ;;  %s4926_s23 = int_to_ptr.vmem [resolvable:$false] %s4925_s23 }
0x2375   : > { %3326 = vrot.lane.b32.xlu0 %v3117_v63, %s4992_s21  ;;  %s4927_s20 = scalar_lea.vmem %s4926_s23, 32 }
0x23e5   : > { %v3120_v1 = vpop.permute.xlu1 %3119 }
0x23e6   : > { %3122 = vxpose.xlu1.b32.start.end [1/1] (short) (narrow) %v3120_v1, 32  ;;  %v4085_v1 = vld [vmem:[%s6072_s9 + $0x3] ss:$0 sm:$0xff] }
0x23e7   : > { %v3327_v9 = vpop.permute.xlu0 %3326 }
0x2466   : > { %v3138_v2 = vpop.trf.xlu1 }
0x246a   : > { %v3139_v3 = vpop.trf.xlu1 }
0x246b   : > { %v3154_v4 = vpack.c.bf16 %v3139_v3, %v3138_v2 }
0x246d   : > { %4585 = vmatpush3.bf16.msra.mxu0 %v3154_v4 }
0x246e   : > { %v3140_v5 = vpop.trf.xlu1  ;;  %4590 = vmatprep.subr.bf16.mxu0 %v4988_v50 }
0x2470   : > { %4587 = vmatmul.mubr.msk.bf16.vlgmr.msra.gmra.mrb[72].mxu0 %vm1089_vm5, %v3117_v63 }
0x2471   : > { %4592 = vmatprep.mubr.msk.bf16.mxu0 %vm4989_vm2, %v4988_v50 }
0x2472   : > { %v3141_v6 = vpop.trf.xlu1 }
0x2473   : > { %v3155_v7 = vpack.c.bf16 %v3141_v6, %v3140_v5 }
0x2475   : > { %4603 = vmatpush3.bf16.msra.mxu1 %v3155_v7 }
0x2476   : > { %4614 = vmatprep.subr.bf16.mxu1 %v4988_v50 }
0x2478   : > { %4605 = vmatmul.mubr.msk.bf16.vlgmr.msra.gmra.mrb[48].mxu1 %vm1089_vm5, %v3327_v9 }
0x2479   : > { %4616 = vmatprep.mubr.msk.bf16.mxu1 %vm4989_vm2, %v4988_v50  ;;  %4615 = vmatpush3.bf16.msra.mxu1 %v4842_v52 }
0x247a   : > { %4628 = vmatprep.subr.bf16.mxu1 %v4988_v50 }
0x2543   : > { %v3200_v10 = vpop.f32.mrb[72].mxu0 }
0x2544   : > { %v3206_v43 = vmul.f32 0.25, %v3200_v10  ;;  %v4588_v11 = vpop.f32.mrb[73].mxu0 }
0x2545   : > { %v3203_v12 = vpop.f32.mrb[74].mxu0 }
0x2546   : > { %v4589_v13 = vpop.f32.mrb[75].mxu0  ;;  %v3207_v14 = vadd.f32 %v3206_v43, %v5508_v62 }
0x2548   : > { %v3208_v15 = vsel %vm1135_vm9, %v3207_v14, -inf }
0x2549   : > { %3209 = vmax.xlane.f32.xlu0 %v3208_v15  ;;  %v4843_v15 = vld [vmem:[%s6075_s12 + $0x30] sm:$0xff]  }
0x254b   : > { %v3365_v16 = vpop.f32.mrb[48].mxu1 }
0x254c   : > { %v4606_v17 = vpop.f32.mrb[49].mxu1  ;;  %v3371_v20 = vmul.f32 0.25, %v3365_v16  ;;  %v4844_v16 = vld [vmem:[%s6075_s12 + $0x38] sm:$0xff]  }
0x254d   : > { %v3368_v18 = vpop.f32.mrb[50].mxu1 }
0x254e   : > { %v4607_v19 = vpop.f32.mrb[51].mxu1  ;;  %v3372_v21 = vadd.f32 %v3371_v20, %v5508_v62 }
0x2550   : > { %v3373_v22 = vsel %vm1135_vm9, %v3372_v21, -inf }
0x255f   : > { %3221 = vrot.lane.b32.xlu0 %v3117_v63, %s4991_s22  ;;  %s558_s22 = scalar_lea.vmem [#allocation4], %s557_s18 }
0x2560   : > { %s3834_s21 = sshll.u32 %s558_s22, 4  ;;  %s6023_s21 = int_to_ptr.vmem [resolvable:$true] %s3834_s21 }
0x2561   : > { %s4921_s25 = scalar_lea.vmem %s6023_s21, 16  ;;  %p4928_p6 = scmp.lt.s32.totalorder %s6023_s21, %s4926_s23 }
0x2562   : > { %p4922_p3 = scmp.ne.s32.totalorder %s6023_s21, %s4921_s25  ;;  %p4929_p7 = scmp.lt.s32.totalorder %s4927_s20, %s4921_s25 }
0x2564   : > { %p4923_p4 = pnand %p4922_p3, %p5132_p10  ;;  %p4930_p8 = por %p4929_p7, %p4928_p6 }
0x2566   : > { %p4924_p5 = pneg %p4923_p4 }
0x2568   : > { %p4931_p9 = pnand %p4930_p8, %p4924_p5 }
0x257e   : > { %3374 = vmax.xlane.f32.xlu0 %v3373_v22 }
0x25d6   : > { %v3210_v23 = vpop.xlane.xlu0 %3209 }
0x25d7   : > { %v3211_v24 = vsub.f32 %v3207_v14, %v3210_v23  ;;  %v4093_v23 = vld [vmem:[%s6108_s24 + $0x3] ss:$0 sm:$0xff] }
0x25d9   : > { %v3212_v25 = vmul.f32 1.442695, %v3211_v24 }
0x25da   : > { %v3222_v26 = vpop.permute.xlu0 %3221 }
0x25db   : > { %4895 = vpow2.f32 %v3212_v25  ;;  %v3227_v27 = vsel %vm1155_vm10, %v3222_v26, 0 }
0x25dc   : > { %4591 = vmatpush3.bf16.msra.mxu0 %v3227_v27  ;;  %v4846_v27 = vld [vmem:[%s6077_s14 + $0xc8] sm:$0xff]  }
0x25dd   : > { %4596 = vmatprep.subr.bf16.mxu0 %v4988_v50 }
0x25e5   : > { %v4896_v28 = vpop.eup %4895 }
0x25e6   : > { %v3214_v29 = vsel %vm1135_vm9, %v4896_v28, 0.0 }
0x25e7   : > { %3215 = vadd.xlane.f32.xlu1 %v3214_v29  ;;  %v4848_v29 = vld [vmem:[%s6077_s14 + $0xd8] sm:$0xff]  }
0x260b   : > { %v3375_v31 = vpop.xlane.xlu0 %3374 }
0x260c   : > { %v3376_v32 = vsub.f32 %v3372_v21, %v3375_v31  ;;  %v4092_v21 = vld [vmem:[%s6073_s10 + $0x3] ss:$0 sm:$0xff] }
0x260d   : > { %v4849_v31 = vld [vmem:[%s6077_s14 + $0xe0] sm:$0xff]  }
0x260e   : > { %v3377_v62 = vmul.f32 1.442695, %v3376_v32  ;;  %v4850_v32 = vld [vmem:[%s6077_s14 + $0xe8] sm:$0xff]  }
0x2610   : > { %4897 = vpow2.f32 %v3377_v62  ;;  %v4851_v62 = vld [vmem:[%s6077_s14 + $0xf0] sm:$0xff]  }
0x261a   : > { %v4898_v8 = vpop.eup %4897 }
0x261b   : > { %v3379_v33 = vsel %vm1135_vm9, %v4898_v8, 0.0 }
0x261c   : > { %3380 = vadd.xlane.f32.xlu1 %v3379_v33  ;;  %v4099_v33 = vld [vmem:[%s6076_s13 + $0x3] ss:$0 sm:$0xff] }
0x262d   : > { %3385 = vrot.lane.b32.xlu1 %v3117_v63, %s4993_s19 }
0x2674   : > { %v3216_v34 = vpop.xlane.xlu1 %3215 }
0x2675   : > { %4899 = vrcp.f32 %v3216_v34 }
0x267f   : > { %v4900_v35 = vpop.eup %4899 }
0x2680   : > { %v3218_v36 = vmul.f32 %v4900_v35, %v4896_v28  ;;  %v4847_v28 = vld [vmem:[%s6077_s14 + $0xd0] sm:$0xff]  }
0x2682   : > { %v3219_v38 = vpack.c.bf16 %v3218_v36, %v3218_v36 }
0x2684   : > { %4593 = vmatmul.mubr.msk.bf16.vlgmr.msra.gmra.mrb[76].mxu0 %vm1151_vm11, %v3219_v38 }
0x2685   : > { %4597 = vmatpush3.bf16.msra.mxu0 %v4841_v37  ;;  %4598 = vmatprep.mubr.msk.bf16.mxu0 %vm4989_vm2, %v4988_v50 }
0x2686   : > { %4608 = vmatprep.subr.bf16.mxu0 %v4988_v50 }
0x26a9   : > { %v3381_v39 = vpop.xlane.xlu1 %3380 }
0x26aa   : > { %4901 = vrcp.f32 %v3381_v39 }
0x26ad   : > { %v3386_v40 = vpop.permute.xlu1 %3385 }
0x26ae   : > { %v3391_v47 = vsel %vm1155_vm10, %v3386_v40, 0 }
0x26b4   : > { %v4902_v45 = vpop.eup %4901 }
0x26b5   : > { %v3383_v49 = vmul.f32 %v4902_v45, %v4898_v8  ;;  %v4852_v8 = vld [vmem:[%s6077_s14 + $0xf8] sm:$0xff]  }
0x26b7   : > { %v3384_v51 = vpack.c.bf16 %v3383_v49, %v3383_v49  ;;  %v4120_v49 = vld [vmem:[%s6078_s15 + $0x3] ss:$0 sm:$0xff] }
0x2757   : > { %v3263_v41 = vpop.f32.mrb[76].mxu0 }
0x2758   : > { %v3269_v42 = vpack.c.bf16 %v3263_v41, %v3263_v41  ;;  %v4594_v44 = vpop.f32.mrb[77].mxu0 }
0x2759   : > { %v3266_v46 = vpop.f32.mrb[78].mxu0 }
0x275a   : > { %v4595_v48 = vpop.f32.mrb[79].mxu0  ;;  %4599 = vmatmul.mubr.msk.bf16.vlgmr.msra.gmra.mrb[80].mxu0 %vm1089_vm5, %v3269_v42 }
0x275b   : > { %4609 = vmatpush3.bf16.msra.mxu0 %v3391_v47  ;;  %4610 = vmatprep.mubr.msk.bf16.mxu0 %vm4989_vm2, %v4988_v50 }
0x275c   : > { %4620 = vmatprep.subr.bf16.mxu0 %v4988_v50 }
0x2762   : > { %4611 = vmatmul.mubr.msk.bf16.vlgmr.msra.gmra.mrb[84].mxu0 %vm1151_vm11, %v3384_v51 }
0x2763   : > { %4624 = vmatprep.mubr.msk.bf16.mxu0 %vm4989_vm2, %v4988_v50  ;;  %4621 = vmatpush3.bf16.msra.mxu0 %v4843_v15 }
0x2764   : > { %4622 = vmatprep.subr.bf16.mxu0 %v4988_v50 }
0x2767   : > { %4623 = vmatpush3.bf16.msra.mxu0 %v4844_v16 }
0x2768   : > { %4648 = vmatprep.subr.mxu0 %v4988_v50 }
0x282d   : > { %v3313_v53 = vpop.f32.mrb[80].mxu0 }
0x282e   : > { %v4600_v55 = vpop.f32.mrb[81].mxu0  ;;  %v3325_v2 = vadd.f32 %v4085_v1, %v3313_v53 }
0x282f   : > { %v3316_v56 = vpop.f32.mrb[82].mxu0 }
0x2830   : > { %v4601_v30 = vpop.f32.mrb[83].mxu0 }
0x2835   : > { %v3427_v57 = vpop.f32.mrb[84].mxu0 }
0x2836   : > { %v3433_v59 = vpack.c.bf16 %v3427_v57, %v3427_v57  ;;  %v4612_v61 = vpop.f32.mrb[85].mxu0 }
0x2837   : > { %v3430_v63 = vpop.f32.mrb[86].mxu0 }
0x2838   : > { %v4613_v0 = vpop.f32.mrb[87].mxu0  ;;  %4617 = vmatmul.mubr.msk.bf16.vlgmr.msra.gmra.mrb[52].mxu1 %vm1089_vm5, %v3433_v59 }
0x2839   : > { %4644 = vmatprep.mubr.msk.bf16.mxu1 %vm4989_vm2, %v4988_v50 }
0x290b   : > { %v3477_v3 = vpop.f32.mrb[52].mxu1 }
0x290c   : > { %v3483_v4 = vadd.f32 %v3477_v3, %v3325_v2  ;;  %v4618_v5 = vpop.f32.mrb[53].mxu1 }
0x290d   : > { %v3480_v6 = vpop.f32.mrb[54].mxu1 }
0x290e   : > { %v4619_v7 = vpop.f32.mrb[55].mxu1  ;;  %v3484_v9 = vadd.f32 %v3483_v4, %v5891_v54  ;;  %v4845_v54 = vld [vmem:[%s6077_s14 + $0xc0] sm:$0xff]  }
0x290f   : > { %4629 = vmatpush3.bf16.msra.mxu1 %v4845_v54  ;;  %v4131_v6 = vld [vmem:[%s6079_s16 + $0x3] ss:$0 sm:$0xff] }
0x2910   : > { %v3489_v10 = vsel %vm1417_vm12, %v3484_v9, 0.0  ;;  %4630 = vmatprep.subr.bf16.mxu1 %v4988_v50 }
0x2911   : > { %3490 = vadd.xlane.f32.xlu1 %v3489_v10  ;;  %v4994_v10 = vmov 0.2  }
0x2913   : > { %4631 = vmatpush3.bf16.msra.mxu1 %v4846_v27 }
0x2914   : > { %4632 = vmatprep.subr.bf16.mxu1 %v4988_v50 }
0x2917   : > { %4633 = vmatpush3.bf16.msra.mxu1 %v4847_v28 }
0x2918   : > { %4634 = vmatprep.subr.bf16.mxu1 %v4988_v50 }
0x291b   : > { %4635 = vmatpush3.bf16.msra.mxu1 %v4848_v29 }
0x291c   : > { %4636 = vmatprep.subr.bf16.mxu1 %v4988_v50 }
0x291f   : > { %4637 = vmatpush3.bf16.msra.mxu1 %v4849_v31 }
0x2920   : > { %4638 = vmatprep.subr.bf16.mxu1 %v4988_v50 }
0x2923   : > { %4639 = vmatpush3.bf16.msra.mxu1 %v4850_v32 }
0x2924   : > { %4640 = vmatprep.subr.bf16.mxu1 %v4988_v50 }
0x2927   : > { %4641 = vmatpush3.bf16.msra.mxu1 %v4851_v62 }
0x2928   : > { %4642 = vmatprep.subr.bf16.mxu1 %v4988_v50 }
0x292b   : > { %4643 = vmatpush3.bf16.msra.mxu1 %v4852_v8 }
0x299e   : > { %v3491_v43 = vpop.xlane.xlu1 %3490 }
0x299f   : > { %v3492_v11 = vmul.f32 0.03125, %v3491_v43  ;;  %v3740_v43 = vsel %vm971_vm6, 0.0, %v4994_v10 }
0x29a1   : > { %v3493_v12 = vsub.f32 %v3484_v9, %v3492_v11  ;;  %v4132_v9 = vld [vmem:[%s6080_s17 + $0x3] ss:$0 sm:$0xff] }
0x29a3   : > { %v3494_v13 = vmul.f32 %v3493_v12, %v3493_v12 }
0x29a5   : > { %v3495_v14 = vsel %vm1417_vm12, %v3494_v13, 0.0  ;;  %v3741_v13 = vsel %vm5499_vm7, %v3740_v43, 0.16666667 }
0x29a6   : > { %3496 = vadd.xlane.f32.xlu0 %v3495_v14 }
0x2a33   : > { %v3497_v17 = vpop.xlane.xlu0 %3496 }
0x2a34   : > { %v3498_v18 = vmul.f32 0.03125, %v3497_v17 }
0x2a36   : > { %v3499_v19 = vadd.f32 1e-05, %v3498_v18 }
0x2a38   : > { %4903 = vrsqrt.f32 %v3499_v19 }
0x2a42   : > { %v4904_v20 = vpop.eup %4903 }
0x2a43   : > { %v3501_v22 = vmul.f32 %v4904_v20, %v3493_v12 }
0x2a45   : > { %v3508_v24 = vmul.f32 %v4092_v21, %v3501_v22 }
0x2a47   : > { %v3515_v25 = vadd.f32 %v4093_v23, %v3508_v24 }
0x2a49   : > { %v3516_v26 = vpack.c.bf16 %v3515_v25, %v3515_v25 }
0x2a4b   : > { %4625 = vmatmul.mubr.msk.bf16.vlgmr.msra.gmra.mrb[88].mxu0 %vm1001_vm4, %v3516_v26 }
0x2a4c   : > { %4650 = vmatprep.mubr.msk.f32.mxu0 %vm4989_vm2, %v4988_v50 }
0x2b1e   : > { %v3579_v34 = vpop.f32.mrb[88].mxu0 }
0x2b1f   : > { %v3580_v35 = vadd.f32 %v4099_v33, %v3579_v34  ;;  %v4626_v36 = vpop.f32.mrb[89].mxu0 }
0x2b20   : > { %v3582_v37 = vpop.f32.mrb[90].mxu0 }
0x2b21   : > { %v3586_v38 = vmul.f32 0.044715, %v3580_v35  ;;  %v4627_v39 = vpop.f32.mrb[91].mxu0  ;;  %v3585_v46 = vmul.f32 0.5, %v3580_v35 }
0x2b23   : > { %v3587_v40 = vmul.f32 %v3586_v38, %v3580_v35 }
0x2b25   : > { %v3588_v41 = vmul.f32 %v3587_v40, %v3580_v35 }
0x2b27   : > { %v3589_v42 = vadd.f32 %v3588_v41, %v3580_v35 }
0x2b29   : > { %v3590_v44 = vmul.f32 0.7978846, %v3589_v42 }
0x2b2b   : > { %4905 = vtanh.f32 %v3590_v44 }
0x2b35   : > { %v4906_v45 = vpop.eup %4905 }
0x2b36   : > { %v3592_v47 = vadd.f32 1.0, %v4906_v45 }
0x2b38   : > { %v3593_v50 = vmul.f32 %v3592_v47, %v3585_v46 }
0x2b3a   : > { %v3594_v48 = vpack.c.bf16 %v3593_v50, %v3593_v50 }
0x2b3c   : > { %4645 = vmatmul.mubr.bf16.vlgmr.msra.gmra.mrb[56].mxu1 %v3594_v48 }
0x2c0f   : > { %v3702_v51 = vpop.f32.mrb[56].mxu1 }
0x2c10   : > { %v3703_v52 = vadd.f32 %v4120_v49, %v3702_v51  ;;  %v4646_v53 = vpop.f32.mrb[57].mxu1 }
0x2c11   : > { %v3705_v55 = vpop.f32.mrb[58].mxu1 }
0x2c12   : > { %v4647_v56 = vpop.f32.mrb[59].mxu1  ;;  %v3708_v30 = vadd.f32 %v3703_v52, %v3515_v25 }
0x2c14   : > { %v3713_v57 = vsel %vm1417_vm12, %v3708_v30, 0.0 }
0x2c15   : > { %3714 = vadd.xlane.f32.xlu0 %v3713_v57 }
0x2ca2   : > { %v3715_v59 = vpop.xlane.xlu0 %3714 }
0x2ca3   : > { %v3716_v61 = vmul.f32 0.03125, %v3715_v59 }
0x2ca5   : > { %v3717_v63 = vsub.f32 %v3708_v30, %v3716_v61 }
0x2ca7   : > { %v3718_v0 = vmul.f32 %v3717_v63, %v3717_v63 }
0x2ca9   : > { %v3719_v1 = vsel %vm1417_vm12, %v3718_v0, 0.0 }
0x2caa   : > { %3720 = vadd.xlane.f32.xlu0 %v3719_v1 }
0x2d37   : > { %v3721_v2 = vpop.xlane.xlu0 %3720 }
0x2d38   : > { %v3722_v3 = vmul.f32 0.03125, %v3721_v2 }
0x2d3a   : > { %v3723_v4 = vadd.f32 1e-05, %v3722_v3 }
0x2d3c   : > { %4907 = vrsqrt.f32 %v3723_v4 }
0x2d46   : > { %v4908_v5 = vpop.eup %4907 }
0x2d47   : > { %v3725_v7 = vmul.f32 %v4908_v5, %v3717_v63 }
0x2d49   : > { %v3732_v11 = vmul.f32 %v4131_v6, %v3725_v7 }
0x2d4b   : > { %v3739_v12 = vadd.f32 %v4132_v9, %v3732_v11 }
0x2d4d   : > { %4649 = vmatpush3.msk.msra.mxu0 %vm3745_vm13, %v3739_v12 }
0x2d4e   : > { %4651 = vmatmul.mubr.msk.f32.vlgmr.msra.gmra.mrb[92].mxu0 %vm1151_vm11, %v3741_v13 }
0x2e21   : > { %v3815_v58 = vpop.f32.mrb[92].mxu0 }
0x2e22   : > { %3820 = vst.msk [vmem:[%s558_s22] sm:$0x1] %vm3819_vm14, %v3815_v58  ;;  %v4652_v60 = vpop.f32.mrb[93].mxu0 }
0x2e23   : > { %4934 = shalt.err (!%p4931_p9)
}
0x2e24   : > { %s4935_s27 = scalar_lea.hbm %s6021_s30, 16  ;;  %s4939_s22 = scalar_lea.hbm %s6109_s28, 32 }
0x2e25   : > { %p4936_p12 = scmp.ne.s32.totalorder %s6021_s30, %s4935_s27  ;;  %p4940_p1 = scmp.lt.u32.totalorder %s6021_s30, %s6109_s28 }
0x2e26   : > { %p4941_p2 = scmp.lt.u32.totalorder %s4939_s22, %s4935_s27  ;;  %p4943_p4 = scmp.lt.u32.totalorder %s4935_s27, %s6021_s30 }
0x2e27   : > { %p4937_p13 = pnand %p4936_p12, %p5132_p10 }
0x2e28   : > { %p4942_p3 = por %p4941_p2, %p4940_p1 }
0x2e29   : > { %p4938_p0 = pneg %p4937_p13 }
0x2e2a   : > { %p4944_p5 = por %p4943_p4, %p4942_p3 }
0x2e2c   : > { %p4945_p6 = pnand %p4944_p5, %p4938_p0 }
0x2e2e   : > { %4948 = shalt.err (!%p4945_p6)
}
0x2e2f   : > { %4750 = dma.vmem_to_hbm [thread:$0]  (%p5132_p10), %s6023_s21, 16, %s6021_s30, %s3822_s0  }
0x2e30 PF: > { %s6110_s25 = sld [smem:[#allocation10_spill]]  ;;  %s6111_s11 = sld [smem:[#allocation8_spill]] }
0x2e36   : > { %p4756_p7 = scmp.ge.s32.totalorder %s6110_s25, 2  ;;  %s3846_s20 = sand.u32 1, %s6111_s11  }
0x2e37   : > { %s3847_s18 = scalar_lea.sflag [#allocation5], %s3846_s20 }
0x2e38   : > { %p4753_p8 = pnand %p4756_p7, %p5136_p11 }
0x2e3a   : > { %4968 = dma.done.wait (!%p4753_p8), %s3847_s18, 16  }
0x2e3b   : > { %4970 = vsyncadd (!%p4753_p8), %s3847_s18, 4294967280  ;;  %s6113_s21 = sld [smem:[#allocation11_spill]]  ;;  %s6114_s27 = sld [smem:[#allocation9_spill]] }
0x2e3c   : > { %s6115_s20 = sld [smem:[#allocation12_spill]]  ;;  %s6116_s19 = smov %s4977_s1 }
0x2e41   : > { %p34_p9 = scmp.ge.s32.totalorder %s6113_s21, 4   ;;  %s6117_s1 = smov %s6114_s27 }
0x2e43   :  { %36 = sbr.rel (!%p34_p9) target bundleno = 25 (0x19), region = 162 }
0x2e4a   :  { %3851 = vsyncpa [#allocation5], 1 }
0x2e4b   :  { %3853 = vsyncpa [#allocation5 + $0x1], 1 }

</bundles_post_ra>
